<compile_context>
chip_gen: v7x
topology: tpu7x:2x2x1
jax: 0.10.0
libtpu: 0.0.40
codegen_flags: <defaults>
</compile_context>

<pallas_src>
import numpy as np
import jax
import jax.numpy as jnp
from jax.experimental import pallas as pl
from jax.experimental.pallas import tpu as pltpu

MID = 32          # RadialFunc hidden width (self.mid_dim = 32)
LN_EPS = 1e-5     # nn.LayerNorm default eps


class Fiber:
    """Minimal stand-in for the SE(3)-transformer Fiber: list of (multiplicity, degree)."""
    def __init__(self, structure):
        self.structure = list(structure)
        self.degrees = [d for _, d in self.structure]


def _round_up(x, m):
    return ((x + m - 1) // m) * m


def _ln(x, g, b):
    mu = jnp.mean(x, axis=-1, keepdims=True)
    var = jnp.mean(jnp.square(x - mu), axis=-1, keepdims=True)
    return (x - mu) * jax.lax.rsqrt(var + LN_EPS) * g + b


def _expansion_indices(mi, di, mo, do):
    """For flat n in (o, p, i, q) order return (oi, pq) gather indices."""
    d_in, d_out = 2 * di + 1, 2 * do + 1
    n = np.arange(mo * d_out * mi * d_in)
    o = n // (d_out * mi * d_in)
    p = (n // (mi * d_in)) % d_out
    i = (n // d_in) % mi
    q = n % d_in
    return o * mi + i, p * d_in + q


# ----------------------------------------------------------------------------
# Fused kernel: per-degree radial MLP + frequency contraction + lane-dense h @ K
# ----------------------------------------------------------------------------
def _make_kernel(metas, ifs, A):
    n_do = len(metas)

    def kernel(*refs):
        feat_ref, h_ref, bas_ref = refs[:3]
        wrefs = refs[3:3 + 12 * n_do]
        orefs = refs[3 + 12 * n_do:]

        x = feat_ref[...]            # (et, 1)
        h_all = h_ref[...]           # (et, ifs*A): column m*A + a  ==  h[e, a, m]
        bas_all = bas_ref[...]       # (et, sum_do PQ*nf), contiguous basis slab

        for d, meta in enumerate(metas):
            (w1, b1, g1, be1, w2, b2, g2, be2,
             w3c, b3c, ebc, eh) = wrefs[12 * d:12 * (d + 1)]
            nf, N, Np, rdim = meta['nf'], meta['N'], meta['Np'], meta['rdim']
            boff, bw = meta['boff'], meta['bw']

            # RadialFunc MLP (per output degree).  Linear(1,32) is a VPU broadcast FMA.
            y = x * w1[...] + b1[...]
            y = jnp.maximum(_ln(y, g1[...], be1[...]), 0.0)
            y = jnp.dot(y, w2[...], preferred_element_type=jnp.float32) + b2[...]
            y = jnp.maximum(_ln(y, g2[...], be2[...]), 0.0)

            # Last Linear + basis expansion, merged over all frequencies into single
            # matmuls with 128-aligned per-frequency blocks (columns pre-permuted into
            # the final (o, p, i, q) lane order).
            r_all = jnp.dot(y, w3c[...], preferred_element_type=jnp.float32) + b3c[...]   # (et, nf*Np)
            bas = bas_all[:, boff:boff + bw]                                              # (et, PQ*nf)
            b_all = jnp.dot(bas, ebc[...], preferred_element_type=jnp.float32)            # (et, nf*Np)
            prod = r_all * b_all
            k = prod[:, :N]
            for f in range(1, nf):
                k = k + prod[:, f * Np:f * Np + N]            # (et, N): flat per-edge kernel K

            # h @ K directly in the lane-dense output layout (et, A*rdim):
            #   out[:, a*rdim + r] = sum_m h[:, a, m] * K[:, m*rdim + r]
            # Hm (broadcast of h[:, :, m] over r) comes from a constant 0/1 matrix on the
            # MXU; Km is the K slice lane-tiled A times; the FMA and the single store are
            # fully lane dense.
            acc = None
            for m in range(ifs):
                hm = h_all[:, m * A:(m + 1) * A]                                          # (et, A)
                Hm = jnp.dot(hm, eh[...], preferred_element_type=jnp.float32)             # (et, A*rdim)
                ks = k[:, m * rdim:(m + 1) * rdim]                                        # (et, rdim)
                Km = jnp.concatenate([ks] * A, axis=-1)                                   # (et, A*rdim)
                t = Hm * Km
                acc = t if acc is None else acc + t
            orefs[d][...] = acc

    return kernel


# ----------------------------------------------------------------------------
# Wrapper: constant expansion matrices, edge tiling, one fused pallas_call
# ----------------------------------------------------------------------------
def fused_sconv_call(feat, h_d, basis, params, di, mi, f_out, ifs,
                     block_e=256, vmem_limit_bytes=32 * 1024 * 1024):
    E, A, ifs_ = h_d.shape
    assert ifs_ == ifs

    # Edge tiling: multiple of 8 sublanes; whenever E > block_e the grid has >= 2 steps,
    # which keeps both v7x TensorCores busy via dimension_semantics=("parallel",).
    et = min(_round_up(block_e, 8), _round_up(E, 8))
    e_pad = _round_up(E, et)

    # Lane-dense h: (E, ifs*A) with column m*A + a == h[e, a, m]  (wrapper-side plumbing).
    h_t = jnp.transpose(h_d, (0, 2, 1)).reshape(E, ifs * A)

    metas, weights, bas_parts = [], [], []
    out_shapes, out_specs, out_meta = [], [], []
    boff = 0
    flops = 0
    bytes_acc = E * 4 * (1 + ifs * A)

    for mo, do in f_out.structure:
        p = params[f'({di},{do})']
        d_in, d_out = 2 * di + 1, 2 * do + 1
        nf = 2 * min(di, do) + 1
        PQ = d_out * d_in
        N = mo * d_out * mi * d_in
        assert N % ifs == 0, "kernel.view(E, input_feature_size, -1) requires ifs | mo*(2do+1)*mi*(2di+1)"
        rdim = N // ifs
        Np = _round_up(N, 128)                   # 128-aligned per-frequency block

        oi_idx, pq_idx = _expansion_indices(mi, di, mo, do)

        # Last Linear re-laid out to the final (o,p,i,q) lane order, one 128-aligned block
        # per frequency, merged into a single (MID, nf*Np) weight.
        w3_blocks, b3_blocks = [], []
        for f in range(nf):
            cols = jnp.asarray(oi_idx * nf + f)
            w3f = jnp.take(p['w3'], cols, axis=1)                       # (MID, N)
            b3f = jnp.take(p['b3'], cols, axis=1)                       # (1, N)
            w3_blocks.append(jnp.pad(w3f, ((0, 0), (0, Np - N))))
            b3_blocks.append(jnp.pad(b3f, ((0, 0), (0, Np - N))))
        w3c = jnp.concatenate(w3_blocks, axis=1)                        # (MID, nf*Np)
        b3c = jnp.concatenate(b3_blocks, axis=1)                        # (1, nf*Np)

        # Basis expansion (exact 0/1 gather): lane f*Np + n picks basis[pq(n), f].
        ebc_np = np.zeros((PQ * nf, nf * Np), np.float32)
        for f in range(nf):
            ebc_np[pq_idx * nf + f, f * Np + np.arange(N)] = 1.0
        ebc = jnp.asarray(ebc_np)

        # h broadcast-over-r expansion: Hm[:, a*rdim + r] = hm[:, a]  (exact 0/1).
        eh = jnp.asarray(np.kron(np.eye(A, dtype=np.float32),
                                 np.ones((1, rdim), np.float32)))       # (A, A*rdim)

        bas_parts.append(basis[f'{di},{do}'].reshape(E, PQ * nf))
        metas.append(dict(nf=nf, N=N, Np=Np, rdim=rdim, boff=boff, bw=PQ * nf))
        boff += PQ * nf

        weights += [p['w1'], p['b1'], p['g1'], p['be1'],
                    p['w2'], p['b2'], p['g2'], p['be2'], w3c, b3c, ebc, eh]
        out_shapes.append(jax.ShapeDtypeStruct((e_pad, A * rdim), jnp.float32))
        out_specs.append(pl.BlockSpec((et, A * rdim), lambda i: (i, 0)))
        out_meta.append((A, rdim))

        flops += 2 * E * (MID + MID * MID + MID * nf * Np + PQ * nf * nf * Np
                          + ifs * A * A * rdim + 2 * ifs * A * rdim + nf * Np)
        bytes_acc += E * 4 * (PQ * nf + A * rdim)

    bas_cat = jnp.concatenate(bas_parts, axis=1)                        # (E, sum PQ*nf)
    btot = bas_cat.shape[1]

    if e_pad != E:
        pad = ((0, e_pad - E), (0, 0))
        feat = jnp.pad(feat, pad)
        h_t = jnp.pad(h_t, pad)
        bas_cat = jnp.pad(bas_cat, pad)

    const = lambda i: (0, 0)
    in_specs = [
        pl.BlockSpec((et, 1), lambda i: (i, 0)),            # feat
        pl.BlockSpec((et, ifs * A), lambda i: (i, 0)),      # h (lane-dense)
        pl.BlockSpec((et, btot), lambda i: (i, 0)),         # basis slab (lane-dense)
    ]
    for w in weights:                                       # weights resident across steps
        in_specs.append(pl.BlockSpec(w.shape, const))

    kernel = _make_kernel(metas, ifs, A)
    outs = pl.pallas_call(
        kernel,
        out_shape=tuple(out_shapes),
        grid=(e_pad // et,),
        in_specs=in_specs,
        out_specs=tuple(out_specs),
        compiler_params=pltpu.CompilerParams(
            dimension_semantics=("parallel",),
            vmem_limit_bytes=vmem_limit_bytes),
        cost_estimate=pl.CostEstimate(flops=flops, transcendentals=4 * E,
                                      bytes_accessed=bytes_acc),
    )(feat, h_t, bas_cat, *weights)

    results = []
    for (a_, rdim_), o in zip(out_meta, outs):
        results.append(o[:E].reshape(E, a_, rdim_))         # free contiguous reshape
    return results


def sconv_so3_partial_forward(h, S, r, basis, f_in, f_out, params, input_feature_size,
                              block_e=256, vmem_limit_bytes=32 * 1024 * 1024):
    feat = jnp.concatenate([r], axis=-1)
    S = dict(S) if S is not None else {}
    # The PyTorch loop overwrites S[f'out{do}'] for every input degree, so only the LAST
    # entry of f_in.structure contributes to the returned dict; the dead (overwritten)
    # launches are skipped here -- the returned dict matches the PyTorch module.
    mi, di = f_in.structure[-1]
    outs = fused_sconv_call(feat, h['d'], basis, params, di, mi, f_out,
                            input_feature_size, block_e=block_e,
                            vmem_limit_bytes=vmem_limit_bytes)
    for (mo, do), o in zip(f_out.structure, outs):
        S[f'out{do}'] = o
    return {f'{d}': S[f'out{d}'] for d in f_out.degrees}


# ----------------------------------------------------------------------------
# Deterministic parameter init (synthetic weights; shapes from RadialFunc.__init__)
# ----------------------------------------------------------------------------
def init_params(key, f_in, f_out):
    params = {}
    idx = 0
    for mi, di in f_in.structure:
        for mo, do in f_out.structure:
            nf = 2 * min(di, do) + 1
            F = nf * mi * mo
            sub = jax.random.fold_in(key, idx); idx += 1
            ks = jax.random.split(sub, 6)
            params[f'({di},{do})'] = {
                'w1': jax.random.normal(ks[0], (1, MID), jnp.float32) * 0.5,
                'b1': jax.random.normal(ks[1], (1, MID), jnp.float32) * 0.1,
                'g1': jnp.ones((1, MID), jnp.float32),
                'be1': jnp.zeros((1, MID), jnp.float32),
                'w2': jax.random.normal(ks[2], (MID, MID), jnp.float32) * (MID ** -0.5),
                'b2': jax.random.normal(ks[3], (1, MID), jnp.float32) * 0.1,
                'g2': jnp.ones((1, MID), jnp.float32),
                'be2': jnp.zeros((1, MID), jnp.float32),
                'w3': jax.random.normal(ks[4], (MID, F), jnp.float32) * (MID ** -0.5),
                'b3': jax.random.normal(ks[5], (1, F), jnp.float32) * 0.1,
            }
    return params


# ----------------------------------------------------------------------------
# Pure-JAX reference (mirrors the PyTorch code literally) for validation
# ----------------------------------------------------------------------------
def _ln_ref(x, g, b):
    mu = jnp.mean(x, axis=-1, keepdims=True)
    var = jnp.mean(jnp.square(x - mu), axis=-1, keepdims=True)
    return (x - mu) / jnp.sqrt(var + LN_EPS) * g + b


def reference_forward(h, S, r, basis, f_in, f_out, params, ifs):
    hp = jax.lax.Precision.HIGHEST
    feat = jnp.concatenate([r], axis=-1)
    E = feat.shape[0]
    S = dict(S) if S is not None else {}
    for mi, di in f_in.structure:
        for mo, do in f_out.structure:
            p = params[f'({di},{do})']
            nf = 2 * min(di, do) + 1
            y = jnp.maximum(_ln_ref(jnp.matmul(feat, p['w1'], precision=hp) + p['b1'],
                                    p['g1'], p['be1']), 0.0)
            y = jnp.maximum(_ln_ref(jnp.matmul(y, p['w2'], precision=hp) + p['b2'],
                                    p['g2'], p['be2']), 0.0)
            y = jnp.matmul(y, p['w3'], precision=hp) + p['b3']
            R = y.reshape(E, mo, 1, mi, 1, nf)
            K = jnp.sum(R * basis[f'{di},{do}'], -1)
            K = K.reshape(E, ifs, -1)
            S[f'out{do}'] = jnp.matmul(h['d'], K, precision=hp)
    return {f'{d}': S[f'out{d}'] for d in f_out.degrees}


if __name__ == "__main__":
    key = jax.random.PRNGKey(0)
    E, A, IFS = 8, 16, 8                     # edges, feature rows, input_feature_size
    f_in = Fiber([(4, 0), (4, 1)])           # 4 channels of degree 0, 4 of degree 1
    f_out = Fiber([(8, 0), (8, 1)])          # 8 channels of degree 0, 8 of degree 1

    kp, kr, kh, kb = jax.random.split(key, 4)
    params = init_params(kp, f_in, f_out)
    r = jax.random.uniform(kr, (E, 1), jnp.float32, 0.1, 2.0)
    h = {'d': jax.random.normal(kh, (E, A, IFS), jnp.float32)}

    basis = {}
    bidx = 0
    for _, di in f_in.structure:
        for _, do in f_out.structure:
            kbb = jax.random.fold_in(kb, bidx); bidx += 1
            nf = 2 * min(di, do) + 1
            basis[f'{di},{do}'] = jax.random.normal(
                kbb, (E, 1, 2 * do + 1, 1, 2 * di + 1, nf), jnp.float32)

    out = sconv_so3_partial_forward(h, {}, r, basis, f_in, f_out, params, IFS)
    for v in out.values():
        jax.block_until_ready(v)

    ref = reference_forward(h, {}, r, basis, f_in, f_out, params, IFS)
    ok = all(bool(jnp.allclose(out[k], ref[k], atol=2e-4, rtol=2e-4)) for k in ref)
    assert ok, "Pallas output does not match reference"
    print("KERNEL_OK")
</pallas_src>

<mosaic_0001>
module attributes {stable_mosaic.version = 11 : i64} {
  func.func @kernel(%arg0: i32, %arg1: memref<8x1xf32, #tpu.memory_space<vmem>>, %arg2: memref<8x128xf32, #tpu.memory_space<vmem>>, %arg3: memref<8x30xf32, #tpu.memory_space<vmem>>, %arg4: memref<1x32xf32, #tpu.memory_space<vmem>>, %arg5: memref<1x32xf32, #tpu.memory_space<vmem>>, %arg6: memref<1x32xf32, #tpu.memory_space<vmem>>, %arg7: memref<1x32xf32, #tpu.memory_space<vmem>>, %arg8: memref<32x32xf32, #tpu.memory_space<vmem>>, %arg9: memref<1x32xf32, #tpu.memory_space<vmem>>, %arg10: memref<1x32xf32, #tpu.memory_space<vmem>>, %arg11: memref<1x32xf32, #tpu.memory_space<vmem>>, %arg12: memref<32x128xf32, #tpu.memory_space<vmem>>, %arg13: memref<1x128xf32, #tpu.memory_space<vmem>>, %arg14: memref<3x128xf32, #tpu.memory_space<vmem>>, %arg15: memref<16x192xf32, #tpu.memory_space<vmem>>, %arg16: memref<1x32xf32, #tpu.memory_space<vmem>>, %arg17: memref<1x32xf32, #tpu.memory_space<vmem>>, %arg18: memref<1x32xf32, #tpu.memory_space<vmem>>, %arg19: memref<1x32xf32, #tpu.memory_space<vmem>>, %arg20: memref<32x32xf32, #tpu.memory_space<vmem>>, %arg21: memref<1x32xf32, #tpu.memory_space<vmem>>, %arg22: memref<1x32xf32, #tpu.memory_space<vmem>>, %arg23: memref<1x32xf32, #tpu.memory_space<vmem>>, %arg24: memref<32x1152xf32, #tpu.memory_space<vmem>>, %arg25: memref<1x1152xf32, #tpu.memory_space<vmem>>, %arg26: memref<27x1152xf32, #tpu.memory_space<vmem>>, %arg27: memref<16x576xf32, #tpu.memory_space<vmem>>, %arg28: memref<8x192xf32, #tpu.memory_space<vmem>>, %arg29: memref<8x576xf32, #tpu.memory_space<vmem>>) attributes {dimension_semantics = [#tpu.dimension_semantics<parallel>], iteration_bounds = array<i64: 1>, scalar_prefetch = 0 : i64, scratch_operands = 0 : i64, tpu.core_type = #tpu.core_type<tc>, window_params = [{transform_indices = @transform_0, window_bounds = array<i64: 8, 1>}, {transform_indices = @transform_1, window_bounds = array<i64: 8, 128>}, {transform_indices = @transform_2, window_bounds = array<i64: 8, 30>}, {pipeline_mode = #tpu.pipeline_mode<synchronous>, transform_indices = @transform_3, window_bounds = array<i64: 1, 32>}, {pipeline_mode = #tpu.pipeline_mode<synchronous>, transform_indices = @transform_4, window_bounds = array<i64: 1, 32>}, {pipeline_mode = #tpu.pipeline_mode<synchronous>, transform_indices = @transform_5, window_bounds = array<i64: 1, 32>}, {pipeline_mode = #tpu.pipeline_mode<synchronous>, transform_indices = @transform_6, window_bounds = array<i64: 1, 32>}, {pipeline_mode = #tpu.pipeline_mode<synchronous>, transform_indices = @transform_7, window_bounds = array<i64: 32, 32>}, {pipeline_mode = #tpu.pipeline_mode<synchronous>, transform_indices = @transform_8, window_bounds = array<i64: 1, 32>}, {pipeline_mode = #tpu.pipeline_mode<synchronous>, transform_indices = @transform_9, window_bounds = array<i64: 1, 32>}, {pipeline_mode = #tpu.pipeline_mode<synchronous>, transform_indices = @transform_10, window_bounds = array<i64: 1, 32>}, {pipeline_mode = #tpu.pipeline_mode<synchronous>, transform_indices = @transform_11, window_bounds = array<i64: 32, 128>}, {pipeline_mode = #tpu.pipeline_mode<synchronous>, transform_indices = @transform_12, window_bounds = array<i64: 1, 128>}, {pipeline_mode = #tpu.pipeline_mode<synchronous>, transform_indices = @transform_13, window_bounds = array<i64: 3, 128>}, {pipeline_mode = #tpu.pipeline_mode<synchronous>, transform_indices = @transform_14, window_bounds = array<i64: 16, 192>}, {pipeline_mode = #tpu.pipeline_mode<synchronous>, transform_indices = @transform_15, window_bounds = array<i64: 1, 32>}, {pipeline_mode = #tpu.pipeline_mode<synchronous>, transform_indices = @transform_16, window_bounds = array<i64: 1, 32>}, {pipeline_mode = #tpu.pipeline_mode<synchronous>, transform_indices = @transform_17, window_bounds = array<i64: 1, 32>}, {pipeline_mode = #tpu.pipeline_mode<synchronous>, transform_indices = @transform_18, window_bounds = array<i64: 1, 32>}, {pipeline_mode = #tpu.pipeline_mode<synchronous>, transform_indices = @transform_19, window_bounds = array<i64: 32, 32>}, {pipeline_mode = #tpu.pipeline_mode<synchronous>, transform_indices = @transform_20, window_bounds = array<i64: 1, 32>}, {pipeline_mode = #tpu.pipeline_mode<synchronous>, transform_indices = @transform_21, window_bounds = array<i64: 1, 32>}, {pipeline_mode = #tpu.pipeline_mode<synchronous>, transform_indices = @transform_22, window_bounds = array<i64: 1, 32>}, {pipeline_mode = #tpu.pipeline_mode<synchronous>, transform_indices = @transform_23, window_bounds = array<i64: 32, 1152>}, {pipeline_mode = #tpu.pipeline_mode<synchronous>, transform_indices = @transform_24, window_bounds = array<i64: 1, 1152>}, {pipeline_mode = #tpu.pipeline_mode<synchronous>, transform_indices = @transform_25, window_bounds = array<i64: 27, 1152>}, {pipeline_mode = #tpu.pipeline_mode<synchronous>, transform_indices = @transform_26, window_bounds = array<i64: 16, 576>}, {transform_indices = @transform_27, window_bounds = array<i64: 8, 192>}, {transform_indices = @transform_28, window_bounds = array<i64: 8, 576>}]} {
    %c0 = arith.constant 0 : index
    %c0_0 = arith.constant 0 : index
    %0 = vector.load %arg1[%c0, %c0_0] : memref<8x1xf32, #tpu.memory_space<vmem>>, vector<8x1xf32>
    %c0_1 = arith.constant 0 : index
    %c0_2 = arith.constant 0 : index
    %1 = vector.load %arg2[%c0_1, %c0_2] : memref<8x128xf32, #tpu.memory_space<vmem>>, vector<8x128xf32>
    %c0_3 = arith.constant 0 : index
    %c0_4 = arith.constant 0 : index
    %2 = vector.load %arg3[%c0_3, %c0_4] : memref<8x30xf32, #tpu.memory_space<vmem>>, vector<8x30xf32>
    %c0_5 = arith.constant 0 : index
    %c0_6 = arith.constant 0 : index
    %3 = vector.load %arg4[%c0_5, %c0_6] : memref<1x32xf32, #tpu.memory_space<vmem>>, vector<1x32xf32>
    %4 = vector.broadcast %0 : vector<8x1xf32> to vector<8x32xf32>
    %5 = vector.broadcast %3 : vector<1x32xf32> to vector<8x32xf32>
    %6 = arith.mulf %4, %5 : vector<8x32xf32>
    %c0_7 = arith.constant 0 : index
    %c0_8 = arith.constant 0 : index
    %7 = vector.load %arg5[%c0_7, %c0_8] : memref<1x32xf32, #tpu.memory_space<vmem>>, vector<1x32xf32>
    %8 = vector.broadcast %7 : vector<1x32xf32> to vector<8x32xf32>
    %9 = arith.addf %6, %8 : vector<8x32xf32>
    %c0_9 = arith.constant 0 : index
    %c0_10 = arith.constant 0 : index
    %10 = vector.load %arg6[%c0_9, %c0_10] : memref<1x32xf32, #tpu.memory_space<vmem>>, vector<1x32xf32>
    %c0_11 = arith.constant 0 : index
    %c0_12 = arith.constant 0 : index
    %11 = vector.load %arg7[%c0_11, %c0_12] : memref<1x32xf32, #tpu.memory_space<vmem>>, vector<1x32xf32>
    %cst = arith.constant dense<0.000000e+00> : vector<8xf32>
    %12 = vector.multi_reduction <add>, %9, %cst [1] : vector<8x32xf32> to vector<8xf32>
    %13 = vector.shape_cast %12 : vector<8xf32> to vector<8x1xf32>
    %cst_13 = arith.constant 3.200000e+01 : f32
    %14 = vector.broadcast %cst_13 : f32 to vector<8x1xf32>
    %15 = arith.divf %13, %14 : vector<8x1xf32>
    %16 = vector.broadcast %15 : vector<8x1xf32> to vector<8x32xf32>
    %17 = arith.subf %9, %16 : vector<8x32xf32>
    %18 = arith.mulf %17, %17 : vector<8x32xf32>
    %cst_14 = arith.constant dense<0.000000e+00> : vector<8xf32>
    %19 = vector.multi_reduction <add>, %18, %cst_14 [1] : vector<8x32xf32> to vector<8xf32>
    %20 = vector.shape_cast %19 : vector<8xf32> to vector<8x1xf32>
    %cst_15 = arith.constant 3.200000e+01 : f32
    %21 = vector.broadcast %cst_15 : f32 to vector<8x1xf32>
    %22 = arith.divf %20, %21 : vector<8x1xf32>
    %23 = vector.broadcast %15 : vector<8x1xf32> to vector<8x32xf32>
    %24 = arith.subf %9, %23 : vector<8x32xf32>
    %cst_16 = arith.constant 9.99999974E-6 : f32
    %25 = vector.broadcast %cst_16 : f32 to vector<8x1xf32>
    %26 = arith.addf %22, %25 : vector<8x1xf32>
    %27 = math.rsqrt %26 : vector<8x1xf32>
    %28 = vector.broadcast %27 : vector<8x1xf32> to vector<8x32xf32>
    %29 = arith.mulf %24, %28 : vector<8x32xf32>
    %30 = vector.broadcast %10 : vector<1x32xf32> to vector<8x32xf32>
    %31 = arith.mulf %29, %30 : vector<8x32xf32>
    %32 = vector.broadcast %11 : vector<1x32xf32> to vector<8x32xf32>
    %33 = arith.addf %31, %32 : vector<8x32xf32>
    %cst_17 = arith.constant 0.000000e+00 : f32
    %34 = vector.broadcast %cst_17 : f32 to vector<8x32xf32>
    %35 = arith.maximumf %33, %34 : vector<8x32xf32>
    %c0_18 = arith.constant 0 : index
    %c0_19 = arith.constant 0 : index
    %36 = vector.load %arg8[%c0_18, %c0_19] : memref<32x32xf32, #tpu.memory_space<vmem>>, vector<32x32xf32>
    %cst_20 = arith.constant dense<0.000000e+00> : vector<8x32xf32>
    %37 = tpu.matmul %35, %36, %cst_20 {dimension_numbers = #tpu.dot_dimension_numbers<[1], [0], [0], [1], [0, 0, 1, 1], [], []>} : vector<8x32xf32>, vector<32x32xf32>, vector<8x32xf32> -> vector<8x32xf32>
    %c0_21 = arith.constant 0 : index
    %c0_22 = arith.constant 0 : index
    %38 = vector.load %arg9[%c0_21, %c0_22] : memref<1x32xf32, #tpu.memory_space<vmem>>, vector<1x32xf32>
    %39 = vector.broadcast %38 : vector<1x32xf32> to vector<8x32xf32>
    %40 = arith.addf %37, %39 : vector<8x32xf32>
    %c0_23 = arith.constant 0 : index
    %c0_24 = arith.constant 0 : index
    %41 = vector.load %arg10[%c0_23, %c0_24] : memref<1x32xf32, #tpu.memory_space<vmem>>, vector<1x32xf32>
    %c0_25 = arith.constant 0 : index
    %c0_26 = arith.constant 0 : index
    %42 = vector.load %arg11[%c0_25, %c0_26] : memref<1x32xf32, #tpu.memory_space<vmem>>, vector<1x32xf32>
    %cst_27 = arith.constant dense<0.000000e+00> : vector<8xf32>
    %43 = vector.multi_reduction <add>, %40, %cst_27 [1] : vector<8x32xf32> to vector<8xf32>
    %44 = vector.shape_cast %43 : vector<8xf32> to vector<8x1xf32>
    %cst_28 = arith.constant 3.200000e+01 : f32
    %45 = vector.broadcast %cst_28 : f32 to vector<8x1xf32>
    %46 = arith.divf %44, %45 : vector<8x1xf32>
    %47 = vector.broadcast %46 : vector<8x1xf32> to vector<8x32xf32>
    %48 = arith.subf %40, %47 : vector<8x32xf32>
    %49 = arith.mulf %48, %48 : vector<8x32xf32>
    %cst_29 = arith.constant dense<0.000000e+00> : vector<8xf32>
    %50 = vector.multi_reduction <add>, %49, %cst_29 [1] : vector<8x32xf32> to vector<8xf32>
    %51 = vector.shape_cast %50 : vector<8xf32> to vector<8x1xf32>
    %cst_30 = arith.constant 3.200000e+01 : f32
    %52 = vector.broadcast %cst_30 : f32 to vector<8x1xf32>
    %53 = arith.divf %51, %52 : vector<8x1xf32>
    %54 = vector.broadcast %46 : vector<8x1xf32> to vector<8x32xf32>
    %55 = arith.subf %40, %54 : vector<8x32xf32>
    %cst_31 = arith.constant 9.99999974E-6 : f32
    %56 = vector.broadcast %cst_31 : f32 to vector<8x1xf32>
    %57 = arith.addf %53, %56 : vector<8x1xf32>
    %58 = math.rsqrt %57 : vector<8x1xf32>
    %59 = vector.broadcast %58 : vector<8x1xf32> to vector<8x32xf32>
    %60 = arith.mulf %55, %59 : vector<8x32xf32>
    %61 = vector.broadcast %41 : vector<1x32xf32> to vector<8x32xf32>
    %62 = arith.mulf %60, %61 : vector<8x32xf32>
    %63 = vector.broadcast %42 : vector<1x32xf32> to vector<8x32xf32>
    %64 = arith.addf %62, %63 : vector<8x32xf32>
    %cst_32 = arith.constant 0.000000e+00 : f32
    %65 = vector.broadcast %cst_32 : f32 to vector<8x32xf32>
    %66 = arith.maximumf %64, %65 : vector<8x32xf32>
    %c0_33 = arith.constant 0 : index
    %c0_34 = arith.constant 0 : index
    %67 = vector.load %arg12[%c0_33, %c0_34] : memref<32x128xf32, #tpu.memory_space<vmem>>, vector<32x128xf32>
    %cst_35 = arith.constant dense<0.000000e+00> : vector<8x128xf32>
    %68 = tpu.matmul %66, %67, %cst_35 {dimension_numbers = #tpu.dot_dimension_numbers<[1], [0], [0], [1], [0, 0, 1, 1], [], []>} : vector<8x32xf32>, vector<32x128xf32>, vector<8x128xf32> -> vector<8x128xf32>
    %c0_36 = arith.constant 0 : index
    %c0_37 = arith.constant 0 : index
    %69 = vector.load %arg13[%c0_36, %c0_37] : memref<1x128xf32, #tpu.memory_space<vmem>>, vector<1x128xf32>
    %70 = vector.broadcast %69 : vector<1x128xf32> to vector<8x128xf32>
    %71 = arith.addf %68, %70 : vector<8x128xf32>
    %72 = vector.extract_strided_slice %2 {offsets = [0, 0], sizes = [8, 3], strides = [1, 1]} : vector<8x30xf32> to vector<8x3xf32>
    %c0_38 = arith.constant 0 : index
    %c0_39 = arith.constant 0 : index
    %73 = vector.load %arg14[%c0_38, %c0_39] : memref<3x128xf32, #tpu.memory_space<vmem>>, vector<3x128xf32>
    %cst_40 = arith.constant dense<0.000000e+00> : vector<8x128xf32>
    %74 = tpu.matmul %72, %73, %cst_40 {dimension_numbers = #tpu.dot_dimension_numbers<[1], [0], [0], [1], [0, 0, 1, 1], [], []>} : vector<8x3xf32>, vector<3x128xf32>, vector<8x128xf32> -> vector<8x128xf32>
    %75 = arith.mulf %71, %74 : vector<8x128xf32>
    %76 = vector.extract_strided_slice %75 {offsets = [0, 0], sizes = [8, 96], strides = [1, 1]} : vector<8x128xf32> to vector<8x96xf32>
    %77 = vector.extract_strided_slice %1 {offsets = [0, 0], sizes = [8, 16], strides = [1, 1]} : vector<8x128xf32> to vector<8x16xf32>
    %c0_41 = arith.constant 0 : index
    %c0_42 = arith.constant 0 : index
    %78 = vector.load %arg15[%c0_41, %c0_42] : memref<16x192xf32, #tpu.memory_space<vmem>>, vector<16x192xf32>
    %cst_43 = arith.constant dense<0.000000e+00> : vector<8x192xf32>
    %79 = tpu.matmul %77, %78, %cst_43 {dimension_numbers = #tpu.dot_dimension_numbers<[1], [0], [0], [1], [0, 0, 1, 1], [], []>} : vector<8x16xf32>, vector<16x192xf32>, vector<8x192xf32> -> vector<8x192xf32>
    %80 = vector.extract_strided_slice %76 {offsets = [0, 0], sizes = [8, 12], strides = [1, 1]} : vector<8x96xf32> to vector<8x12xf32>
    %81 = tpu.concatenate %80, %80, %80, %80, %80, %80, %80, %80, %80, %80, %80, %80, %80, %80, %80, %80 in 1 : vector<8x12xf32>, vector<8x12xf32>, vector<8x12xf32>, vector<8x12xf32>, vector<8x12xf32>, vector<8x12xf32>, vector<8x12xf32>, vector<8x12xf32>, vector<8x12xf32>, vector<8x12xf32>, vector<8x12xf32>, vector<8x12xf32>, vector<8x12xf32>, vector<8x12xf32>, vector<8x12xf32>, vector<8x12xf32> -> vector<8x192xf32>
    %82 = arith.mulf %79, %81 : vector<8x192xf32>
    %83 = vector.extract_strided_slice %1 {offsets = [0, 16], sizes = [8, 16], strides = [1, 1]} : vector<8x128xf32> to vector<8x16xf32>
    %c0_44 = arith.constant 0 : index
    %c0_45 = arith.constant 0 : index
    %84 = vector.load %arg15[%c0_44, %c0_45] : memref<16x192xf32, #tpu.memory_space<vmem>>, vector<16x192xf32>
    %cst_46 = arith.constant dense<0.000000e+00> : vector<8x192xf32>
    %85 = tpu.matmul %83, %84, %cst_46 {dimension_numbers = #tpu.dot_dimension_numbers<[1], [0], [0], [1], [0, 0, 1, 1], [], []>} : vector<8x16xf32>, vector<16x192xf32>, vector<8x192xf32> -> vector<8x192xf32>
    %86 = vector.extract_strided_slice %76 {offsets = [0, 12], sizes = [8, 12], strides = [1, 1]} : vector<8x96xf32> to vector<8x12xf32>
    %87 = tpu.concatenate %86, %86, %86, %86, %86, %86, %86, %86, %86, %86, %86, %86, %86, %86, %86, %86 in 1 : vector<8x12xf32>, vector<8x12xf32>, vector<8x12xf32>, vector<8x12xf32>, vector<8x12xf32>, vector<8x12xf32>, vector<8x12xf32>, vector<8x12xf32>, vector<8x12xf32>, vector<8x12xf32>, vector<8x12xf32>, vector<8x12xf32>, vector<8x12xf32>, vector<8x12xf32>, vector<8x12xf32>, vector<8x12xf32> -> vector<8x192xf32>
    %88 = arith.mulf %85, %87 : vector<8x192xf32>
    %89 = arith.addf %82, %88 : vector<8x192xf32>
    %90 = vector.extract_strided_slice %1 {offsets = [0, 32], sizes = [8, 16], strides = [1, 1]} : vector<8x128xf32> to vector<8x16xf32>
    %c0_47 = arith.constant 0 : index
    %c0_48 = arith.constant 0 : index
    %91 = vector.load %arg15[%c0_47, %c0_48] : memref<16x192xf32, #tpu.memory_space<vmem>>, vector<16x192xf32>
    %cst_49 = arith.constant dense<0.000000e+00> : vector<8x192xf32>
    %92 = tpu.matmul %90, %91, %cst_49 {dimension_numbers = #tpu.dot_dimension_numbers<[1], [0], [0], [1], [0, 0, 1, 1], [], []>} : vector<8x16xf32>, vector<16x192xf32>, vector<8x192xf32> -> vector<8x192xf32>
    %93 = vector.extract_strided_slice %76 {offsets = [0, 24], sizes = [8, 12], strides = [1, 1]} : vector<8x96xf32> to vector<8x12xf32>
    %94 = tpu.concatenate %93, %93, %93, %93, %93, %93, %93, %93, %93, %93, %93, %93, %93, %93, %93, %93 in 1 : vector<8x12xf32>, vector<8x12xf32>, vector<8x12xf32>, vector<8x12xf32>, vector<8x12xf32>, vector<8x12xf32>, vector<8x12xf32>, vector<8x12xf32>, vector<8x12xf32>, vector<8x12xf32>, vector<8x12xf32>, vector<8x12xf32>, vector<8x12xf32>, vector<8x12xf32>, vector<8x12xf32>, vector<8x12xf32> -> vector<8x192xf32>
    %95 = arith.mulf %92, %94 : vector<8x192xf32>
    %96 = arith.addf %89, %95 : vector<8x192xf32>
    %97 = vector.extract_strided_slice %1 {offsets = [0, 48], sizes = [8, 16], strides = [1, 1]} : vector<8x128xf32> to vector<8x16xf32>
    %c0_50 = arith.constant 0 : index
    %c0_51 = arith.constant 0 : index
    %98 = vector.load %arg15[%c0_50, %c0_51] : memref<16x192xf32, #tpu.memory_space<vmem>>, vector<16x192xf32>
    %cst_52 = arith.constant dense<0.000000e+00> : vector<8x192xf32>
    %99 = tpu.matmul %97, %98, %cst_52 {dimension_numbers = #tpu.dot_dimension_numbers<[1], [0], [0], [1], [0, 0, 1, 1], [], []>} : vector<8x16xf32>, vector<16x192xf32>, vector<8x192xf32> -> vector<8x192xf32>
    %100 = vector.extract_strided_slice %76 {offsets = [0, 36], sizes = [8, 12], strides = [1, 1]} : vector<8x96xf32> to vector<8x12xf32>
    %101 = tpu.concatenate %100, %100, %100, %100, %100, %100, %100, %100, %100, %100, %100, %100, %100, %100, %100, %100 in 1 : vector<8x12xf32>, vector<8x12xf32>, vector<8x12xf32>, vector<8x12xf32>, vector<8x12xf32>, vector<8x12xf32>, vector<8x12xf32>, vector<8x12xf32>, vector<8x12xf32>, vector<8x12xf32>, vector<8x12xf32>, vector<8x12xf32>, vector<8x12xf32>, vector<8x12xf32>, vector<8x12xf32>, vector<8x12xf32> -> vector<8x192xf32>
    %102 = arith.mulf %99, %101 : vector<8x192xf32>
    %103 = arith.addf %96, %102 : vector<8x192xf32>
    %104 = vector.extract_strided_slice %1 {offsets = [0, 64], sizes = [8, 16], strides = [1, 1]} : vector<8x128xf32> to vector<8x16xf32>
    %c0_53 = arith.constant 0 : index
    %c0_54 = arith.constant 0 : index
    %105 = vector.load %arg15[%c0_53, %c0_54] : memref<16x192xf32, #tpu.memory_space<vmem>>, vector<16x192xf32>
    %cst_55 = arith.constant dense<0.000000e+00> : vector<8x192xf32>
    %106 = tpu.matmul %104, %105, %cst_55 {dimension_numbers = #tpu.dot_dimension_numbers<[1], [0], [0], [1], [0, 0, 1, 1], [], []>} : vector<8x16xf32>, vector<16x192xf32>, vector<8x192xf32> -> vector<8x192xf32>
    %107 = vector.extract_strided_slice %76 {offsets = [0, 48], sizes = [8, 12], strides = [1, 1]} : vector<8x96xf32> to vector<8x12xf32>
    %108 = tpu.concatenate %107, %107, %107, %107, %107, %107, %107, %107, %107, %107, %107, %107, %107, %107, %107, %107 in 1 : vector<8x12xf32>, vector<8x12xf32>, vector<8x12xf32>, vector<8x12xf32>, vector<8x12xf32>, vector<8x12xf32>, vector<8x12xf32>, vector<8x12xf32>, vector<8x12xf32>, vector<8x12xf32>, vector<8x12xf32>, vector<8x12xf32>, vector<8x12xf32>, vector<8x12xf32>, vector<8x12xf32>, vector<8x12xf32> -> vector<8x192xf32>
    %109 = arith.mulf %106, %108 : vector<8x192xf32>
    %110 = arith.addf %103, %109 : vector<8x192xf32>
    %111 = vector.extract_strided_slice %1 {offsets = [0, 80], sizes = [8, 16], strides = [1, 1]} : vector<8x128xf32> to vector<8x16xf32>
    %c0_56 = arith.constant 0 : index
    %c0_57 = arith.constant 0 : index
    %112 = vector.load %arg15[%c0_56, %c0_57] : memref<16x192xf32, #tpu.memory_space<vmem>>, vector<16x192xf32>
    %cst_58 = arith.constant dense<0.000000e+00> : vector<8x192xf32>
    %113 = tpu.matmul %111, %112, %cst_58 {dimension_numbers = #tpu.dot_dimension_numbers<[1], [0], [0], [1], [0, 0, 1, 1], [], []>} : vector<8x16xf32>, vector<16x192xf32>, vector<8x192xf32> -> vector<8x192xf32>
    %114 = vector.extract_strided_slice %76 {offsets = [0, 60], sizes = [8, 12], strides = [1, 1]} : vector<8x96xf32> to vector<8x12xf32>
    %115 = tpu.concatenate %114, %114, %114, %114, %114, %114, %114, %114, %114, %114, %114, %114, %114, %114, %114, %114 in 1 : vector<8x12xf32>, vector<8x12xf32>, vector<8x12xf32>, vector<8x12xf32>, vector<8x12xf32>, vector<8x12xf32>, vector<8x12xf32>, vector<8x12xf32>, vector<8x12xf32>, vector<8x12xf32>, vector<8x12xf32>, vector<8x12xf32>, vector<8x12xf32>, vector<8x12xf32>, vector<8x12xf32>, vector<8x12xf32> -> vector<8x192xf32>
    %116 = arith.mulf %113, %115 : vector<8x192xf32>
    %117 = arith.addf %110, %116 : vector<8x192xf32>
    %118 = vector.extract_strided_slice %1 {offsets = [0, 96], sizes = [8, 16], strides = [1, 1]} : vector<8x128xf32> to vector<8x16xf32>
    %c0_59 = arith.constant 0 : index
    %c0_60 = arith.constant 0 : index
    %119 = vector.load %arg15[%c0_59, %c0_60] : memref<16x192xf32, #tpu.memory_space<vmem>>, vector<16x192xf32>
    %cst_61 = arith.constant dense<0.000000e+00> : vector<8x192xf32>
    %120 = tpu.matmul %118, %119, %cst_61 {dimension_numbers = #tpu.dot_dimension_numbers<[1], [0], [0], [1], [0, 0, 1, 1], [], []>} : vector<8x16xf32>, vector<16x192xf32>, vector<8x192xf32> -> vector<8x192xf32>
    %121 = vector.extract_strided_slice %76 {offsets = [0, 72], sizes = [8, 12], strides = [1, 1]} : vector<8x96xf32> to vector<8x12xf32>
    %122 = tpu.concatenate %121, %121, %121, %121, %121, %121, %121, %121, %121, %121, %121, %121, %121, %121, %121, %121 in 1 : vector<8x12xf32>, vector<8x12xf32>, vector<8x12xf32>, vector<8x12xf32>, vector<8x12xf32>, vector<8x12xf32>, vector<8x12xf32>, vector<8x12xf32>, vector<8x12xf32>, vector<8x12xf32>, vector<8x12xf32>, vector<8x12xf32>, vector<8x12xf32>, vector<8x12xf32>, vector<8x12xf32>, vector<8x12xf32> -> vector<8x192xf32>
    %123 = arith.mulf %120, %122 : vector<8x192xf32>
    %124 = arith.addf %117, %123 : vector<8x192xf32>
    %125 = vector.extract_strided_slice %1 {offsets = [0, 112], sizes = [8, 16], strides = [1, 1]} : vector<8x128xf32> to vector<8x16xf32>
    %c0_62 = arith.constant 0 : index
    %c0_63 = arith.constant 0 : index
    %126 = vector.load %arg15[%c0_62, %c0_63] : memref<16x192xf32, #tpu.memory_space<vmem>>, vector<16x192xf32>
    %cst_64 = arith.constant dense<0.000000e+00> : vector<8x192xf32>
    %127 = tpu.matmul %125, %126, %cst_64 {dimension_numbers = #tpu.dot_dimension_numbers<[1], [0], [0], [1], [0, 0, 1, 1], [], []>} : vector<8x16xf32>, vector<16x192xf32>, vector<8x192xf32> -> vector<8x192xf32>
    %128 = vector.extract_strided_slice %76 {offsets = [0, 84], sizes = [8, 12], strides = [1, 1]} : vector<8x96xf32> to vector<8x12xf32>
    %129 = tpu.concatenate %128, %128, %128, %128, %128, %128, %128, %128, %128, %128, %128, %128, %128, %128, %128, %128 in 1 : vector<8x12xf32>, vector<8x12xf32>, vector<8x12xf32>, vector<8x12xf32>, vector<8x12xf32>, vector<8x12xf32>, vector<8x12xf32>, vector<8x12xf32>, vector<8x12xf32>, vector<8x12xf32>, vector<8x12xf32>, vector<8x12xf32>, vector<8x12xf32>, vector<8x12xf32>, vector<8x12xf32>, vector<8x12xf32> -> vector<8x192xf32>
    %130 = arith.mulf %127, %129 : vector<8x192xf32>
    %131 = arith.addf %124, %130 : vector<8x192xf32>
    %c0_65 = arith.constant 0 : index
    %c0_66 = arith.constant 0 : index
    %132 = vector.load %arg28[%c0_65, %c0_66] : memref<8x192xf32, #tpu.memory_space<vmem>>, vector<8x192xf32>
    tpu.vector_store %arg28[%c0_65, %c0_66], %131 {strides = array<i32>} : memref<8x192xf32, #tpu.memory_space<vmem>>, vector<8x192xf32>,
    %c0_67 = arith.constant 0 : index
    %c0_68 = arith.constant 0 : index
    %133 = vector.load %arg16[%c0_67, %c0_68] : memref<1x32xf32, #tpu.memory_space<vmem>>, vector<1x32xf32>
    %134 = vector.broadcast %0 : vector<8x1xf32> to vector<8x32xf32>
    %135 = vector.broadcast %133 : vector<1x32xf32> to vector<8x32xf32>
    %136 = arith.mulf %134, %135 : vector<8x32xf32>
    %c0_69 = arith.constant 0 : index
    %c0_70 = arith.constant 0 : index
    %137 = vector.load %arg17[%c0_69, %c0_70] : memref<1x32xf32, #tpu.memory_space<vmem>>, vector<1x32xf32>
    %138 = vector.broadcast %137 : vector<1x32xf32> to vector<8x32xf32>
    %139 = arith.addf %136, %138 : vector<8x32xf32>
    %c0_71 = arith.constant 0 : index
    %c0_72 = arith.constant 0 : index
    %140 = vector.load %arg18[%c0_71, %c0_72] : memref<1x32xf32, #tpu.memory_space<vmem>>, vector<1x32xf32>
    %c0_73 = arith.constant 0 : index
    %c0_74 = arith.constant 0 : index
    %141 = vector.load %arg19[%c0_73, %c0_74] : memref<1x32xf32, #tpu.memory_space<vmem>>, vector<1x32xf32>
    %cst_75 = arith.constant dense<0.000000e+00> : vector<8xf32>
    %142 = vector.multi_reduction <add>, %139, %cst_75 [1] : vector<8x32xf32> to vector<8xf32>
    %143 = vector.shape_cast %142 : vector<8xf32> to vector<8x1xf32>
    %cst_76 = arith.constant 3.200000e+01 : f32
    %144 = vector.broadcast %cst_76 : f32 to vector<8x1xf32>
    %145 = arith.divf %143, %144 : vector<8x1xf32>
    %146 = vector.broadcast %145 : vector<8x1xf32> to vector<8x32xf32>
    %147 = arith.subf %139, %146 : vector<8x32xf32>
    %148 = arith.mulf %147, %147 : vector<8x32xf32>
    %cst_77 = arith.constant dense<0.000000e+00> : vector<8xf32>
    %149 = vector.multi_reduction <add>, %148, %cst_77 [1] : vector<8x32xf32> to vector<8xf32>
    %150 = vector.shape_cast %149 : vector<8xf32> to vector<8x1xf32>
    %cst_78 = arith.constant 3.200000e+01 : f32
    %151 = vector.broadcast %cst_78 : f32 to vector<8x1xf32>
    %152 = arith.divf %150, %151 : vector<8x1xf32>
    %153 = vector.broadcast %145 : vector<8x1xf32> to vector<8x32xf32>
    %154 = arith.subf %139, %153 : vector<8x32xf32>
    %cst_79 = arith.constant 9.99999974E-6 : f32
    %155 = vector.broadcast %cst_79 : f32 to vector<8x1xf32>
    %156 = arith.addf %152, %155 : vector<8x1xf32>
    %157 = math.rsqrt %156 : vector<8x1xf32>
    %158 = vector.broadcast %157 : vector<8x1xf32> to vector<8x32xf32>
    %159 = arith.mulf %154, %158 : vector<8x32xf32>
    %160 = vector.broadcast %140 : vector<1x32xf32> to vector<8x32xf32>
    %161 = arith.mulf %159, %160 : vector<8x32xf32>
    %162 = vector.broadcast %141 : vector<1x32xf32> to vector<8x32xf32>
    %163 = arith.addf %161, %162 : vector<8x32xf32>
    %cst_80 = arith.constant 0.000000e+00 : f32
    %164 = vector.broadcast %cst_80 : f32 to vector<8x32xf32>
    %165 = arith.maximumf %163, %164 : vector<8x32xf32>
    %c0_81 = arith.constant 0 : index
    %c0_82 = arith.constant 0 : index
    %166 = vector.load %arg20[%c0_81, %c0_82] : memref<32x32xf32, #tpu.memory_space<vmem>>, vector<32x32xf32>
    %cst_83 = arith.constant dense<0.000000e+00> : vector<8x32xf32>
    %167 = tpu.matmul %165, %166, %cst_83 {dimension_numbers = #tpu.dot_dimension_numbers<[1], [0], [0], [1], [0, 0, 1, 1], [], []>} : vector<8x32xf32>, vector<32x32xf32>, vector<8x32xf32> -> vector<8x32xf32>
    %c0_84 = arith.constant 0 : index
    %c0_85 = arith.constant 0 : index
    %168 = vector.load %arg21[%c0_84, %c0_85] : memref<1x32xf32, #tpu.memory_space<vmem>>, vector<1x32xf32>
    %169 = vector.broadcast %168 : vector<1x32xf32> to vector<8x32xf32>
    %170 = arith.addf %167, %169 : vector<8x32xf32>
    %c0_86 = arith.constant 0 : index
    %c0_87 = arith.constant 0 : index
    %171 = vector.load %arg22[%c0_86, %c0_87] : memref<1x32xf32, #tpu.memory_space<vmem>>, vector<1x32xf32>
    %c0_88 = arith.constant 0 : index
    %c0_89 = arith.constant 0 : index
    %172 = vector.load %arg23[%c0_88, %c0_89] : memref<1x32xf32, #tpu.memory_space<vmem>>, vector<1x32xf32>
    %cst_90 = arith.constant dense<0.000000e+00> : vector<8xf32>
    %173 = vector.multi_reduction <add>, %170, %cst_90 [1] : vector<8x32xf32> to vector<8xf32>
    %174 = vector.shape_cast %173 : vector<8xf32> to vector<8x1xf32>
    %cst_91 = arith.constant 3.200000e+01 : f32
    %175 = vector.broadcast %cst_91 : f32 to vector<8x1xf32>
    %176 = arith.divf %174, %175 : vector<8x1xf32>
    %177 = vector.broadcast %176 : vector<8x1xf32> to vector<8x32xf32>
    %178 = arith.subf %170, %177 : vector<8x32xf32>
    %179 = arith.mulf %178, %178 : vector<8x32xf32>
    %cst_92 = arith.constant dense<0.000000e+00> : vector<8xf32>
    %180 = vector.multi_reduction <add>, %179, %cst_92 [1] : vector<8x32xf32> to vector<8xf32>
    %181 = vector.shape_cast %180 : vector<8xf32> to vector<8x1xf32>
    %cst_93 = arith.constant 3.200000e+01 : f32
    %182 = vector.broadcast %cst_93 : f32 to vector<8x1xf32>
    %183 = arith.divf %181, %182 : vector<8x1xf32>
    %184 = vector.broadcast %176 : vector<8x1xf32> to vector<8x32xf32>
    %185 = arith.subf %170, %184 : vector<8x32xf32>
    %cst_94 = arith.constant 9.99999974E-6 : f32
    %186 = vector.broadcast %cst_94 : f32 to vector<8x1xf32>
    %187 = arith.addf %183, %186 : vector<8x1xf32>
    %188 = math.rsqrt %187 : vector<8x1xf32>
    %189 = vector.broadcast %188 : vector<8x1xf32> to vector<8x32xf32>
    %190 = arith.mulf %185, %189 : vector<8x32xf32>
    %191 = vector.broadcast %171 : vector<1x32xf32> to vector<8x32xf32>
    %192 = arith.mulf %190, %191 : vector<8x32xf32>
    %193 = vector.broadcast %172 : vector<1x32xf32> to vector<8x32xf32>
    %194 = arith.addf %192, %193 : vector<8x32xf32>
    %cst_95 = arith.constant 0.000000e+00 : f32
    %195 = vector.broadcast %cst_95 : f32 to vector<8x32xf32>
    %196 = arith.maximumf %194, %195 : vector<8x32xf32>
    %c0_96 = arith.constant 0 : index
    %c0_97 = arith.constant 0 : index
    %197 = vector.load %arg24[%c0_96, %c0_97] : memref<32x1152xf32, #tpu.memory_space<vmem>>, vector<32x1152xf32>
    %cst_98 = arith.constant dense<0.000000e+00> : vector<8x1152xf32>
    %198 = tpu.matmul %196, %197, %cst_98 {dimension_numbers = #tpu.dot_dimension_numbers<[1], [0], [0], [1], [0, 0, 1, 1], [], []>} : vector<8x32xf32>, vector<32x1152xf32>, vector<8x1152xf32> -> vector<8x1152xf32>
    %c0_99 = arith.constant 0 : index
    %c0_100 = arith.constant 0 : index
    %199 = vector.load %arg25[%c0_99, %c0_100] : memref<1x1152xf32, #tpu.memory_space<vmem>>, vector<1x1152xf32>
    %200 = vector.broadcast %199 : vector<1x1152xf32> to vector<8x1152xf32>
    %201 = arith.addf %198, %200 : vector<8x1152xf32>
    %202 = vector.extract_strided_slice %2 {offsets = [0, 3], sizes = [8, 27], strides = [1, 1]} : vector<8x30xf32> to vector<8x27xf32>
    %c0_101 = arith.constant 0 : index
    %c0_102 = arith.constant 0 : index
    %203 = vector.load %arg26[%c0_101, %c0_102] : memref<27x1152xf32, #tpu.memory_space<vmem>>, vector<27x1152xf32>
    %cst_103 = arith.constant dense<0.000000e+00> : vector<8x1152xf32>
    %204 = tpu.matmul %202, %203, %cst_103 {dimension_numbers = #tpu.dot_dimension_numbers<[1], [0], [0], [1], [0, 0, 1, 1], [], []>} : vector<8x27xf32>, vector<27x1152xf32>, vector<8x1152xf32> -> vector<8x1152xf32>
    %205 = arith.mulf %201, %204 : vector<8x1152xf32>
    %206 = vector.extract_strided_slice %205 {offsets = [0, 0], sizes = [8, 288], strides = [1, 1]} : vector<8x1152xf32> to vector<8x288xf32>
    %207 = vector.extract_strided_slice %205 {offsets = [0, 384], sizes = [8, 288], strides = [1, 1]} : vector<8x1152xf32> to vector<8x288xf32>
    %208 = arith.addf %206, %207 : vector<8x288xf32>
    %209 = vector.extract_strided_slice %205 {offsets = [0, 768], sizes = [8, 288], strides = [1, 1]} : vector<8x1152xf32> to vector<8x288xf32>
    %210 = arith.addf %208, %209 : vector<8x288xf32>
    %211 = vector.extract_strided_slice %1 {offsets = [0, 0], sizes = [8, 16], strides = [1, 1]} : vector<8x128xf32> to vector<8x16xf32>
    %c0_104 = arith.constant 0 : index
    %c0_105 = arith.constant 0 : index
    %212 = vector.load %arg27[%c0_104, %c0_105] : memref<16x576xf32, #tpu.memory_space<vmem>>, vector<16x576xf32>
    %cst_106 = arith.constant dense<0.000000e+00> : vector<8x576xf32>
    %213 = tpu.matmul %211, %212, %cst_106 {dimension_numbers = #tpu.dot_dimension_numbers<[1], [0], [0], [1], [0, 0, 1, 1], [], []>} : vector<8x16xf32>, vector<16x576xf32>, vector<8x576xf32> -> vector<8x576xf32>
    %214 = vector.extract_strided_slice %210 {offsets = [0, 0], sizes = [8, 36], strides = [1, 1]} : vector<8x288xf32> to vector<8x36xf32>
    %215 = tpu.concatenate %214, %214, %214, %214, %214, %214, %214, %214, %214, %214, %214, %214, %214, %214, %214, %214 in 1 : vector<8x36xf32>, vector<8x36xf32>, vector<8x36xf32>, vector<8x36xf32>, vector<8x36xf32>, vector<8x36xf32>, vector<8x36xf32>, vector<8x36xf32>, vector<8x36xf32>, vector<8x36xf32>, vector<8x36xf32>, vector<8x36xf32>, vector<8x36xf32>, vector<8x36xf32>, vector<8x36xf32>, vector<8x36xf32> -> vector<8x576xf32>
    %216 = arith.mulf %213, %215 : vector<8x576xf32>
    %217 = vector.extract_strided_slice %1 {offsets = [0, 16], sizes = [8, 16], strides = [1, 1]} : vector<8x128xf32> to vector<8x16xf32>
    %c0_107 = arith.constant 0 : index
    %c0_108 = arith.constant 0 : index
    %218 = vector.load %arg27[%c0_107, %c0_108] : memref<16x576xf32, #tpu.memory_space<vmem>>, vector<16x576xf32>
    %cst_109 = arith.constant dense<0.000000e+00> : vector<8x576xf32>
    %219 = tpu.matmul %217, %218, %cst_109 {dimension_numbers = #tpu.dot_dimension_numbers<[1], [0], [0], [1], [0, 0, 1, 1], [], []>} : vector<8x16xf32>, vector<16x576xf32>, vector<8x576xf32> -> vector<8x576xf32>
    %220 = vector.extract_strided_slice %210 {offsets = [0, 36], sizes = [8, 36], strides = [1, 1]} : vector<8x288xf32> to vector<8x36xf32>
    %221 = tpu.concatenate %220, %220, %220, %220, %220, %220, %220, %220, %220, %220, %220, %220, %220, %220, %220, %220 in 1 : vector<8x36xf32>, vector<8x36xf32>, vector<8x36xf32>, vector<8x36xf32>, vector<8x36xf32>, vector<8x36xf32>, vector<8x36xf32>, vector<8x36xf32>, vector<8x36xf32>, vector<8x36xf32>, vector<8x36xf32>, vector<8x36xf32>, vector<8x36xf32>, vector<8x36xf32>, vector<8x36xf32>, vector<8x36xf32> -> vector<8x576xf32>
    %222 = arith.mulf %219, %221 : vector<8x576xf32>
    %223 = arith.addf %216, %222 : vector<8x576xf32>
    %224 = vector.extract_strided_slice %1 {offsets = [0, 32], sizes = [8, 16], strides = [1, 1]} : vector<8x128xf32> to vector<8x16xf32>
    %c0_110 = arith.constant 0 : index
    %c0_111 = arith.constant 0 : index
    %225 = vector.load %arg27[%c0_110, %c0_111] : memref<16x576xf32, #tpu.memory_space<vmem>>, vector<16x576xf32>
    %cst_112 = arith.constant dense<0.000000e+00> : vector<8x576xf32>
    %226 = tpu.matmul %224, %225, %cst_112 {dimension_numbers = #tpu.dot_dimension_numbers<[1], [0], [0], [1], [0, 0, 1, 1], [], []>} : vector<8x16xf32>, vector<16x576xf32>, vector<8x576xf32> -> vector<8x576xf32>
    %227 = vector.extract_strided_slice %210 {offsets = [0, 72], sizes = [8, 36], strides = [1, 1]} : vector<8x288xf32> to vector<8x36xf32>
    %228 = tpu.concatenate %227, %227, %227, %227, %227, %227, %227, %227, %227, %227, %227, %227, %227, %227, %227, %227 in 1 : vector<8x36xf32>, vector<8x36xf32>, vector<8x36xf32>, vector<8x36xf32>, vector<8x36xf32>, vector<8x36xf32>, vector<8x36xf32>, vector<8x36xf32>, vector<8x36xf32>, vector<8x36xf32>, vector<8x36xf32>, vector<8x36xf32>, vector<8x36xf32>, vector<8x36xf32>, vector<8x36xf32>, vector<8x36xf32> -> vector<8x576xf32>
    %229 = arith.mulf %226, %228 : vector<8x576xf32>
    %230 = arith.addf %223, %229 : vector<8x576xf32>
    %231 = vector.extract_strided_slice %1 {offsets = [0, 48], sizes = [8, 16], strides = [1, 1]} : vector<8x128xf32> to vector<8x16xf32>
    %c0_113 = arith.constant 0 : index
    %c0_114 = arith.constant 0 : index
    %232 = vector.load %arg27[%c0_113, %c0_114] : memref<16x576xf32, #tpu.memory_space<vmem>>, vector<16x576xf32>
    %cst_115 = arith.constant dense<0.000000e+00> : vector<8x576xf32>
    %233 = tpu.matmul %231, %232, %cst_115 {dimension_numbers = #tpu.dot_dimension_numbers<[1], [0], [0], [1], [0, 0, 1, 1], [], []>} : vector<8x16xf32>, vector<16x576xf32>, vector<8x576xf32> -> vector<8x576xf32>
    %234 = vector.extract_strided_slice %210 {offsets = [0, 108], sizes = [8, 36], strides = [1, 1]} : vector<8x288xf32> to vector<8x36xf32>
    %235 = tpu.concatenate %234, %234, %234, %234, %234, %234, %234, %234, %234, %234, %234, %234, %234, %234, %234, %234 in 1 : vector<8x36xf32>, vector<8x36xf32>, vector<8x36xf32>, vector<8x36xf32>, vector<8x36xf32>, vector<8x36xf32>, vector<8x36xf32>, vector<8x36xf32>, vector<8x36xf32>, vector<8x36xf32>, vector<8x36xf32>, vector<8x36xf32>, vector<8x36xf32>, vector<8x36xf32>, vector<8x36xf32>, vector<8x36xf32> -> vector<8x576xf32>
    %236 = arith.mulf %233, %235 : vector<8x576xf32>
    %237 = arith.addf %230, %236 : vector<8x576xf32>
    %238 = vector.extract_strided_slice %1 {offsets = [0, 64], sizes = [8, 16], strides = [1, 1]} : vector<8x128xf32> to vector<8x16xf32>
    %c0_116 = arith.constant 0 : index
    %c0_117 = arith.constant 0 : index
    %239 = vector.load %arg27[%c0_116, %c0_117] : memref<16x576xf32, #tpu.memory_space<vmem>>, vector<16x576xf32>
    %cst_118 = arith.constant dense<0.000000e+00> : vector<8x576xf32>
    %240 = tpu.matmul %238, %239, %cst_118 {dimension_numbers = #tpu.dot_dimension_numbers<[1], [0], [0], [1], [0, 0, 1, 1], [], []>} : vector<8x16xf32>, vector<16x576xf32>, vector<8x576xf32> -> vector<8x576xf32>
    %241 = vector.extract_strided_slice %210 {offsets = [0, 144], sizes = [8, 36], strides = [1, 1]} : vector<8x288xf32> to vector<8x36xf32>
    %242 = tpu.concatenate %241, %241, %241, %241, %241, %241, %241, %241, %241, %241, %241, %241, %241, %241, %241, %241 in 1 : vector<8x36xf32>, vector<8x36xf32>, vector<8x36xf32>, vector<8x36xf32>, vector<8x36xf32>, vector<8x36xf32>, vector<8x36xf32>, vector<8x36xf32>, vector<8x36xf32>, vector<8x36xf32>, vector<8x36xf32>, vector<8x36xf32>, vector<8x36xf32>, vector<8x36xf32>, vector<8x36xf32>, vector<8x36xf32> -> vector<8x576xf32>
    %243 = arith.mulf %240, %242 : vector<8x576xf32>
    %244 = arith.addf %237, %243 : vector<8x576xf32>
    %245 = vector.extract_strided_slice %1 {offsets = [0, 80], sizes = [8, 16], strides = [1, 1]} : vector<8x128xf32> to vector<8x16xf32>
    %c0_119 = arith.constant 0 : index
    %c0_120 = arith.constant 0 : index
    %246 = vector.load %arg27[%c0_119, %c0_120] : memref<16x576xf32, #tpu.memory_space<vmem>>, vector<16x576xf32>
    %cst_121 = arith.constant dense<0.000000e+00> : vector<8x576xf32>
    %247 = tpu.matmul %245, %246, %cst_121 {dimension_numbers = #tpu.dot_dimension_numbers<[1], [0], [0], [1], [0, 0, 1, 1], [], []>} : vector<8x16xf32>, vector<16x576xf32>, vector<8x576xf32> -> vector<8x576xf32>
    %248 = vector.extract_strided_slice %210 {offsets = [0, 180], sizes = [8, 36], strides = [1, 1]} : vector<8x288xf32> to vector<8x36xf32>
    %249 = tpu.concatenate %248, %248, %248, %248, %248, %248, %248, %248, %248, %248, %248, %248, %248, %248, %248, %248 in 1 : vector<8x36xf32>, vector<8x36xf32>, vector<8x36xf32>, vector<8x36xf32>, vector<8x36xf32>, vector<8x36xf32>, vector<8x36xf32>, vector<8x36xf32>, vector<8x36xf32>, vector<8x36xf32>, vector<8x36xf32>, vector<8x36xf32>, vector<8x36xf32>, vector<8x36xf32>, vector<8x36xf32>, vector<8x36xf32> -> vector<8x576xf32>
    %250 = arith.mulf %247, %249 : vector<8x576xf32>
    %251 = arith.addf %244, %250 : vector<8x576xf32>
    %252 = vector.extract_strided_slice %1 {offsets = [0, 96], sizes = [8, 16], strides = [1, 1]} : vector<8x128xf32> to vector<8x16xf32>
    %c0_122 = arith.constant 0 : index
    %c0_123 = arith.constant 0 : index
    %253 = vector.load %arg27[%c0_122, %c0_123] : memref<16x576xf32, #tpu.memory_space<vmem>>, vector<16x576xf32>
    %cst_124 = arith.constant dense<0.000000e+00> : vector<8x576xf32>
    %254 = tpu.matmul %252, %253, %cst_124 {dimension_numbers = #tpu.dot_dimension_numbers<[1], [0], [0], [1], [0, 0, 1, 1], [], []>} : vector<8x16xf32>, vector<16x576xf32>, vector<8x576xf32> -> vector<8x576xf32>
    %255 = vector.extract_strided_slice %210 {offsets = [0, 216], sizes = [8, 36], strides = [1, 1]} : vector<8x288xf32> to vector<8x36xf32>
    %256 = tpu.concatenate %255, %255, %255, %255, %255, %255, %255, %255, %255, %255, %255, %255, %255, %255, %255, %255 in 1 : vector<8x36xf32>, vector<8x36xf32>, vector<8x36xf32>, vector<8x36xf32>, vector<8x36xf32>, vector<8x36xf32>, vector<8x36xf32>, vector<8x36xf32>, vector<8x36xf32>, vector<8x36xf32>, vector<8x36xf32>, vector<8x36xf32>, vector<8x36xf32>, vector<8x36xf32>, vector<8x36xf32>, vector<8x36xf32> -> vector<8x576xf32>
    %257 = arith.mulf %254, %256 : vector<8x576xf32>
    %258 = arith.addf %251, %257 : vector<8x576xf32>
    %259 = vector.extract_strided_slice %1 {offsets = [0, 112], sizes = [8, 16], strides = [1, 1]} : vector<8x128xf32> to vector<8x16xf32>
    %c0_125 = arith.constant 0 : index
    %c0_126 = arith.constant 0 : index
    %260 = vector.load %arg27[%c0_125, %c0_126] : memref<16x576xf32, #tpu.memory_space<vmem>>, vector<16x576xf32>
    %cst_127 = arith.constant dense<0.000000e+00> : vector<8x576xf32>
    %261 = tpu.matmul %259, %260, %cst_127 {dimension_numbers = #tpu.dot_dimension_numbers<[1], [0], [0], [1], [0, 0, 1, 1], [], []>} : vector<8x16xf32>, vector<16x576xf32>, vector<8x576xf32> -> vector<8x576xf32>
    %262 = vector.extract_strided_slice %210 {offsets = [0, 252], sizes = [8, 36], strides = [1, 1]} : vector<8x288xf32> to vector<8x36xf32>
    %263 = tpu.concatenate %262, %262, %262, %262, %262, %262, %262, %262, %262, %262, %262, %262, %262, %262, %262, %262 in 1 : vector<8x36xf32>, vector<8x36xf32>, vector<8x36xf32>, vector<8x36xf32>, vector<8x36xf32>, vector<8x36xf32>, vector<8x36xf32>, vector<8x36xf32>, vector<8x36xf32>, vector<8x36xf32>, vector<8x36xf32>, vector<8x36xf32>, vector<8x36xf32>, vector<8x36xf32>, vector<8x36xf32>, vector<8x36xf32> -> vector<8x576xf32>
    %264 = arith.mulf %261, %263 : vector<8x576xf32>
    %265 = arith.addf %258, %264 : vector<8x576xf32>
    %c0_128 = arith.constant 0 : index
    %c0_129 = arith.constant 0 : index
    %266 = vector.load %arg29[%c0_128, %c0_129] : memref<8x576xf32, #tpu.memory_space<vmem>>, vector<8x576xf32>
    tpu.vector_store %arg29[%c0_128, %c0_129], %265 {strides = array<i32>} : memref<8x576xf32, #tpu.memory_space<vmem>>, vector<8x576xf32>,
    return
  }
  func.func @transform_0(%arg0: i32) -> (i32, i32) {
    %c0_i32 = arith.constant 0 : i32
    %c0_i32_0 = arith.constant 0 : i32
    return %arg0, %c0_i32 : i32, i32
  }
  func.func @transform_1(%arg0: i32) -> (i32, i32) {
    %c0_i32 = arith.constant 0 : i32
    %c0_i32_0 = arith.constant 0 : i32
    return %arg0, %c0_i32 : i32, i32
  }
  func.func @transform_2(%arg0: i32) -> (i32, i32) {
    %c0_i32 = arith.constant 0 : i32
    %c0_i32_0 = arith.constant 0 : i32
    return %arg0, %c0_i32 : i32, i32
  }
  func.func @transform_3(%arg0: i32) -> (i32, i32) {
    %c0_i32 = arith.constant 0 : i32
    %c0_i32_0 = arith.constant 0 : i32
    %c0_i32_1 = arith.constant 0 : i32
    return %c0_i32, %c0_i32_0 : i32, i32
  }
  func.func @transform_4(%arg0: i32) -> (i32, i32) {
    %c0_i32 = arith.constant 0 : i32
    %c0_i32_0 = arith.constant 0 : i32
    %c0_i32_1 = arith.constant 0 : i32
    return %c0_i32, %c0_i32_0 : i32, i32
  }
  func.func @transform_5(%arg0: i32) -> (i32, i32) {
    %c0_i32 = arith.constant 0 : i32
    %c0_i32_0 = arith.constant 0 : i32
    %c0_i32_1 = arith.constant 0 : i32
    return %c0_i32, %c0_i32_0 : i32, i32
  }
  func.func @transform_6(%arg0: i32) -> (i32, i32) {
    %c0_i32 = arith.constant 0 : i32
    %c0_i32_0 = arith.constant 0 : i32
    %c0_i32_1 = arith.constant 0 : i32
    return %c0_i32, %c0_i32_0 : i32, i32
  }
  func.func @transform_7(%arg0: i32) -> (i32, i32) {
    %c0_i32 = arith.constant 0 : i32
    %c0_i32_0 = arith.constant 0 : i32
    %c0_i32_1 = arith.constant 0 : i32
    return %c0_i32, %c0_i32_0 : i32, i32
  }
  func.func @transform_8(%arg0: i32) -> (i32, i32) {
    %c0_i32 = arith.constant 0 : i32
    %c0_i32_0 = arith.constant 0 : i32
    %c0_i32_1 = arith.constant 0 : i32
    return %c0_i32, %c0_i32_0 : i32, i32
  }
  func.func @transform_9(%arg0: i32) -> (i32, i32) {
    %c0_i32 = arith.constant 0 : i32
    %c0_i32_0 = arith.constant 0 : i32
    %c0_i32_1 = arith.constant 0 : i32
    return %c0_i32, %c0_i32_0 : i32, i32
  }
  func.func @transform_10(%arg0: i32) -> (i32, i32) {
    %c0_i32 = arith.constant 0 : i32
    %c0_i32_0 = arith.constant 0 : i32
    %c0_i32_1 = arith.constant 0 : i32
    return %c0_i32, %c0_i32_0 : i32, i32
  }
  func.func @transform_11(%arg0: i32) -> (i32, i32) {
    %c0_i32 = arith.constant 0 : i32
    %c0_i32_0 = arith.constant 0 : i32
    %c0_i32_1 = arith.constant 0 : i32
    return %c0_i32, %c0_i32_0 : i32, i32
  }
  func.func @transform_12(%arg0: i32) -> (i32, i32) {
    %c0_i32 = arith.constant 0 : i32
    %c0_i32_0 = arith.constant 0 : i32
    %c0_i32_1 = arith.constant 0 : i32
    return %c0_i32, %c0_i32_0 : i32, i32
  }
  func.func @transform_13(%arg0: i32) -> (i32, i32) {
    %c0_i32 = arith.constant 0 : i32
    %c0_i32_0 = arith.constant 0 : i32
    %c0_i32_1 = arith.constant 0 : i32
    return %c0_i32, %c0_i32_0 : i32, i32
  }
  func.func @transform_14(%arg0: i32) -> (i32, i32) {
    %c0_i32 = arith.constant 0 : i32
    %c0_i32_0 = arith.constant 0 : i32
    %c0_i32_1 = arith.constant 0 : i32
    return %c0_i32, %c0_i32_0 : i32, i32
  }
  func.func @transform_15(%arg0: i32) -> (i32, i32) {
    %c0_i32 = arith.constant 0 : i32
    %c0_i32_0 = arith.constant 0 : i32
    %c0_i32_1 = arith.constant 0 : i32
    return %c0_i32, %c0_i32_0 : i32, i32
  }
  func.func @transform_16(%arg0: i32) -> (i32, i32) {
    %c0_i32 = arith.constant 0 : i32
    %c0_i32_0 = arith.constant 0 : i32
    %c0_i32_1 = arith.constant 0 : i32
    return %c0_i32, %c0_i32_0 : i32, i32
  }
  func.func @transform_17(%arg0: i32) -> (i32, i32) {
    %c0_i32 = arith.constant 0 : i32
    %c0_i32_0 = arith.constant 0 : i32
    %c0_i32_1 = arith.constant 0 : i32
    return %c0_i32, %c0_i32_0 : i32, i32
  }
  func.func @transform_18(%arg0: i32) -> (i32, i32) {
    %c0_i32 = arith.constant 0 : i32
    %c0_i32_0 = arith.constant 0 : i32
    %c0_i32_1 = arith.constant 0 : i32
    return %c0_i32, %c0_i32_0 : i32, i32
  }
  func.func @transform_19(%arg0: i32) -> (i32, i32) {
    %c0_i32 = arith.constant 0 : i32
    %c0_i32_0 = arith.constant 0 : i32
    %c0_i32_1 = arith.constant 0 : i32
    return %c0_i32, %c0_i32_0 : i32, i32
  }
  func.func @transform_20(%arg0: i32) -> (i32, i32) {
    %c0_i32 = arith.constant 0 : i32
    %c0_i32_0 = arith.constant 0 : i32
    %c0_i32_1 = arith.constant 0 : i32
    return %c0_i32, %c0_i32_0 : i32, i32
  }
  func.func @transform_21(%arg0: i32) -> (i32, i32) {
    %c0_i32 = arith.constant 0 : i32
    %c0_i32_0 = arith.constant 0 : i32
    %c0_i32_1 = arith.constant 0 : i32
    return %c0_i32, %c0_i32_0 : i32, i32
  }
  func.func @transform_22(%arg0: i32) -> (i32, i32) {
    %c0_i32 = arith.constant 0 : i32
    %c0_i32_0 = arith.constant 0 : i32
    %c0_i32_1 = arith.constant 0 : i32
    return %c0_i32, %c0_i32_0 : i32, i32
  }
  func.func @transform_23(%arg0: i32) -> (i32, i32) {
    %c0_i32 = arith.constant 0 : i32
    %c0_i32_0 = arith.constant 0 : i32
    %c0_i32_1 = arith.constant 0 : i32
    return %c0_i32, %c0_i32_0 : i32, i32
  }
  func.func @transform_24(%arg0: i32) -> (i32, i32) {
    %c0_i32 = arith.constant 0 : i32
    %c0_i32_0 = arith.constant 0 : i32
    %c0_i32_1 = arith.constant 0 : i32
    return %c0_i32, %c0_i32_0 : i32, i32
  }
  func.func @transform_25(%arg0: i32) -> (i32, i32) {
    %c0_i32 = arith.constant 0 : i32
    %c0_i32_0 = arith.constant 0 : i32
    %c0_i32_1 = arith.constant 0 : i32
    return %c0_i32, %c0_i32_0 : i32, i32
  }
  func.func @transform_26(%arg0: i32) -> (i32, i32) {
    %c0_i32 = arith.constant 0 : i32
    %c0_i32_0 = arith.constant 0 : i32
    %c0_i32_1 = arith.constant 0 : i32
    return %c0_i32, %c0_i32_0 : i32, i32
  }
  func.func @transform_27(%arg0: i32) -> (i32, i32) {
    %c0_i32 = arith.constant 0 : i32
    %c0_i32_0 = arith.constant 0 : i32
    return %arg0, %c0_i32 : i32, i32
  }
  func.func @transform_28(%arg0: i32) -> (i32, i32) {
    %c0_i32 = arith.constant 0 : i32
    %c0_i32_0 = arith.constant 0 : i32
    return %arg0, %c0_i32 : i32, i32
  }
}

</mosaic_0001>

<bundles_post_ra>
// kernel: tpu_custom_call.1
= control target key start
LH: loop header
LB: loop body
LE: loop exit
PB: predicated region body
PF: predicated region fallthrough
CT: control target
= control target key end

     0   :  { %s7059_s0 = inlined_call_operand.vmem [shape: f32[8,1], index: 0, kind: input, shape index: {}]   ;;  %s7060_s1 = inlined_call_operand.hbm [shape: f32[8,128], index: 1, kind: input, shape index: {}]   ;;  %s7061_s2 = inlined_call_operand.hbm [shape: f32[8,30], index: 2, kind: input, shape index: {}]   ;;  %s7062_s3 = inlined_call_operand.vmem [shape: f32[1,32], index: 3, kind: input, shape index: {}]   ;;  %s7063_s4 = inlined_call_operand.vmem [shape: f32[1,32], index: 4, kind: input, shape index: {}]   ;;  %s7064_s5 = inlined_call_operand.vmem [shape: f32[1,32], index: 5, kind: input, shape index: {}]   ;;  %s7065_s6 = inlined_call_operand.vmem [shape: f32[1,32], index: 6, kind: input, shape index: {}]   ;;  %s7066_s7 = inlined_call_operand.hbm [shape: f32[32,32], index: 7, kind: input, shape index: {}]   ;;  %s7067_s8 = inlined_call_operand.vmem [shape: f32[1,32], index: 8, kind: input, shape index: {}]   ;;  %s7068_s9 = inlined_call_operand.vmem [shape: f32[1,32], index: 9, kind: input, shape index: {}]   ;;  %s7069_s10 = inlined_call_operand.vmem [shape: f32[1,32], index: 10, kind: input, shape index: {}]   ;;  %s7070_s11 = inlined_call_operand.hbm [shape: f32[32,128], index: 11, kind: input, shape index: {}]   ;;  %s7071_s12 = inlined_call_operand.vmem [shape: f32[1,128], index: 12, kind: input, shape index: {}]   ;;  %s7072_s13 = inlined_call_operand.vmem [shape: f32[3,128], index: 13, kind: input, shape index: {}]   ;;  %s7073_s14 = inlined_call_operand.hbm [shape: f32[16,192], index: 14, kind: input, shape index: {}]   ;;  %s7074_s15 = inlined_call_operand.vmem [shape: f32[1,32], index: 15, kind: input, shape index: {}]   ;;  %s7075_s16 = inlined_call_operand.vmem [shape: f32[1,32], index: 16, kind: input, shape index: {}]   ;;  %s7076_s17 = inlined_call_operand.vmem [shape: f32[1,32], index: 17, kind: input, shape index: {}]   ;;  %s7077_s18 = inlined_call_operand.vmem [shape: f32[1,32], index: 18, kind: input, shape index: {}]   ;;  %s7078_s19 = inlined_call_operand.hbm [shape: f32[32,32], index: 19, kind: input, shape index: {}]   ;;  %s7079_s20 = inlined_call_operand.vmem [shape: f32[1,32], index: 20, kind: input, shape index: {}]   ;;  %s7080_s21 = inlined_call_operand.vmem [shape: f32[1,32], index: 21, kind: input, shape index: {}]   ;;  %s7081_s22 = inlined_call_operand.hbm [shape: f32[1,32], index: 22, kind: input, shape index: {}]   ;;  %s7082_s23 = inlined_call_operand.hbm [shape: f32[32,1152], index: 23, kind: input, shape index: {}]   ;;  %s7083_s24 = inlined_call_operand.vmem [shape: f32[1,1152], index: 24, kind: input, shape index: {}]   ;;  %s7084_s25 = inlined_call_operand.hbm [shape: f32[27,1152], index: 25, kind: input, shape index: {}]   ;;  %s7085_s26 = inlined_call_operand.vmem [shape: f32[16,576], index: 26, kind: input, shape index: {}]   ;;  %s7086_s27 = inlined_call_operand.hbm [shape: f32[8,192], index: 27, kind: output, shape index: {0}]   ;;  %s7087_s28 = inlined_call_operand.hbm [shape: f32[8,576], index: 28, kind: output, shape index: {1}]  }
   0x1   :  { %7102 = sst [smem:[#allocation42_spill]] %s7059_s0 }
   0x2   :  { %7103 = sst [smem:[#allocation43_spill]] %s7060_s1 }
   0x3   :  { %7104 = sst [smem:[#allocation44_spill]] %s7061_s2 }
   0x4   :  { %7105 = sst [smem:[#allocation45_spill]] %s7062_s3 }
   0x5   :  { %7106 = sst [smem:[#allocation46_spill]] %s7063_s4 }
   0x6   :  { %7107 = sst [smem:[#allocation47_spill]] %s7064_s5 }
   0x7   :  { %7108 = sst [smem:[#allocation48_spill]] %s7065_s6 }
   0x8   :  { %7109 = sst [smem:[#allocation49_spill]] %s7066_s7 }
   0x9   :  { %7110 = sst [smem:[#allocation50_spill]] %s7067_s8 }
   0xa   :  { %7111 = sst [smem:[#allocation51_spill]] %s7068_s9 }
   0xb   :  { %7112 = sst [smem:[#allocation52_spill]] %s7069_s10 }
   0xc   :  { %7113 = sst [smem:[#allocation53_spill]] %s7070_s11 }
   0xd   :  { %7114 = sst [smem:[#allocation54_spill]] %s7071_s12 }
   0xe   :  { %7115 = sst [smem:[#allocation55_spill]] %s7087_s28 }
   0xf   :  { %34 = vsyncpa [#allocation3], 0 }
  0x10   :  { %35 = vsyncpa [#allocation6], 0 }
  0x11   :  { %36 = vsyncpa [#allocation9], 0 }
  0x12   :  { %37 = vsyncpa [#allocation12], 0 }
  0x13   :  { %38 = vsyncpa [#allocation15], 0 }
  0x14   :  { %39 = vsyncpa [#allocation4], 0 }
  0x15   :  { %40 = vsyncpa [#allocation19], 0  ;;  %s5346_s8 = smov [#allocation5]   ;;  %s7116_s3 = sld [smem:[#allocation44_spill]] }
  0x16   :  { %s59_s5 = sshll.u32 %s5346_s8, 4  ;;  %s60_s5 = int_to_ptr.vmem [resolvable:$true] %s59_s5 }
  0x1b   :  { %s5090_s6 = scalar_lea.hbm %s7116_s3, 128 }
  0x1c   :  { %p5091_p0 = scmp.ne.s32.totalorder %s7116_s3, %s5090_s6  ;;  %p5094_p1 = scmp.lt.u32.totalorder %s5090_s6, %s7116_s3 }
  0x1e   :  { %p5096_p2 = pnand %p5094_p1, %p5091_p0 }
  0x20   :  { %5099 = shalt.err (!%p5096_p2)
}
  0x21   :  { %s5100_s2 = scalar_lea.vmem %s60_s5, 128  ;;  %p5105_p4 = scmp.lt.s32.totalorder %s60_s5, %s60_s5 }
  0x22   :  { %p5101_p3 = scmp.ne.s32.totalorder %s60_s5, %s5100_s2  ;;  %p5106_p5 = scmp.lt.s32.totalorder %s5100_s2, %s5100_s2 }
  0x24   :  { %p5107_p6 = por %p5106_p5, %p5105_p4 }
  0x26   :  { %p5108_p7 = pnand %p5107_p6, %p5101_p3 }
  0x28   :  { %5111 = shalt.err (!%p5108_p7)
}
  0x29   :  { %62 = dma.hbm_to_vmem [thread:$0]  %s7116_s3, 128, %s60_s5, [#allocation6]  }
  0x2a   :  { %s5347_s1 = smov [#allocation8]   ;;  %s5348_s8 = smov [#allocation11]  }
  0x2b   :  { %s94_s4 = sshll.u32 %s5347_s1, 4  ;;  %s130_s9 = sshll.u32 %s5348_s8, 4  ;;  %s95_s4 = int_to_ptr.vmem [resolvable:$true] %s94_s4  ;;  %s131_s9 = int_to_ptr.vmem [resolvable:$true] %s130_s9 }
  0x2c   :  { %s7117_s10 = sld [smem:[#allocation53_spill]] }
  0x32   :  { %s5112_s0 = scalar_lea.hbm %s7117_s10, 512 }
  0x33   :  { %p5113_p8 = scmp.ne.s32.totalorder %s7117_s10, %s5112_s0  ;;  %p5116_p9 = scmp.lt.u32.totalorder %s5112_s0, %s7117_s10 }
  0x35   :  { %p5118_p10 = pnand %p5116_p9, %p5113_p8 }
  0x37   :  { %5121 = shalt.err (!%p5118_p10)
}
  0x38   :  { %s5122_s5 = scalar_lea.vmem %s95_s4, 512  ;;  %p5127_p12 = scmp.lt.s32.totalorder %s95_s4, %s95_s4 }
  0x39   :  { %p5123_p11 = scmp.ne.s32.totalorder %s95_s4, %s5122_s5  ;;  %p5128_p13 = scmp.lt.s32.totalorder %s5122_s5, %s5122_s5 }
  0x3b   :  { %p5129_p0 = por %p5128_p13, %p5127_p12 }
  0x3d   :  { %p5130_p1 = pnand %p5129_p0, %p5123_p11 }
  0x3f   :  { %5133 = shalt.err (!%p5130_p1)
}
  0x40   :  { %s7093_s3 = smov 128   ;;  %s7094_s7 = smov 8  }
  0x41   :  { %100 = dma.hbm_to_vmem [thread:$0]  %s7117_s10, 512, %s95_s4, [#allocation9], %s7093_s3, %s7093_s3, %s7094_s7  }
  0x42   :  { %s5134_s30 = scalar_lea.hbm %s7078_s19, 512 }
  0x43   :  { %p5135_p2 = scmp.ne.s32.totalorder %s7078_s19, %s5134_s30  ;;  %p5138_p3 = scmp.lt.u32.totalorder %s5134_s30, %s7078_s19 }
  0x45   :  { %p5140_p4 = pnand %p5138_p3, %p5135_p2 }
  0x47   :  { %5143 = shalt.err (!%p5140_p4)
}
  0x48   :  { %s5144_s2 = scalar_lea.vmem %s131_s9, 512  ;;  %p5149_p6 = scmp.lt.s32.totalorder %s131_s9, %s131_s9 }
  0x49   :  { %p5145_p5 = scmp.ne.s32.totalorder %s131_s9, %s5144_s2  ;;  %p5150_p7 = scmp.lt.s32.totalorder %s5144_s2, %s5144_s2 }
  0x4b   :  { %p5151_p8 = por %p5150_p7, %p5149_p6 }
  0x4d   :  { %p5152_p9 = pnand %p5151_p8, %p5145_p5 }
  0x4f   :  { %5155 = shalt.err (!%p5152_p9)
}
  0x50   :  { %136 = dma.hbm_to_vmem [thread:$0]  %s7078_s19, 512, %s131_s9, [#allocation12], %s7093_s3, %s7093_s3, %s7094_s7  }
  0x51   :  { %s5351_s5 = smov [#allocation14]   ;;  %s5156_s8 = scalar_lea.hbm %s7082_s23, 4608 }
  0x52   :  { %s156_s12 = sshll.u32 %s5351_s5, 4  ;;  %p5157_p10 = scmp.ne.s32.totalorder %s7082_s23, %s5156_s8  ;;  %s157_s12 = int_to_ptr.vmem [resolvable:$true] %s156_s12 }
  0x53   :  { %p5160_p11 = scmp.lt.u32.totalorder %s5156_s8, %s7082_s23 }
  0x55   :  { %p5162_p12 = pnand %p5160_p11, %p5157_p10 }
  0x57   :  { %5165 = shalt.err (!%p5162_p12)
}
  0x58   :  { %s5166_s29 = scalar_lea.vmem %s157_s12, 4608  ;;  %p5171_p0 = scmp.lt.s32.totalorder %s157_s12, %s157_s12 }
  0x59   :  { %p5167_p13 = scmp.ne.s32.totalorder %s157_s12, %s5166_s29  ;;  %p5172_p1 = scmp.lt.s32.totalorder %s5166_s29, %s5166_s29 }
  0x5b   :  { %p5173_p2 = por %p5172_p1, %p5171_p0 }
  0x5d   :  { %p5174_p3 = pnand %p5173_p2, %p5167_p13 }
  0x5f   :  { %5177 = shalt.err (!%p5174_p3)
}
  0x60   :  { %s5352_s19 = smov 1152   ;;  %s5353_s9 = smov 72  }
  0x61   :  { %162 = dma.hbm_to_vmem [thread:$0]  %s7082_s23, 4608, %s157_s12, [#allocation15], %s5352_s19, %s5352_s19, %s5353_s9  }
  0x62   :  { %s5354_s10 = smov [#allocation2]   ;;  %s5355_s1 = smov [#allocation7]  }
  0x63   :  { %s49_s5 = sshll.u32 %s5354_s10, 4  ;;  %s76_s28 = sshll.u32 %s5355_s1, 4  ;;  %s50_s5 = int_to_ptr.vmem [resolvable:$true] %s49_s5  ;;  %s5598_s28 = int_to_ptr.vmem [resolvable:$true] %s76_s28 }
  0x64   :  { %s7118_s6 = sld [smem:[#allocation43_spill]] }
  0x6a   :  { %s5178_s0 = scalar_lea.hbm %s7118_s6, 128 }
  0x6b   :  { %p5179_p4 = scmp.ne.s32.totalorder %s7118_s6, %s5178_s0  ;;  %p5182_p5 = scmp.lt.u32.totalorder %s5178_s0, %s7118_s6 }
  0x6d   :  { %p5184_p6 = pnand %p5182_p5, %p5179_p4 }
  0x6f   :  { %5187 = shalt.err (!%p5184_p6)
}
  0x70   :  { %s5188_s23 = scalar_lea.vmem %s50_s5, 128  ;;  %p5193_p8 = scmp.lt.s32.totalorder %s50_s5, %s50_s5 }
  0x71   :  { %p5189_p7 = scmp.ne.s32.totalorder %s50_s5, %s5188_s23  ;;  %p5194_p9 = scmp.lt.s32.totalorder %s5188_s23, %s5188_s23 }
  0x73   :  { %p5195_p10 = por %p5194_p9, %p5193_p8 }
  0x75   :  { %p5196_p11 = pnand %p5195_p10, %p5189_p7 }
  0x77   :  { %5199 = shalt.err (!%p5196_p11)
}
  0x78   :  { %52 = dma.hbm_to_vmem [thread:$0]  %s7118_s6, 128, %s50_s5, [#allocation3]  }
  0x79   :  { %s7119_s1 = sld [smem:[#allocation49_spill]] }
  0x7f   :  { %s5200_s8 = scalar_lea.hbm %s7119_s1, 512 }
  0x80   :  { %p5201_p12 = scmp.ne.s32.totalorder %s7119_s1, %s5200_s8  ;;  %p5204_p13 = scmp.lt.u32.totalorder %s5200_s8, %s7119_s1 }
  0x82   :  { %p5206_p0 = pnand %p5204_p13, %p5201_p12 }
  0x84   :  { %5209 = shalt.err (!%p5206_p0)
}
  0x85   :  { %s5210_s11 = scalar_lea.vmem %s5598_s28, 512  ;;  %p5215_p2 = scmp.lt.s32.totalorder %s5598_s28, %s5598_s28 }
  0x86   :  { %p5211_p1 = scmp.ne.s32.totalorder %s5598_s28, %s5210_s11  ;;  %p5216_p3 = scmp.lt.s32.totalorder %s5210_s11, %s5210_s11 }
  0x88   :  { %p5217_p4 = por %p5216_p3, %p5215_p2 }
  0x8a   :  { %p5218_p5 = pnand %p5217_p4, %p5211_p1 }
  0x8c   :  { %5221 = shalt.err (!%p5218_p5)
}
  0x8d   :  { %s7120_s5 = smov 8   ;;  %s7121_s6 = smov 128  }
  0x8e   :  { %82 = dma.hbm_to_vmem [thread:$0]  %s7119_s1, 512, %s5598_s28, [#allocation6], %s7121_s6, %s7121_s6, %s7120_s5  }
  0x8f   :  { %s5356_s12 = smov [#allocation10]   ;;  %s5222_s8 = scalar_lea.hbm %s7073_s14, 512 }
  0x90   :  { %s110_s2 = sshll.u32 %s5356_s12, 4  ;;  %p5223_p6 = scmp.ne.s32.totalorder %s7073_s14, %s5222_s8  ;;  %s111_s2 = int_to_ptr.vmem [resolvable:$true] %s110_s2 }
  0x91   :  { %p5226_p7 = scmp.lt.u32.totalorder %s5222_s8, %s7073_s14 }
  0x93   :  { %p5228_p8 = pnand %p5226_p7, %p5223_p6 }
  0x95   :  { %5231 = shalt.err (!%p5228_p8)
}
  0x96   :  { %s5232_s11 = scalar_lea.vmem %s111_s2, 512  ;;  %p5237_p10 = scmp.lt.s32.totalorder %s111_s2, %s111_s2 }
  0x97   :  { %p5233_p9 = scmp.ne.s32.totalorder %s111_s2, %s5232_s11  ;;  %p5238_p11 = scmp.lt.s32.totalorder %s5232_s11, %s5232_s11 }
  0x99   :  { %p5239_p12 = por %p5238_p11, %p5237_p10 }
  0x9b   :  { %p5240_p13 = pnand %p5239_p12, %p5233_p9 }
  0x9d   :  { %5243 = shalt.err (!%p5240_p13)
}
  0x9e   :  { %s5357_s28 = smov 256   ;;  %s5358_s1 = smov 16  }
  0x9f   :  { %116 = dma.hbm_to_vmem [thread:$0]  %s7073_s14, 512, %s111_s2, [#allocation9], %s5357_s28, %s5357_s28, %s5358_s1  }
  0xa0   :  { %s5359_s29 = smov [#allocation13]   ;;  %s5360_s12 = smov [#allocation16]  }
  0xa1   :  { %s147_s23 = sshll.u32 %s5359_s29, 4  ;;  %s170_s4 = sshll.u32 %s5360_s12, 4  ;;  %s148_s23 = int_to_ptr.vmem [resolvable:$true] %s147_s23  ;;  %s171_s4 = int_to_ptr.vmem [resolvable:$true] %s170_s4 }
  0xa2   :  { %s5244_s30 = scalar_lea.hbm %s7081_s22, 16 }
  0xa3   :  { %p5245_p0 = scmp.ne.s32.totalorder %s7081_s22, %s5244_s30  ;;  %p5248_p1 = scmp.lt.u32.totalorder %s5244_s30, %s7081_s22 }
  0xa5   :  { %p5250_p2 = pnand %p5248_p1, %p5245_p0 }
  0xa7   :  { %5253 = shalt.err (!%p5250_p2)
}
  0xa8   :  { %s5254_s14 = scalar_lea.vmem %s148_s23, 16  ;;  %s5258_s2 = scalar_lea.vmem %s148_s23, 32 }
  0xa9   :  { %p5255_p3 = scmp.ne.s32.totalorder %s148_s23, %s5254_s14  ;;  %p5259_p4 = scmp.lt.s32.totalorder %s148_s23, %s148_s23 }
  0xaa   :  { %p5260_p5 = scmp.lt.s32.totalorder %s5258_s2, %s5254_s14 }
  0xac   :  { %p5261_p6 = por %p5260_p5, %p5259_p4 }
  0xae   :  { %p5262_p7 = pnand %p5261_p6, %p5255_p3 }
  0xb0   :  { %5265 = shalt.err (!%p5262_p7)
}
  0xb1   :  { %150 = dma.hbm_to_vmem [thread:$0]  %s7081_s22, 16, %s148_s23, [#allocation12]  }
  0xb2   :  { %s5266_s12 = scalar_lea.hbm %s7084_s25, 4608 }
  0xb3   :  { %p5267_p8 = scmp.ne.s32.totalorder %s7084_s25, %s5266_s12  ;;  %p5270_p9 = scmp.lt.u32.totalorder %s5266_s12, %s7084_s25 }
  0xb5   :  { %p5272_p10 = pnand %p5270_p9, %p5267_p8 }
  0xb7   :  { %5275 = shalt.err (!%p5272_p10)
}
  0xb8   :  { %s5276_s7 = scalar_lea.vmem %s171_s4, 4608  ;;  %p5281_p12 = scmp.lt.s32.totalorder %s171_s4, %s171_s4 }
  0xb9   :  { %p5277_p11 = scmp.ne.s32.totalorder %s171_s4, %s5276_s7  ;;  %p5282_p13 = scmp.lt.s32.totalorder %s5276_s7, %s5276_s7 }
  0xbb   :  { %p5283_p0 = por %p5282_p13, %p5281_p12 }
  0xbd   :  { %p5284_p1 = pnand %p5283_p0, %p5277_p11 }
  0xbf   :  { %5287 = shalt.err (!%p5284_p1)
}
  0xc0   :  { %176 = dma.hbm_to_vmem [thread:$0]  %s7084_s25, 4608, %s171_s4, [#allocation15], %s5352_s19, %s5352_s19, %s5353_s9  }
  0xc1   :  { %5332 = dma.done.wait [#allocation3], 128  }
  0xc2   :  { %5333 = vsyncadd [#allocation3], 4294967168 }
  0xc3   :  { %5334 = dma.done.wait [#allocation6], 640  }
  0xc4   :  { %5335 = vsyncadd [#allocation6], 4294966656 }
  0xc5   :  { %5336 = dma.done.wait [#allocation9], 1024  }
  0xc6   :  { %5337 = vsyncadd [#allocation9], 4294966272 }
  0xc7   :  { %5338 = dma.done.wait [#allocation12], 528  }
  0xc8   :  { %5339 = vsyncadd [#allocation12], 4294966768 }
  0xc9   :  { %5340 = dma.done.wait [#allocation15], 9216  }
  0xca   :  { %5341 = vsyncadd [#allocation15], 4294958080  ;;  %v5361_v0 = vmov 0   ;;  %s7122_s14 = sld [smem:[#allocation42_spill]]  ;;  %s7123_s25 = sld [smem:[#allocation45_spill]]  ;;  %vm7095_vm0 = vcmask 261120  }
  0xcb   :  { %5081 = vset.pattern.permute.xlu0 %v5361_v0  ;;  %s7124_s5 = sld [smem:[#allocation46_spill]]  ;;  %v262_v13 = vld [vmem:[#allocation7] sm:$0xff]  ;;  %v263_v14 = vld [vmem:[#allocation7 + $0x8] sm:$0xff]  ;;  %v264_v15 = vld [vmem:[#allocation7 + $0x10] sm:$0xff]  ;;  %v5362_v16 = vmov 0.0|0.0   ;;  %vm5363_vm1 = vmmov 0  }
  0xcc   :  { %4808 = vmatprep.subr.bf16.mxu0 %v5362_v16  ;;  %v4809_v17 = vpack.c.bf16 %v263_v14, %v262_v13  ;;  %v265_v18 = vld [vmem:[#allocation7 + $0x18] sm:$0xff]  ;;  %v5364_v19 = vmov 0.0   ;;  %4814 = vmatprep.subr.bf16.mxu1 %v5362_v16  ;;  %s7125_s12 = sld [smem:[#allocation47_spill]]  ;;  %s7126_s30 = sld [smem:[#allocation48_spill]]  ;;  %v4589_v31 = vld [vmem:[%s7074_s15] ss:$0 sm:$0xff] }
  0xcd   :  { %4700 = vmatprep.mubr.msk.f32.mxu0 %vm5363_vm1, %v5364_v19  ;;  %4711 = vmatprep.mubr.msk.f32.mxu1 %vm5363_vm1, %v5364_v19  ;;  %v4812_v20 = vpack.c.bf16 %v265_v18, %v264_v15  ;;  %s7127_s0 = sld [smem:[#allocation50_spill]]  ;;  %v4590_v35 = vld [vmem:[%s7075_s16] ss:$0 sm:$0xff]  ;;  %s5365_s15 = smov 64   ;;  %v376_v52 = vld [vmem:[#allocation8] sm:$0xff]  ;;  %v377_v53 = vld [vmem:[#allocation8 + $0x8] sm:$0xff] }
  0xce   :  { %4810 = vmatpush3.bf16.msra.mxu0 %v4809_v17  ;;  %v5711_v41 = vld [vmem:[#allocation2] sm:$0xff]  ;;  %s5366_s16 = smov 96   ;;  %s5367_s2 = smov 32   ;;  %v4815_v54 = vpack.c.bf16 %v377_v53, %v376_v52  ;;  %v379_v56 = vld [vmem:[#allocation8 + $0x18] sm:$0xff]  ;;  %v541_v58 = vld [vmem:[#allocation10 + $0x8] sm:$0xff]  ;;  %vm465_vm2 = vcmask 1042432  }
  0xcf   :  { %4811 = vmatprep.subr.bf16.mxu0 %v5362_v16  ;;  %v378_v55 = vld [vmem:[#allocation8 + $0x10] sm:$0xff]  ;;  %v543_v59 = vld [vmem:[#allocation10 + $0x18] sm:$0xff]  ;;  %v540_v61 = vld [vmem:[#allocation10] sm:$0xff]  ;;  %vm461_vm3 = vcmask 23552   ;;  %s7128_s4 = sld [smem:[#allocation51_spill]]  ;;  %s7129_s29 = sld [smem:[#allocation52_spill]] }
  0xd0   :  { %v206_v1 = vld [vmem:[%s7122_s14] sm:$0xff]  ;;  %4816 = vmatpush3.bf16.msra.mxu1 %v4815_v54  ;;  %v4818_v57 = vpack.c.bf16 %v379_v56, %v378_v55  ;;  %v5725_v60 = vpack.c.bf16 %v543_v59, %v541_v58  ;;  %v5731_v0 = vld [vmem:[#allocation5] sm:$0xff]  ;;  %vm544_vm4 = vcmask 130048   ;;  %s7130_s3 = sld [smem:[#allocation54_spill]]  ;;  %s5368_s23 = smov 112   ;;  %vm5389_vm5 = vmmov 1  }
  0xd1   :  { %212 = vperm.xlu0 %5081, %v206_v1   ;;  %v4569_v2 = vld [vmem:[%s7123_s25] ss:$0 sm:$0xff]  ;;  %4817 = vmatprep.subr.bf16.mxu1 %v5362_v16  ;;  %s5370_s11 = smov 125   ;;  %s5372_s14 = smov 36   ;;  %vm5929_vm6 = vmpackc.low %vm465_vm2, %vm5389_vm5  ;;  %vm2018_vm7 = vcmask 220160   ;;  %vm665_vm8 = vcmask 97280  }
  0xd2   :  { %v4570_v4 = vld [vmem:[%s7124_s5] ss:$0 sm:$0xff]  ;;  %4813 = vmatpush3.bf16.msra.mxu0 %v4812_v20  ;;  %s5374_s28 = smov 84   ;;  %s5375_s25 = smov 108   ;;  %vm667_vm9 = vcmask 195584   ;;  %vm669_vm10 = vcmask 293888  }
  0xd3   :  { %4714 = vmatprep.subr.mxu0 %v5364_v19  ;;  %v4571_v25 = vld [vmem:[%s7125_s12] ss:$0 sm:$0xff]  ;;  %s5377_s19 = smov 28   ;;  %s5379_s5 = smov 104   ;;  %vm671_vm11 = vcmask 392192   ;;  %vm673_vm12 = vcmask 490496  }
  0xd4   :  { %v4572_v27 = vld [vmem:[%s7126_s30] ss:$0 sm:$0xff]  ;;  %4819 = vmatpush3.bf16.msra.mxu1 %v4818_v57  ;;  %s5380_s6 = smov 80   ;;  %s5382_s12 = smov 24   ;;  %vm675_vm13 = vcmask 588800   ;;  %vm7101_vm14 = vcmask 687104  }
  0xd5   :  { %v4573_v32 = vld [vmem:[%s7127_s0] ss:$0 sm:$0xff]  ;;  %4821 = vmatprep.subr.bf16.mxu1 %v5725_v60  ;;  %s5369_s0 = smov 48   ;;  %s5383_s10 = smov 120   ;;  %vm7097_vm15 = vcmask 31744   ;;  %vm7100_vm5 = vcmask 982016  }
  0xd6   :  { %v542_v62 = vld [vmem:[#allocation10 + $0x10] sm:$0xff]  ;;  %s5384_s8 = smov 40   ;;  %s5385_s30 = smov 116  }
  0xd7   :  { %v460_v63 = vld [vmem:[%s7072_s13] sm:$0x7]  ;;  %v5733_v1 = vpack.c.bf16 %v542_v62, %v540_v61  ;;  %s5376_s13 = smov 4   ;;  %v1541_v61 = vld [vmem:[#allocation14 + $0x18] sm:$0xff]  ;;  %v1550_v62 = vld [vmem:[#allocation14 + $0x60] sm:$0xff] }
 0x150   :  { %v213_v3 = vpop.permute.xlu0 %212 }
 0x151   :  { %v221_v5 = vmul.f32 %v4569_v2, %v213_v3  ;;  %v1385_v33 = vmul.f32 %v4589_v31, %v213_v3 }
 0x153   :  { %v229_v6 = vadd.f32 %v4570_v4, %v221_v5  ;;  %v1393_v39 = vadd.f32 %v4590_v35, %v1385_v33  ;;  %v4577_v35 = vld [vmem:[%s7130_s3] ss:$0 sm:$0xff] }
 0x155   :  { %v233_v7 = vsel %vm7095_vm0, %v229_v6, 0.0  ;;  %v1396_v40 = vsel %vm7095_vm0, %v1393_v39, 0.0 }
 0x156   :  { %234 = vadd.xlane.f32.xlu0 %v233_v7 }
 0x16c   :  { %987 = vrot.lane.b32.xlu0 %v5711_v41, %s5365_s15  ;;  %s5373_s15 = smov 60  }
 0x1e3   :  { %v235_v8 = vpop.xlane.xlu0 %234 }
 0x1e4   :  { %v237_v9 = vmul.f32 0.03125, %v235_v8  ;;  %v4575_v8 = vld [vmem:[%s7128_s4] ss:$0 sm:$0xff]  ;;  %s5378_s4 = smov 52  }
 0x1e6   :  { %v238_v10 = vsub.f32 %v229_v6, %v237_v9 }
 0x1e7   :  { %v5762_v18 = vpop.permute.xlu0 %987 }
 0x1e8   :  { %v239_v11 = vmul.f32 %v238_v10, %v238_v10 }
 0x1ea   :  { %v240_v12 = vsel %vm7095_vm0, %v239_v11, 0.0  ;;  %v4576_v11 = vld [vmem:[%s7129_s29] ss:$0 sm:$0xff]  ;;  %s5381_s29 = smov 56  }
 0x1eb   :  { %241 = vadd.xlane.f32.xlu1 %v240_v12 }
 0x278   :  { %v242_v21 = vpop.xlane.xlu1 %241 }
 0x279   :  { %v243_v22 = vmul.f32 0.03125, %v242_v21  ;;  %v1424_v21 = vld [vmem:[#allocation11] sm:$0xff] }
 0x27b   :  { %v244_v23 = vadd.f32 1e-05, %v243_v22  ;;  %v1425_v22 = vld [vmem:[#allocation11 + $0x8] sm:$0xff] }
 0x27d   :  { %5082 = vrsqrt.f32 %v244_v23  ;;  %v4591_v23 = vld [vmem:[%s7076_s17] ss:$0 sm:$0xff]  ;;  %s5386_s17 = smov 92  }
 0x287   :  { %v5083_v24 = vpop.eup %5082 }
 0x288   :  { %v246_v26 = vmul.f32 %v5083_v24, %v238_v10 }
 0x28a   :  { %v253_v28 = vmul.f32 %v4571_v25, %v246_v26  ;;  %v4853_v25 = vpack.c.bf16 %v1425_v22, %v1424_v21  ;;  %v1426_v26 = vld [vmem:[#allocation11 + $0x10] sm:$0xff] }
 0x28c   :  { %v260_v29 = vadd.f32 %v4572_v27, %v253_v28  ;;  %v1427_v27 = vld [vmem:[#allocation11 + $0x18] sm:$0xff] }
 0x28e   :  { %v261_v30 = vmax.f32 %v260_v29, 0.0  ;;  %v4592_v29 = vld [vmem:[%s7077_s18] ss:$0 sm:$0xff]  ;;  %s5387_s18 = smov 68  }
 0x290   :  { %4701 = vmatmul.mubr.msk.f32.vlgmr.msra.gmra.mrb[0].mxu0 %vm7095_vm0, %v261_v30  ;;  %v4856_v30 = vpack.c.bf16 %v1427_v27, %v1426_v26 }
 0x291   :  { %4716 = vmatprep.mubr.msk.f32.mxu0 %vm5363_vm1, %v5364_v19  ;;  %4715 = vmatpush3.msk.msra.mxu0 %vm465_vm2, %v460_v63  ;;  %v1540_v63 = vld [vmem:[#allocation14 + $0x10] sm:$0xff]  ;;  %vm679_vm2 = vcmask 785408  }
 0x292   :  { %4825 = vmatprep.subr.bf16.mxu0 %v5725_v60 }
 0x294   :  { %4717 = vmatmul.mubr.msk.f32.vlgmr.msra.gmra.mrb[2].mxu0 %vm461_vm3, %v5731_v0  ;;  %vm681_vm3 = vcmask 883712  }
 0x295   :  { %4827 = vmatpush1.bf16.msra.mxu0 %v5733_v1  ;;  %764 = vmatprep.mubr.f32.mxu0 %v5364_v19 }
 0x296   :  { %4833 = vmatprep.subr.bf16.mxu0 %v5725_v60 }
 0x363   :  { %v342_v34 = vpop.f32.mrb[0].mxu0 }
 0x364   :  { %v343_v36 = vadd.f32 %v4573_v32, %v342_v34  ;;  %v4702_v37 = vpop.f32.mrb[1].mxu0 }
 0x366   :  { %v348_v38 = vsel %vm7095_vm0, %v343_v36, 0.0 }
 0x367   :  { %349 = vadd.xlane.f32.xlu1 %v348_v38  ;;  %v535_v33 = vpop.f32.mrb[2].mxu0 }
 0x368   :  { %v4718_v34 = vpop.f32.mrb[3].mxu0 }
 0x369   :  { %v1557_v34 = vld [vmem:[#allocation14 + $0x98] sm:$0xff] }
 0x36b   :  { %1397 = vadd.xlane.f32.xlu1 %v1396_v40 }
 0x3f4   :  { %v350_v42 = vpop.xlane.xlu1 %349 }
 0x3f5   :  { %v351_v43 = vmul.f32 0.03125, %v350_v42 }
 0x3f7   :  { %v352_v44 = vsub.f32 %v343_v36, %v351_v43 }
 0x3f8   :  { %v1398_v45 = vpop.xlane.xlu1 %1397 }
 0x3f9   :  { %v1399_v46 = vmul.f32 0.03125, %v1398_v45  ;;  %v353_v47 = vmul.f32 %v352_v44, %v352_v44 }
 0x3fb   :  { %v5714_v48 = vsub.f32 %v1393_v39, %v1399_v46  ;;  %v354_v49 = vsel %vm7095_vm0, %v353_v47, 0.0 }
 0x3fc   :  { %355 = vadd.xlane.f32.xlu1 %v354_v49  ;;  %v4593_v49 = vld [vmem:[%s7079_s20] ss:$0 sm:$0xff]  ;;  %s5371_s20 = smov 12  }
 0x3fd   :  { %v1401_v50 = vmul.f32 %v5714_v48, %v5714_v48 }
 0x3ff   :  { %v1402_v51 = vsel %vm7095_vm0, %v1401_v50, 0.0 }
 0x400   :  { %1403 = vadd.xlane.f32.xlu1 %v1402_v51 }
 0x411   :  { %793 = vrot.lane.b32.xlu1 %v5711_v41, %s5366_s16 }
 0x415   :  { %1181 = vrot.lane.b32.xlu1 %v5711_v41, %s5367_s2 }
 0x489   :  { %v356_v2 = vpop.xlane.xlu1 %355 }
 0x48a   :  { %v357_v3 = vmul.f32 0.03125, %v356_v2  ;;  %v4866_v2 = vpack.c.bf16 %v1550_v62, %v1541_v61  ;;  %v4596_v62 = vld [vmem:[#allocation13] ss:$0 sm:$0xff] }
 0x48c   :  { %v358_v4 = vadd.f32 1e-05, %v357_v3 }
 0x48d   :  { %v1404_v5 = vpop.xlane.xlu1 %1403 }
 0x48e   :  { %5084 = vrsqrt.f32 %v358_v4  ;;  %v1405_v6 = vmul.f32 0.03125, %v1404_v5  ;;  %v1559_v4 = vld [vmem:[#allocation14 + $0xa8] sm:$0xff]  ;;  %v1568_v5 = vld [vmem:[#allocation14 + $0xf0] sm:$0xff] }
 0x490   :  { %v1406_v10 = vadd.f32 1e-05, %v1405_v6  ;;  %v1558_v6 = vld [vmem:[#allocation14 + $0xa0] sm:$0xff] }
 0x491   :  { %v5755_v15 = vpop.permute.xlu1 %793 }
 0x492   :  { %5086 = vrsqrt.f32 %v1406_v10  ;;  %v1545_v10 = vld [vmem:[#allocation14 + $0x38] sm:$0xff] }
 0x495   :  { %v5772_v24 = vpop.permute.xlu1 %1181 }
 0x498   :  { %v5085_v7 = vpop.eup %5084 }
 0x499   :  { %v360_v9 = vmul.f32 %v5085_v7, %v352_v44  ;;  %v1567_v7 = vld [vmem:[#allocation14 + $0xe8] sm:$0xff] }
 0x49b   :  { %v367_v12 = vmul.f32 %v4575_v8, %v360_v9  ;;  %v4870_v8 = vpack.c.bf16 %v1568_v5, %v1559_v4  ;;  %v4872_v9 = vpack.c.bf16 %v1567_v7, %v1558_v6  ;;  %v1551_v4 = vld [vmem:[#allocation14 + $0x68] sm:$0xff]  ;;  %v1561_v5 = vld [vmem:[#allocation14 + $0xb8] sm:$0xff]  ;;  %v1570_v6 = vld [vmem:[#allocation14 + $0x100] sm:$0xff] }
 0x49c   :  { %v5087_v17 = vpop.eup %5086  ;;  %v1563_v7 = vld [vmem:[#allocation14 + $0xc8] sm:$0xff] }
 0x49d   :  { %v374_v13 = vadd.f32 %v4576_v11, %v367_v12  ;;  %v1408_v20 = vmul.f32 %v5087_v17, %v5714_v48  ;;  %v1554_v11 = vld [vmem:[#allocation14 + $0x80] sm:$0xff] }
 0x49e   :  { %v4882_v12 = vpack.c.bf16 %v1554_v11, %v1545_v10 }
 0x49f   :  { %v375_v14 = vmax.f32 %v374_v13, 0.0  ;;  %v1415_v28 = vmul.f32 %v4591_v23, %v1408_v20 }
 0x4a1   :  { %4712 = vmatmul.mubr.msk.f32.vlgmr.msra.gmra.mrb[0].mxu1 %vm7095_vm0, %v375_v14  ;;  %v1422_v31 = vadd.f32 %v4592_v29, %v1415_v28  ;;  %v1539_v28 = vld [vmem:[#allocation14 + $0x8] sm:$0xff]  ;;  %v1548_v29 = vld [vmem:[#allocation14 + $0x50] sm:$0xff] }
 0x4a2   :  { %4823 = vmatpush1.bf16.msra.mxu1 %v5733_v1  ;;  %612 = vmatprep.mubr.f32.mxu1 %v5364_v19 }
 0x4a3   :  { %4829 = vmatprep.subr.bf16.mxu1 %v5725_v60  ;;  %v1423_v32 = vmax.f32 %v1422_v31, 0.0  ;;  %v1538_v31 = vld [vmem:[#allocation14] sm:$0xff] }
 0x4a5   :  { %4581 = vmatmul.mubr.msk.f32.vlgmr.msra.gmra.mrb[2].mxu1 %vm544_vm4, %v5711_v41 }
 0x4a6   :  { %4831 = vmatpush1.bf16.msra.mxu1 %v5733_v1  ;;  %861 = vmatprep.mubr.f32.mxu1 %v5364_v19 }
 0x4a7   :  { %4837 = vmatprep.subr.bf16.mxu1 %v5725_v60 }
 0x4a9   :  { %4583 = vmatmul.mubr.msk.f32.vlgmr.msra.gmra.mrb[4].mxu1 %vm544_vm4, %v5755_v15 }
 0x4aa   :  { %4839 = vmatpush1.bf16.msra.mxu1 %v5733_v1  ;;  %1055 = vmatprep.mubr.f32.mxu1 %v5364_v19 }
 0x4ab   :  { %4845 = vmatprep.subr.bf16.mxu1 %v5725_v60 }
 0x4ad   :  { %4585 = vmatmul.mubr.msk.f32.vlgmr.msra.gmra.mrb[6].mxu1 %vm544_vm4, %v5762_v18 }
 0x4ae   :  { %4847 = vmatpush1.bf16.msra.mxu1 %v5733_v1  ;;  %1249 = vmatprep.mubr.f32.mxu1 %v5364_v19 }
 0x4af   :  { %4852 = vmatprep.subr.bf16.mxu1 %v5362_v16 }
 0x4b1   :  { %4587 = vmatmul.mubr.msk.f32.vlgmr.msra.gmra.mrb[8].mxu1 %vm544_vm4, %v5772_v24 }
 0x4b2   :  { %4854 = vmatpush3.bf16.msra.mxu1 %v4853_v25  ;;  %4727 = vmatprep.mubr.msk.f32.mxu1 %vm5363_vm1, %v5364_v19 }
 0x4b3   :  { %4855 = vmatprep.subr.bf16.mxu1 %v5362_v16 }
 0x4b6   :  { %4857 = vmatpush3.bf16.msra.mxu1 %v4856_v30  ;;  %v4858_v30 = vpack.c.bf16 %v1548_v29, %v1539_v28  ;;  %v1571_v29 = vld [vmem:[#allocation14 + $0x108] sm:$0xff] }
 0x4b7   :  { %4867 = vmatprep.subr.bf16.mxu1 %v4866_v2 }
 0x4b9   :  { %4728 = vmatmul.mubr.msk.f32.vlgmr.msra.gmra.mrb[10].mxu1 %vm7095_vm0, %v1423_v32  ;;  %v1547_v32 = vld [vmem:[#allocation14 + $0x48] sm:$0xff] }
 0x4ba   :  { %1761 = vmatprep.mubr.f32.mxu1 %v5364_v19 }
 0x574   :  { %v456_v36 = vpop.f32.mrb[0].mxu1 }
 0x575   :  { %v457_v37 = vadd.f32 %v4577_v35, %v456_v36  ;;  %v4713_v38 = vpop.f32.mrb[1].mxu1  ;;  %v1566_v35 = vld [vmem:[#allocation14 + $0xe0] sm:$0xff] }
 0x576   :  { %v4862_v38 = vpack.c.bf16 %v1566_v35, %v1557_v34  ;;  %v1990_v34 = vld [vmem:[#allocation16 + $0x50] sm:$0xff] }
 0x577   :  { %v5789_v39 = vmul.f32 %v535_v33, %v457_v37  ;;  %v4860_v37 = vpack.c.bf16 %v1547_v32, %v1538_v31  ;;  %v1569_v31 = vld [vmem:[#allocation14 + $0xf8] sm:$0xff]  ;;  %v1981_v32 = vld [vmem:[#allocation16 + $0x8] sm:$0xff] }
 0x578   :  { %v5791_v40 = vpop.f32.mrb[2].mxu1 }
 0x579   :  { %v5793_v42 = vpop.f32.mrb[3].mxu1 }
 0x57c   :  { %v5795_v43 = vpop.f32.mrb[4].mxu1 }
 0x57d   :  { %v5797_v44 = vpop.f32.mrb[5].mxu1 }
 0x580   :  { %v5799_v45 = vpop.f32.mrb[6].mxu1 }
 0x581   :  { %v5801_v46 = vpop.f32.mrb[7].mxu1 }
 0x584   :  { %v5803_v47 = vpop.f32.mrb[8].mxu1 }
 0x585   :  { %v5805_v48 = vpop.f32.mrb[9].mxu1 }
 0x58c   :  { %v1504_v50 = vpop.f32.mrb[10].mxu1 }
 0x58d   :  { %v1505_v51 = vadd.f32 %v4593_v49, %v1504_v50  ;;  %v4729_v52 = vpop.f32.mrb[11].mxu1  ;;  %v1565_v49 = vld [vmem:[#allocation14 + $0xd8] sm:$0xff] }
 0x58e   :  { %v1552_v52 = vld [vmem:[#allocation14 + $0x70] sm:$0xff] }
 0x58f   :  { %v1510_v53 = vsel %vm7095_vm0, %v1505_v51, 0.0 }
 0x590   :  { %1511 = vadd.xlane.f32.xlu1 %v1510_v53 }
 0x5a1   :  { %696 = vrot.lane.b32.xlu1 %v5711_v41, %s5368_s23 }
 0x5a5   :  { %1084 = vrot.lane.b32.xlu1 %v5711_v41, %s5369_s0 }
 0x5a9   :  { %1278 = vrot.lane.b32.xlu1 %v5711_v41, %s5358_s1 }
 0x5ad   :  { %2016 = vrot.lane.b32.xlu1 %v5731_v0, %s5370_s11  ;;  %v1549_v0 = vld [vmem:[#allocation14 + $0x58] sm:$0xff] }
 0x5ae   :  { %v4868_v3 = vpack.c.bf16 %v1549_v0, %v1540_v63  ;;  %v1544_v63 = vld [vmem:[#allocation14 + $0x30] sm:$0xff]  ;;  %v1553_v0 = vld [vmem:[#allocation14 + $0x78] sm:$0xff] }
 0x5b0   :  { %4869 = vmatpush1.bf16.msra.mxu1 %v4868_v3  ;;  %v1542_v3 = vld [vmem:[#allocation14 + $0x20] sm:$0xff] }
 0x5b1   :  { %620 = vrot.lane.b32.xlu1 %v5789_v39, %s5371_s20  ;;  %4871 = vmatprep.subr.bf16.mxu1 %v4870_v8  ;;  %v1572_v8 = vld [vmem:[#allocation14 + $0x110] sm:$0xff] }
 0x5b2   :  { %v4886_v28 = vpack.c.bf16 %v1572_v8, %v1563_v7  ;;  %v1983_v7 = vld [vmem:[#allocation16 + $0x18] sm:$0xff]  ;;  %v1992_v8 = vld [vmem:[#allocation16 + $0x60] sm:$0xff] }
 0x5b4   :  { %4873 = vmatpush1.bf16.msra.mxu1 %v4872_v9 }
 0x5b5   :  { %626 = vrot.lane.b32.xlu1 %v5789_v39, %s5372_s14  ;;  %4883 = vmatprep.subr.bf16.mxu1 %v4882_v12  ;;  %v4876_v12 = vpack.c.bf16 %v1551_v4, %v1542_v3  ;;  %v2007_v3 = vld [vmem:[#allocation16 + $0xd8] sm:$0x7] }
 0x5b9   :  { %632 = vrot.lane.b32.xlu1 %v5789_v39, %s5373_s15  ;;  %s5391_s15 = smov 124  }
 0x5bd   :  { %638 = vrot.lane.b32.xlu1 %v5789_v39, %s5374_s28 }
 0x5c1   :  { %644 = vrot.lane.b32.xlu1 %v5789_v39, %s5375_s25 }
 0x5c5   :  { %650 = vrot.lane.b32.xlu1 %v5789_v39, %s5376_s13 }
 0x5c9   :  { %656 = vrot.lane.b32.xlu1 %v5789_v39, %s5377_s19 }
 0x5cd   :  { %662 = vrot.lane.b32.xlu1 %v5789_v39, %s5378_s4 }
 0x5d1   :  { %868 = vrot.lane.b32.xlu1 %v5789_v39, %s5379_s5 }
 0x5d5   :  { %1062 = vrot.lane.b32.xlu1 %v5789_v39, %s5380_s6 }
 0x5d9   :  { %1256 = vrot.lane.b32.xlu1 %v5789_v39, %s5381_s29 }
 0x61d   :  { %v1512_v54 = vpop.xlane.xlu1 %1511 }
 0x61e   :  { %v1513_v55 = vmul.f32 0.03125, %v1512_v54 }
 0x620   :  { %v5838_v56 = vsub.f32 %v1505_v51, %v1513_v55  ;;  %v1543_v51 = vld [vmem:[#allocation14 + $0x28] sm:$0xff] }
 0x621   :  { %v5840_v57 = vpop.permute.xlu1 %696  ;;  %v4874_v55 = vpack.c.bf16 %v1552_v52, %v1543_v51  ;;  %v1989_v51 = vld [vmem:[#allocation16 + $0x48] sm:$0xff]  ;;  %v1546_v52 = vld [vmem:[#allocation14 + $0x40] sm:$0xff] }
 0x622   :  { %4582 = vmatmul.mubr.msk.f32.vlgmr.msra.gmra.mrb[4].mxu0 %vm544_vm4, %v5840_v57  ;;  %v1515_v58 = vmul.f32 %v5838_v56, %v5838_v56 }
 0x623   :  { %4835 = vmatpush1.bf16.msra.mxu0 %v5733_v1  ;;  %958 = vmatprep.mubr.f32.mxu0 %v5364_v19 }
 0x624   :  { %v1516_v59 = vsel %vm7095_vm0, %v1515_v58, 0.0  ;;  %4841 = vmatprep.subr.bf16.mxu0 %v5725_v60  ;;  %v4595_v58 = vld [vmem:[%s7080_s21] ss:$0 sm:$0xff] }
 0x625   :  { %1517 = vadd.xlane.f32.xlu0 %v1516_v59  ;;  %v5870_v13 = vpop.permute.xlu1 %1084 }
 0x629   :  { %v5872_v14 = vpop.permute.xlu1 %1278 }
 0x62d   :  { %v5874_v17 = vpop.permute.xlu1 %2016 }
 0x631   :  { %v5876_v20 = vpop.permute.xlu1 %620 }
 0x635   :  { %v5878_v21 = vpop.permute.xlu1 %626 }
 0x639   :  { %v5880_v25 = vpop.permute.xlu1 %632 }
 0x63b   :  { %890 = vrot.lane.b32.xlu0 %v5711_v41, %s5380_s6 }
 0x63d   :  { %v5891_v36 = vpop.permute.xlu1 %638 }
 0x63f   :  { %623 = vrot.lane.b32.xlu0 %v5789_v39, %s5382_s12 }
 0x643   :  { %629 = vrot.lane.b32.xlu0 %v5789_v39, %s5369_s0 }
 0x647   :  { %635 = vrot.lane.b32.xlu0 %v5789_v39, %s5353_s9 }
 0x64b   :  { %641 = vrot.lane.b32.xlu0 %v5789_v39, %s5366_s16  ;;  %s5388_s16 = smov 44  }
 0x64f   :  { %647 = vrot.lane.b32.xlu0 %v5789_v39, %s5383_s10 }
 0x653   :  { %653 = vrot.lane.b32.xlu0 %v5789_v39, %s5358_s1 }
 0x657   :  { %659 = vrot.lane.b32.xlu0 %v5789_v39, %s5384_s8 }
 0x65b   :  { %771 = vrot.lane.b32.xlu0 %v5789_v39, %s5385_s30 }
 0x65f   :  { %965 = vrot.lane.b32.xlu0 %v5789_v39, %s5386_s17 }
 0x663   :  { %1159 = vrot.lane.b32.xlu0 %v5789_v39, %s5387_s18 }
 0x667   :  { %1353 = vrot.lane.b32.xlu0 %v5789_v39, %s5388_s16 }
 0x6b2   :  { %v1518_v22 = vpop.xlane.xlu0 %1517 }
 0x6b3   :  { %v1519_v23 = vmul.f32 0.03125, %v1518_v22  ;;  %v1562_v22 = vld [vmem:[#allocation14 + $0xc0] sm:$0xff] }
 0x6b5   :  { %v1520_v26 = vadd.f32 1e-05, %v1519_v23 }
 0x6b6   :  { %v5882_v27 = vpop.permute.xlu0 %890 }
 0x6b7   :  { %5088 = vrsqrt.f32 %v1520_v26  ;;  %4584 = vmatmul.mubr.msk.f32.vlgmr.msra.gmra.mrb[6].mxu0 %vm544_vm4, %v5882_v27  ;;  %v4878_v26 = vpack.c.bf16 %v1570_v6, %v1561_v5  ;;  %v1564_v5 = vld [vmem:[#allocation14 + $0xd0] sm:$0xff]  ;;  %v1573_v6 = vld [vmem:[#allocation14 + $0x118] sm:$0xff] }
 0x6b8   :  { %4843 = vmatpush1.bf16.msra.mxu0 %v5733_v1  ;;  %1152 = vmatprep.mubr.f32.mxu0 %v5364_v19 }
 0x6b9   :  { %4849 = vmatprep.subr.bf16.mxu0 %v5725_v60  ;;  %v1556_v60 = vld [vmem:[#allocation14 + $0x90] sm:$0xff] }
 0x6ba   :  { %v5889_v33 = vpop.permute.xlu0 %623  ;;  %v4864_v53 = vpack.c.bf16 %v1565_v49, %v1556_v60  ;;  %v1980_v60 = vld [vmem:[#allocation16] sm:$0xff]  ;;  %v4896_v49 = vpack.c.bf16 %v1990_v34, %v1981_v32 }
 0x6bb   :  { %4586 = vmatmul.mubr.msk.f32.vlgmr.msra.gmra.mrb[8].mxu0 %vm544_vm4, %v5870_v13  ;;  %v1984_v34 = vld [vmem:[#allocation16 + $0x20] sm:$0xff] }
 0x6bc   :  { %4851 = vmatpush1.bf16.msra.mxu0 %v5733_v1  ;;  %1346 = vmatprep.mubr.f32.mxu0 %v5364_v19  ;;  %v5902_v1 = vpop.permute.xlu1 %644 }
 0x6bd   :  { %4859 = vmatprep.subr.bf16.mxu0 %v4858_v30  ;;  %v1560_v30 = vld [vmem:[#allocation14 + $0xb0] sm:$0xff] }
 0x6be   :  { %v5897_v50 = vpop.permute.xlu0 %629 }
 0x6bf   :  { %4588 = vmatmul.mubr.msk.f32.vlgmr.msra.gmra.mrb[10].mxu0 %vm544_vm4, %v5872_v14 }
 0x6c0   :  { %4861 = vmatpush1.bf16.msra.mxu0 %v4860_v37  ;;  %1690 = vmatprep.mubr.f32.mxu0 %v5364_v19  ;;  %v5912_v11 = vpop.permute.xlu1 %650  ;;  %v4888_v37 = vpack.c.bf16 %v1571_v29, %v1562_v22  ;;  %v1982_v29 = vld [vmem:[#allocation16 + $0x10] sm:$0xff] }
 0x6c1   :  { %v5089_v54 = vpop.eup %5088  ;;  %4863 = vmatprep.subr.bf16.mxu0 %v4862_v38  ;;  %v4880_v38 = vpack.c.bf16 %v1569_v31, %v1560_v30  ;;  %v1991_v30 = vld [vmem:[#allocation16 + $0x58] sm:$0xff]  ;;  %v4906_v31 = vpack.c.bf16 %v1992_v8, %v1983_v7  ;;  %v1996_v7 = vld [vmem:[#allocation16 + $0x80] sm:$0xff] }
 0x6c2   :  { %v1522_v59 = vmul.f32 %v5089_v54, %v5838_v56  ;;  %v5908_v61 = vpop.permute.xlu0 %635  ;;  %v4884_v56 = vpack.c.bf16 %v1553_v0, %v1544_v63  ;;  %v4898_v63 = vpack.c.bf16 %v1989_v51, %v1980_v60  ;;  %v2010_v60 = vld [vmem:[#allocation16 + $0xf0] sm:$0x7]  ;;  %v2012_v51 = vld [vmem:[#allocation16 + $0x100] sm:$0x7] }
 0x6c4   :  { %4865 = vmatpush1.bf16.msra.mxu0 %v4864_v53  ;;  %v1529_v2 = vmul.f32 %v4595_v58, %v1522_v59  ;;  %v1555_v53 = vld [vmem:[#allocation14 + $0x88] sm:$0xff]  ;;  %v5922_v54 = vpop.permute.xlu1 %656  ;;  %v2008_v58 = vld [vmem:[#allocation16 + $0xe0] sm:$0x7] }
 0x6c5   :  { %4875 = vmatprep.subr.bf16.mxu0 %v4874_v55  ;;  %v1999_v55 = vld [vmem:[#allocation16 + $0x98] sm:$0xff]  ;;  %v4891_v0 = vpack.c.bf16 %v1555_v53, %v1546_v52  ;;  %v4908_v53 = vpack.c.bf16 %v1991_v30, %v1982_v29  ;;  %v1988_v30 = vld [vmem:[#allocation16 + $0x40] sm:$0xff] }
 0x6c6   :  { %v5910_v9 = vpop.permute.xlu0 %641  ;;  %v1536_v10 = vadd.f32 %v4596_v62, %v1529_v2  ;;  %v1998_v2 = vld [vmem:[#allocation16 + $0x90] sm:$0xff]  ;;  %v4900_v4 = vpack.c.bf16 %v2008_v58, %v1999_v55  ;;  %v2000_v58 = vld [vmem:[#allocation16 + $0xa0] sm:$0xff]  ;;  %v1995_v29 = vld [vmem:[#allocation16 + $0x78] sm:$0xff] }
 0x6c7   :  { %v2424_v62 = vld [vmem:[%s7085_s26 + $0x38] sm:$0xff] }
 0x6c8   :  { %v5914_v23 = vmax.f32 %v1536_v10, 0.0  ;;  %v1985_v10 = vld [vmem:[#allocation16 + $0x28] sm:$0xff]  ;;  %v5940_v22 = vpop.permute.xlu1 %662 }
 0x6ca   :  { %4599 = vmatmul.mubr.msk.f32.vlgmr.msra.gmra.mrb[12].mxu1 %vm7095_vm0, %v5914_v23  ;;  %v5918_v35 = vpop.permute.xlu0 %647  ;;  %4598 = vmatmul.mubr.msk.f32.vlgmr.msra.gmra.mrb[12].mxu0 %vm7095_vm0, %v5914_v23 }
 0x6cb   :  { %4885 = vmatpush1.bf16.msra.mxu1 %v4884_v56  ;;  %4877 = vmatpush1.bf16.msra.mxu0 %v4876_v12  ;;  %v1994_v56 = vld [vmem:[#allocation16 + $0x70] sm:$0xff] }
 0x6cc   :  { %4879 = vmatprep.subr.bf16.mxu0 %v4878_v26  ;;  %4887 = vmatprep.subr.bf16.mxu1 %v4886_v28  ;;  %v4903_v26 = vpack.c.bf16 %v2007_v3, %v1998_v2  ;;  %v4894_v28 = vpack.c.bf16 %v1573_v6, %v1564_v5  ;;  %v4916_v32 = vpack.c.bf16 %v1994_v56, %v1985_v10  ;;  %v2009_v2 = vld [vmem:[#allocation16 + $0xe8] sm:$0x7]  ;;  %v2002_v3 = vld [vmem:[#allocation16 + $0xb0] sm:$0xff]  ;;  %v5952_v5 = vpop.permute.xlu1 %868  ;;  %v1987_v6 = vld [vmem:[#allocation16 + $0x38] sm:$0xff] }
 0x6cd   :  { %1832 = vmatprep.mubr.f32.mxu0 %v5364_v19  ;;  %1903 = vmatprep.mubr.f32.mxu1 %v5364_v19  ;;  %v4913_v56 = vpack.c.bf16 %v2009_v2, %v2000_v58  ;;  %v2013_v58 = vld [vmem:[#allocation16 + $0x108] sm:$0x7] }
 0x6ce   :  { %v5926_v59 = vpop.permute.xlu0 %653 }
 0x6cf   :  { %4889 = vmatpush1.bf16.msra.mxu1 %v4888_v37  ;;  %4881 = vmatpush1.bf16.msra.mxu0 %v4880_v38  ;;  %v1993_v37 = vld [vmem:[#allocation16 + $0x68] sm:$0xff] }
 0x6d0   :  { %4890 = vmatprep.subr.bf16.mxu0 %v5362_v16  ;;  %4897 = vmatprep.subr.bf16.mxu1 %v4896_v49  ;;  %v2001_v38 = vld [vmem:[#allocation16 + $0xa8] sm:$0xff]  ;;  %v2003_v49 = vld [vmem:[#allocation16 + $0xb8] sm:$0xff]  ;;  %v4918_v55 = vpack.c.bf16 %v1993_v37, %v1984_v34  ;;  %v2014_v34 = vld [vmem:[#allocation16 + $0x110] sm:$0x7] }
 0x6d2   :  { %4600 = vmatmul.mubr.msk.f32.vlgmr.msra.gmra.mrb[14].mxu0 %vm7095_vm0, %v5914_v23  ;;  %4601 = vmatmul.mubr.msk.f32.vlgmr.msra.gmra.mrb[14].mxu1 %vm7095_vm0, %v5914_v23  ;;  %v5938_v12 = vpop.permute.xlu0 %659 }
 0x6d3   :  { %4899 = vmatpush1.bf16.msra.mxu1 %v4898_v63  ;;  %4892 = vmatpush3.bf16.msra.mxu0 %v4891_v0  ;;  %v4910_v63 = vpack.c.bf16 %v2010_v60, %v2001_v38  ;;  %v4920_v0 = vpack.c.bf16 %v2012_v51, %v2003_v49  ;;  %v666_v60 = vsel %vm665_vm8, %v5789_v39, %v5876_v20  ;;  %v2004_v49 = vld [vmem:[#allocation16 + $0xc0] sm:$0xff] }
 0x6d4   :  { %4893 = vmatprep.subr.bf16.mxu0 %v5362_v16  ;;  %4902 = vmatprep.subr.msk.bf16.mxu1 %vm5929_vm6, %v4900_v4  ;;  %v2011_v4 = vld [vmem:[#allocation16 + $0xf8] sm:$0x7]  ;;  %v668_v2 = vsel %vm667_vm9, %v666_v60, %v5889_v33 }
 0x6d5   :  { %4738 = vmatprep.mubr.msk.f32.mxu0 %vm5363_vm1, %v5364_v19  ;;  %2112 = vmatprep.mubr.f32.mxu1 %v5364_v19 }
 0x6d6   :  { %v5950_v52 = vpop.permute.xlu0 %771 }
 0x6d7   :  { %4905 = vmatpush1.bf16.msk.msra.mxu1 %vm5929_vm6, %v4903_v26  ;;  %4895 = vmatpush3.bf16.msra.mxu0 %v4894_v28  ;;  %v774_v8 = vsel %vm665_vm8, %v5950_v52, %v5789_v39  ;;  %v871_v10 = vsel %vm665_vm8, %v5952_v5, %v5950_v52  ;;  %v4923_v26 = vpack.c.bf16 %v2011_v4, %v2002_v3  ;;  %v1986_v28 = vld [vmem:[#allocation16 + $0x30] sm:$0xff] }
 0x6d8   :  { %4907 = vmatprep.subr.bf16.mxu0 %v4906_v31  ;;  %4917 = vmatprep.subr.bf16.mxu1 %v4916_v32  ;;  %v4926_v31 = vpack.c.bf16 %v1996_v7, %v1987_v6  ;;  %v1997_v32 = vld [vmem:[#allocation16 + $0x88] sm:$0xff]  ;;  %v775_v37 = vsel %vm667_vm9, %v774_v8, %v5876_v20  ;;  %v872_v38 = vsel %vm667_vm9, %v871_v10, %v5789_v39  ;;  %v2418_v6 = vld [vmem:[%s7085_s26 + $0x8] sm:$0xff]  ;;  %v2423_v7 = vld [vmem:[%s7085_s26 + $0x30] sm:$0xff] }
 0x6d9   :  { %v4928_v51 = vpack.c.bf16 %v1995_v29, %v1986_v28  ;;  %v873_v3 = vsel %vm669_vm10, %v872_v38, %v5876_v20  ;;  %v776_v4 = vsel %vm669_vm10, %v775_v37, %v5889_v33  ;;  %v4933_v8 = vpack.c.bf16 %v2013_v58, %v2004_v49  ;;  %v2420_v37 = vld [vmem:[%s7085_s26 + $0x18] sm:$0xff]  ;;  %v2425_v38 = vld [vmem:[%s7085_s26 + $0x40] sm:$0xff]  ;;  %v2419_v58 = vld [vmem:[%s7085_s26 + $0x10] sm:$0xff] }
 0x6da   :  { %4739 = vmatmul.mubr.msk.f32.vlgmr.msra.gmra.mrb[16].mxu0 %vm7095_vm0, %v5914_v23  ;;  %4605 = vmatmul.mubr.msk.f32.vlgmr.msra.gmra.mrb[16].mxu1 %vm2018_vm7, %v5874_v17  ;;  %v2005_v23 = vld [vmem:[#allocation16 + $0xc8] sm:$0xff]  ;;  %v777_v28 = vsel %vm671_vm11, %v776_v4, %v5878_v21  ;;  %v874_v29 = vsel %vm671_vm11, %v873_v3, %v5889_v33  ;;  %v881_v4 = vsel %vm7097_vm15, %v5910_v9, %v5902_v1  ;;  %vm7099_vm0 = vcmask 424960  }
 0x6db   :  { %4909 = vmatpush1.bf16.msra.mxu0 %v4908_v53  ;;  %4919 = vmatpush1.bf16.msra.mxu1 %v4918_v55  ;;  %v4937_v53 = vpack.c.bf16 %v1997_v32, %v1988_v30  ;;  %v4930_v55 = vpack.c.bf16 %v2014_v34, %v2005_v23  ;;  %v6010_v30 = vpack.c.bf16 %v2423_v7, %v2418_v6  ;;  %v2421_v32 = vld [vmem:[%s7085_s26 + $0x20] sm:$0xff]  ;;  %v2426_v23 = vld [vmem:[%s7085_s26 + $0x48] sm:$0xff] }
 0x6dc   :  { %4912 = vmatprep.subr.msk.bf16.mxu0 %vm5929_vm6, %v4910_v63  ;;  %4922 = vmatprep.subr.msk.bf16.mxu1 %vm5929_vm6, %v4920_v0  ;;  %v2006_v63 = vld [vmem:[#allocation16 + $0xd0] sm:$0xff]  ;;  %v2015_v0 = vld [vmem:[#allocation16 + $0x118] sm:$0x7]  ;;  %v778_v60 = vsel %vm673_vm12, %v777_v28, %v5897_v50  ;;  %v875_v49 = vsel %vm673_vm12, %v874_v29, %v5878_v21  ;;  %v6071_v6 = vpack.c.bf16 %v2424_v62, %v2419_v58 }
 0x6dd   :  { %2183 = vmatprep.mubr.f32.mxu0 %v5364_v19  ;;  %2254 = vmatprep.mubr.f32.mxu1 %v5364_v19  ;;  %v4940_v10 = vpack.c.bf16 %v2015_v0, %v2006_v63  ;;  %v6056_v0 = vpack.c.bf16 %v2425_v38, %v2420_v37  ;;  %v876_v3 = vsel %vm675_vm13, %v875_v49, %v5897_v50 }
 0x6de   :  { %v882_v29 = vsel %vm544_vm4, %v881_v4, %v5918_v35 }
 0x6df   :  { %4915 = vmatpush1.bf16.msk.msra.mxu0 %vm5929_vm6, %v4913_v56  ;;  %4925 = vmatpush1.bf16.msk.msra.mxu1 %vm5929_vm6, %v4923_v26  ;;  %v2417_v56 = vld [vmem:[%s7085_s26] sm:$0xff]  ;;  %v670_v26 = vsel %vm669_vm10, %v668_v2, %v5878_v21  ;;  %v779_v2 = vsel %vm675_vm13, %v778_v60, %v5880_v25 }
 0x6e0   :  { %4927 = vmatprep.subr.bf16.mxu0 %v4926_v31  ;;  %4936 = vmatprep.subr.bf16.mxu1 %v5362_v16  ;;  %v2422_v31 = vld [vmem:[%s7085_s26 + $0x28] sm:$0xff]  ;;  %v672_v34 = vsel %vm671_vm11, %v670_v26, %v5897_v50  ;;  %v784_v26 = vsel %vm7097_vm15, %v5902_v1, %v5918_v35 }
 0x6e2   :  { %4608 = vmatmul.mubr.msk.f32.vlgmr.msra.gmra.mrb[18].mxu0 %vm2018_vm7, %v5874_v17  ;;  %4611 = vmatmul.mubr.msk.f32.vlgmr.msra.gmra.mrb[18].mxu1 %vm2018_vm7, %v5874_v17 }
 0x6e3   :  { %4929 = vmatpush1.bf16.msra.mxu0 %v4928_v51  ;;  %4938 = vmatpush3.bf16.msra.mxu1 %v4937_v53  ;;  %v6040_v51 = vpack.c.bf16 %v2422_v31, %v2417_v56  ;;  %v6042_v53 = vpack.c.bf16 %v2426_v23, %v2421_v32  ;;  %v785_v23 = vsel %vm544_vm4, %v784_v26, %v5912_v11 }
 0x6e4   :  { %4932 = vmatprep.subr.msk.bf16.mxu0 %vm5929_vm6, %v4930_v55  ;;  %4939 = vmatprep.subr.bf16.mxu1 %v5362_v16  ;;  %v674_v55 = vsel %vm673_vm12, %v672_v34, %v5880_v25 }
 0x6e5   :  { %2325 = vmatprep.mubr.f32.mxu0 %v5364_v19  ;;  %4749 = vmatprep.mubr.msk.f32.mxu1 %vm5363_vm1, %v5364_v19  ;;  %v676_v63 = vsel %vm675_vm13, %v674_v55, %v5908_v61 }
 0x6e6   :  { %v678_v7 = vsel %vm7101_vm14, %v676_v63, %v5891_v36 }
 0x6e7   :  { %4935 = vmatpush1.bf16.msk.msra.mxu0 %vm5929_vm6, %v4933_v8  ;;  %4942 = vmatpush3.bf16.msk.msra.mxu1 %vm5929_vm6, %v4940_v10  ;;  %v686_v8 = vsel %vm7097_vm15, %v5918_v35, %v5912_v11  ;;  %v877_v10 = vsel %vm7101_vm14, %v876_v3, %v5880_v25  ;;  %v680_v28 = vsel %vm679_vm2, %v678_v7, %v5910_v9  ;;  %vm688_vm6 = vcmask 228352  }
 0x6e8   :  { %4944 = vmatprep.subr.bf16.mxu0 %v6010_v30  ;;  %4951 = vmatprep.subr.bf16.mxu1 %v5362_v16  ;;  %v687_v56 = vsel %vm544_vm4, %v686_v8, %v5926_v59  ;;  %v878_v32 = vsel %vm679_vm2, %v877_v10, %v5908_v61  ;;  %v682_v37 = vsel %vm681_vm3, %v680_v28, %v5902_v1 }
 0x6e9   :  { %v689_v34 = vsel %vm688_vm6, %v687_v56, %v5922_v54  ;;  %v883_v38 = vsel %vm688_vm6, %v882_v29, %v5912_v11  ;;  %v684_v49 = vsel %vm7100_vm5, %v682_v37, %v5918_v35  ;;  %v786_v55 = vsel %vm688_vm6, %v785_v23, %v5926_v59 }
 0x6ea   :  { %4614 = vmatmul.mubr.msk.f32.vlgmr.msra.gmra.mrb[20].mxu0 %vm2018_vm7, %v5874_v17  ;;  %4750 = vmatmul.mubr.msk.f32.vlgmr.msra.gmra.mrb[20].mxu1 %vm2018_vm7, %v5874_v17  ;;  %v780_v17 = vsel %vm7101_vm14, %v779_v2, %v5908_v61  ;;  %vm7098_vm7 = vcmask 326656   ;;  %v879_v62 = vsel %vm681_vm3, %v878_v32, %v5891_v36  ;;  %v694_v2 = vmul.f32 %v684_v49, %v5791_v40 }
 0x6eb   :  { %4946 = vmatpush1.bf16.msra.mxu0 %v6040_v51  ;;  %4953 = vmatpush3.bf16.msra.mxu1 %v6042_v53  ;;  %v781_v31 = vsel %vm679_vm2, %v780_v17, %v5891_v36  ;;  %v691_v60 = vsel %vm7098_vm7, %v689_v34, %v5938_v12  ;;  %v884_v63 = vsel %vm7098_vm7, %v883_v38, %v5926_v59 }
 0x6ec   :  { %2491 = vmatprep.mubr.f32.mxu0 %v5364_v19  ;;  %4756 = vmatprep.mubr.msk.f32.mxu1 %vm5363_vm1, %v5364_v19  ;;  %v782_v58 = vsel %vm681_vm3, %v781_v31, %v5910_v9  ;;  %v787_v7 = vsel %vm7098_vm7, %v786_v55, %v5922_v54  ;;  %v885_v10 = vsel %vm7099_vm0, %v884_v63, %v5922_v54 }
 0x6ed   :  { %4948 = vmatprep.subr.bf16.mxu0 %v6056_v0  ;;  %4959 = vmatprep.subr.bf16.mxu1 %v6056_v0  ;;  %v783_v4 = vsel %vm7100_vm5, %v782_v58, %v5902_v1  ;;  %v788_v17 = vsel %vm7099_vm0, %v787_v7, %v5938_v12 }
 0x6ee   :  { %4617 = vmatmul.mubr.msk.f32.vlgmr.msra.gmra.mrb[22].mxu0 %vm544_vm4, %v5711_v41  ;;  %4757 = vmatmul.mubr.msk.f32.vlgmr.msra.gmra.mrb[22].mxu1 %vm544_vm4, %v5711_v41 }
 0x6ef   :  { %4950 = vmatpush1.bf16.msra.mxu0 %v6071_v6  ;;  %4961 = vmatpush1.bf16.msra.mxu1 %v6071_v6 }
 0x6f0   :  { %2562 = vmatprep.mubr.f32.mxu0 %v5364_v19  ;;  %2844 = vmatprep.mubr.f32.mxu1 %v5364_v19 }
 0x6f1   :  { %4955 = vmatprep.subr.bf16.mxu0 %v6010_v30  ;;  %4966 = vmatprep.subr.bf16.mxu1 %v6010_v30 }
 0x6f2   :  { %4618 = vmatmul.mubr.msk.f32.vlgmr.msra.gmra.mrb[24].mxu0 %vm544_vm4, %v5711_v41  ;;  %4621 = vmatmul.mubr.msk.f32.vlgmr.msra.gmra.mrb[24].mxu1 %vm544_vm4, %v5840_v57  ;;  %v693_v41 = vsel %vm7099_vm0, %v691_v60, %v5940_v22  ;;  %v880_v22 = vsel %vm7100_vm5, %v879_v62, %v5910_v9 }
 0x6f3   :  { %4957 = vmatpush1.bf16.msra.mxu0 %v6040_v51  ;;  %4968 = vmatpush1.bf16.msra.mxu1 %v6040_v51  ;;  %v695_v56 = vmul.f32 %v693_v41, %v5793_v42  ;;  %v886_v29 = vmul.f32 %v880_v22, %v5795_v43  ;;  %v887_v42 = vmul.f32 %v885_v10, %v5797_v44 }
 0x6f4   :  { %2773 = vmatprep.mubr.f32.mxu0 %v5364_v19  ;;  %3013 = vmatprep.mubr.f32.mxu1 %v5364_v19 }
 0x6f5   :  { %v766_v3 = vpop.f32.mrb[4].mxu0  ;;  %4962 = vmatprep.subr.bf16.mxu0 %v5362_v16  ;;  %4973 = vmatprep.subr.bf16.mxu1 %v5362_v16 }
 0x6f6   :  { %v789_v8 = vmul.f32 %v783_v4, %v766_v3  ;;  %4620 = vmatmul.mubr.msk.f32.vlgmr.msra.gmra.mrb[26].mxu0 %vm544_vm4, %v5840_v57  ;;  %4623 = vmatmul.mubr.msk.f32.vlgmr.msra.gmra.mrb[26].mxu1 %vm544_vm4, %v5755_v15  ;;  %v768_v40 = vpop.f32.mrb[5].mxu0 }
 0x6f7   :  { %v790_v26 = vmul.f32 %v788_v17, %v768_v40  ;;  %4964 = vmatpush3.bf16.msra.mxu0 %v6042_v53  ;;  %4975 = vmatpush3.bf16.msra.mxu1 %v6042_v53  ;;  %v1075_v17 = vsel %vm7097_vm15, %v5908_v61, %v5891_v36 }
 0x6f8   :  { %v791_v28 = vadd.f32 %v789_v8, %v694_v2  ;;  %4763 = vmatprep.mubr.msk.f32.mxu0 %vm5363_vm1, %v5364_v19  ;;  %4770 = vmatprep.mubr.msk.f32.mxu1 %vm5363_vm1, %v5364_v19 }
 0x6f9   :  { %v792_v12 = vadd.f32 %v790_v26, %v695_v56  ;;  %4970 = vmatprep.subr.bf16.mxu0 %v6056_v0  ;;  %4981 = vmatprep.subr.bf16.mxu1 %v6056_v0  ;;  %v978_v56 = vsel %vm7097_vm15, %v5891_v36, %v5910_v9  ;;  %v1076_v26 = vsel %vm544_vm4, %v1075_v17, %v5910_v9 }
 0x6fa   :  { %4764 = vmatmul.mubr.msk.f32.vlgmr.msra.gmra.mrb[28].mxu0 %vm544_vm4, %v5840_v57  ;;  %4771 = vmatmul.mubr.msk.f32.vlgmr.msra.gmra.mrb[28].mxu1 %vm544_vm4, %v5755_v15  ;;  %v6172_v54 = vadd.f32 %v886_v29, %v791_v28 }
 0x6fb   :  { %4972 = vmatpush1.bf16.msra.mxu0 %v6071_v6  ;;  %4983 = vmatpush1.bf16.msra.mxu1 %v6071_v6  ;;  %v6176_v43 = vadd.f32 %v887_v42, %v792_v12  ;;  %v1269_v12 = vsel %vm7097_vm15, %v5897_v50, %v5880_v25  ;;  %v1172_v42 = vsel %vm7097_vm15, %v5880_v25, %v5908_v61 }
 0x6fc   :  { %3084 = vmatprep.mubr.f32.mxu0 %v5364_v19  ;;  %3324 = vmatprep.mubr.f32.mxu1 %v5364_v19 }
 0x6fd   :  { %4977 = vmatprep.subr.bf16.mxu0 %v6010_v30  ;;  %4988 = vmatprep.subr.bf16.mxu1 %v6010_v30 }
 0x6fe   :  { %4624 = vmatmul.mubr.msk.f32.vlgmr.msra.gmra.mrb[30].mxu0 %vm544_vm4, %v5755_v15  ;;  %4627 = vmatmul.mubr.msk.f32.vlgmr.msra.gmra.mrb[30].mxu1 %vm544_vm4, %v5882_v27  ;;  %v966_v15 = vpop.permute.xlu0 %965 }
 0x6ff   :  { %4979 = vmatpush1.bf16.msra.mxu0 %v6040_v51  ;;  %4990 = vmatpush1.bf16.msra.mxu1 %v6040_v51  ;;  %v968_v44 = vsel %vm665_vm8, %v966_v15, %v5952_v5 }
 0x700   :  { %3253 = vmatprep.mubr.f32.mxu0 %v5364_v19  ;;  %3557 = vmatprep.mubr.f32.mxu1 %v5364_v19 }
 0x701   :  { %4984 = vmatprep.subr.bf16.mxu0 %v5362_v16  ;;  %4995 = vmatprep.subr.bf16.mxu1 %v5362_v16 }
 0x702   :  { %4626 = vmatmul.mubr.msk.f32.vlgmr.msra.gmra.mrb[32].mxu0 %vm544_vm4, %v5882_v27  ;;  %4629 = vmatmul.mubr.msk.f32.vlgmr.msra.gmra.mrb[32].mxu1 %vm544_vm4, %v5762_v18 }
 0x703   :  { %4986 = vmatpush3.bf16.msra.mxu0 %v6042_v53  ;;  %4997 = vmatpush3.bf16.msra.mxu1 %v6042_v53 }
 0x704   :  { %4777 = vmatprep.mubr.msk.f32.mxu0 %vm5363_vm1, %v5364_v19  ;;  %4784 = vmatprep.mubr.msk.f32.mxu1 %vm5363_vm1, %v5364_v19 }
 0x705   :  { %4992 = vmatprep.subr.bf16.mxu0 %v6056_v0  ;;  %5003 = vmatprep.subr.bf16.mxu1 %v6056_v0 }
 0x706   :  { %4778 = vmatmul.mubr.msk.f32.vlgmr.msra.gmra.mrb[34].mxu0 %vm544_vm4, %v5882_v27  ;;  %4785 = vmatmul.mubr.msk.f32.vlgmr.msra.gmra.mrb[34].mxu1 %vm544_vm4, %v5762_v18 }
 0x707   :  { %4994 = vmatpush1.bf16.msra.mxu0 %v6071_v6  ;;  %5005 = vmatpush1.bf16.msra.mxu1 %v6071_v6 }
 0x708   :  { %3628 = vmatprep.mubr.f32.mxu0 %v5364_v19  ;;  %3881 = vmatprep.mubr.f32.mxu1 %v5364_v19 }
 0x709   :  { %4999 = vmatprep.subr.bf16.mxu0 %v6010_v30  ;;  %5010 = vmatprep.subr.bf16.mxu1 %v6010_v30 }
 0x70a   :  { %4630 = vmatmul.mubr.msk.f32.vlgmr.msra.gmra.mrb[36].mxu0 %vm544_vm4, %v5762_v18  ;;  %4633 = vmatmul.mubr.msk.f32.vlgmr.msra.gmra.mrb[36].mxu1 %vm544_vm4, %v5870_v13  ;;  %v1063_v18 = vpop.permute.xlu1 %1062 }
 0x70b   :  { %5001 = vmatpush1.bf16.msra.mxu0 %v6040_v51  ;;  %5012 = vmatpush1.bf16.msra.mxu1 %v6040_v51  ;;  %v1065_v57 = vsel %vm665_vm8, %v1063_v18, %v966_v15 }
 0x70c   :  { %3810 = vmatprep.mubr.f32.mxu0 %v5364_v19  ;;  %4050 = vmatprep.mubr.f32.mxu1 %v5364_v19  ;;  %v1066_v27 = vsel %vm667_vm9, %v1065_v57, %v5952_v5 }
 0x70d   :  { %5006 = vmatprep.subr.bf16.mxu0 %v5362_v16  ;;  %5017 = vmatprep.subr.bf16.mxu1 %v5362_v16 }
 0x70e   :  { %4632 = vmatmul.mubr.msk.f32.vlgmr.msra.gmra.mrb[38].mxu0 %vm544_vm4, %v5870_v13  ;;  %4635 = vmatmul.mubr.msk.f32.vlgmr.msra.gmra.mrb[38].mxu1 %vm544_vm4, %v5772_v24 }
 0x70f   :  { %5008 = vmatpush3.bf16.msra.mxu0 %v6042_v53  ;;  %5019 = vmatpush3.bf16.msra.mxu1 %v6042_v53 }
 0x710   :  { %4791 = vmatprep.mubr.msk.f32.mxu0 %vm5363_vm1, %v5364_v19  ;;  %4798 = vmatprep.mubr.msk.f32.mxu1 %vm5363_vm1, %v5364_v19 }
 0x711   :  { %5014 = vmatprep.subr.bf16.mxu0 %v6056_v0  ;;  %5025 = vmatprep.subr.bf16.mxu1 %v6056_v0 }
 0x712   :  { %4792 = vmatmul.mubr.msk.f32.vlgmr.msra.gmra.mrb[40].mxu0 %vm544_vm4, %v5870_v13  ;;  %4799 = vmatmul.mubr.msk.f32.vlgmr.msra.gmra.mrb[40].mxu1 %vm544_vm4, %v5772_v24  ;;  %v969_v13 = vsel %vm667_vm9, %v968_v44, %v5950_v52  ;;  %v1077_v44 = vsel %vm688_vm6, %v1076_v26, %v5902_v1 }
 0x713   :  { %5016 = vmatpush1.bf16.msra.mxu0 %v6071_v6  ;;  %5027 = vmatpush1.bf16.msra.mxu1 %v6071_v6 }
 0x714   :  { %4121 = vmatprep.mubr.f32.mxu0 %v5364_v19  ;;  %4361 = vmatprep.mubr.f32.mxu1 %v5364_v19 }
 0x715   :  { %5021 = vmatprep.subr.bf16.mxu0 %v6010_v30 }
 0x716   :  { %4636 = vmatmul.mubr.msk.f32.vlgmr.msra.gmra.mrb[42].mxu0 %vm544_vm4, %v5772_v24  ;;  %4639 = vmatmul.mubr.msk.f32.vlgmr.msra.gmra.mrb[42].mxu1 %vm544_vm4, %v5872_v14  ;;  %v1160_v24 = vpop.permute.xlu0 %1159 }
 0x717   :  { %5023 = vmatpush1.bf16.msra.mxu0 %v6040_v51  ;;  %4290 = vmatprep.mubr.f32.mxu0 %v5364_v19  ;;  %v970_v51 = vsel %vm669_vm10, %v969_v13, %v5789_v39 }
 0x718   :  { %5028 = vmatprep.subr.bf16.mxu0 %v5362_v16  ;;  %v1257_v16 = vpop.permute.xlu1 %1256  ;;  %v971_v23 = vsel %vm671_vm11, %v970_v51, %v5876_v20 }
 0x719   :  { %v1259_v30 = vsel %vm665_vm8, %v1257_v16, %v1160_v24  ;;  %v972_v49 = vsel %vm673_vm12, %v971_v23, %v5889_v33 }
 0x71a   :  { %4638 = vmatmul.mubr.msk.f32.vlgmr.msra.gmra.mrb[44].mxu0 %vm544_vm4, %v5872_v14  ;;  %v1260_v6 = vsel %vm667_vm9, %v1259_v30, %v1063_v18  ;;  %v973_v63 = vsel %vm675_vm13, %v972_v49, %v5878_v21  ;;  %v1078_v30 = vsel %vm7098_vm7, %v1077_v44, %v5918_v35 }
 0x71b   :  { %5030 = vmatpush3.bf16.msra.mxu0 %v6042_v53  ;;  %4805 = vmatprep.mubr.msk.f32.mxu0 %vm5363_vm1, %v5364_v19  ;;  %v1162_v19 = vsel %vm665_vm8, %v1160_v24, %v1063_v18  ;;  %v1067_v53 = vsel %vm669_vm10, %v1066_v27, %v5950_v52  ;;  %v1261_v37 = vsel %vm669_vm10, %v1260_v6, %v966_v15  ;;  %vm7096_vm1 = vcmask 523264  }
 0x71c   :  { %v1163_v0 = vsel %vm667_vm9, %v1162_v19, %v966_v15  ;;  %v1068_v32 = vsel %vm671_vm11, %v1067_v53, %v5789_v39  ;;  %v1262_v58 = vsel %vm671_vm11, %v1261_v37, %v5952_v5  ;;  %v974_v7 = vsel %vm7101_vm14, %v973_v63, %v5897_v50 }
 0x71d   :  { %v1164_v34 = vsel %vm669_vm10, %v1163_v0, %v5952_v5  ;;  %v1069_v60 = vsel %vm673_vm12, %v1068_v32, %v5876_v20  ;;  %v1263_v3 = vsel %vm673_vm12, %v1262_v58, %v5950_v52  ;;  %v975_v28 = vsel %vm679_vm2, %v974_v7, %v5880_v25 }
 0x71e   :  { %4806 = vmatmul.mubr.msk.f32.vlgmr.msra.gmra.mrb[46].mxu0 %vm544_vm4, %v5872_v14  ;;  %v1354_v14 = vpop.permute.xlu0 %1353  ;;  %v1165_v55 = vsel %vm671_vm11, %v1164_v34, %v5950_v52  ;;  %v1070_v41 = vsel %vm675_vm13, %v1069_v60, %v5889_v33  ;;  %v1264_v8 = vsel %vm675_vm13, %v1263_v3, %v5789_v39  ;;  %v976_v13 = vsel %vm681_vm3, %v975_v28, %v5908_v61 }
 0x71f   :  { %v1356_v31 = vsel %vm665_vm8, %v1354_v14, %v1257_v16  ;;  %v1166_v2 = vsel %vm673_vm12, %v1165_v55, %v5789_v39  ;;  %v1071_v22 = vsel %vm7101_vm14, %v1070_v41, %v5878_v21  ;;  %v1366_v16 = vsel %vm7097_vm15, %v5878_v21, %v5897_v50 }
 0x720   :  { %v1357_v38 = vsel %vm667_vm9, %v1356_v31, %v1160_v24  ;;  %v1167_v40 = vsel %vm675_vm13, %v1166_v2, %v5876_v20  ;;  %v1072_v29 = vsel %vm679_vm2, %v1071_v22, %v5897_v50  ;;  %v979_v24 = vsel %vm544_vm4, %v978_v56, %v5902_v1 }
 0x721   :  { %v1358_v62 = vsel %vm669_vm10, %v1357_v38, %v1063_v18  ;;  %v1270_v18 = vsel %vm544_vm4, %v1269_v12, %v5908_v61  ;;  %v980_v27 = vsel %vm688_vm6, %v979_v24, %v5918_v35  ;;  %v1073_v19 = vsel %vm681_vm3, %v1072_v29, %v5880_v25 }
 0x722   :  { %v1359_v4 = vsel %vm671_vm11, %v1358_v62, %v966_v15  ;;  %v1265_v15 = vsel %vm7101_vm14, %v1264_v8, %v5876_v20  ;;  %v1271_v53 = vsel %vm688_vm6, %v1270_v18, %v5891_v36  ;;  %v1367_v32 = vsel %vm544_vm4, %v1366_v16, %v5880_v25 }
 0x723   :  { %v1360_v10 = vsel %vm673_vm12, %v1359_v4, %v5952_v5  ;;  %v1168_v5 = vsel %vm7101_vm14, %v1167_v40, %v5889_v33  ;;  %v1266_v51 = vsel %vm679_vm2, %v1265_v15, %v5889_v33  ;;  %v1272_v31 = vsel %vm7098_vm7, %v1271_v53, %v5910_v9 }
 0x724   :  { %v1361_v57 = vsel %vm675_vm13, %v1360_v10, %v5950_v52  ;;  %v1169_v14 = vsel %vm679_vm2, %v1168_v5, %v5878_v21  ;;  %v1173_v52 = vsel %vm544_vm4, %v1172_v42, %v5891_v36  ;;  %v977_v34 = vsel %vm7100_vm5, %v976_v13, %v5891_v36  ;;  %v1574_v13 = vld [vmem:[%s7083_s24] sm:$0xff] }
 0x725   :  { %v1174_v0 = vsel %vm688_vm6, %v1173_v52, %v5910_v9  ;;  %v1362_v6 = vsel %vm7101_vm14, %v1361_v57, %v5789_v39  ;;  %v981_v37 = vsel %vm7098_vm7, %v980_v27, %v5912_v11  ;;  %v1074_v38 = vsel %vm7100_vm5, %v1073_v19, %v5908_v61 }
 0x726   :  { %v1079_v60 = vsel %vm7099_vm0, %v1078_v30, %v5912_v11  ;;  %v982_v55 = vsel %vm7099_vm0, %v981_v37, %v5926_v59  ;;  %v1170_v58 = vsel %vm681_vm3, %v1169_v14, %v5897_v50  ;;  %v1267_v62 = vsel %vm681_vm3, %v1266_v51, %v5878_v21 }
 0x727   :  { %v1363_v41 = vsel %vm679_vm2, %v1362_v6, %v5876_v20  ;;  %v1368_v2 = vsel %vm688_vm6, %v1367_v32, %v5908_v61  ;;  %v1080_v3 = vmul.f32 %v1074_v38, %v5799_v45  ;;  %v1175_v59 = vsel %vm7098_vm7, %v1174_v0, %v5902_v1 }
 0x728   :  { %v1273_v4 = vsel %vm7099_vm0, %v1272_v31, %v5902_v1  ;;  %v1171_v8 = vsel %vm7100_vm5, %v1170_v58, %v5880_v25  ;;  %v1081_v20 = vmul.f32 %v1079_v60, %v5801_v46  ;;  %v1268_v61 = vsel %vm7100_vm5, %v1267_v62, %v5897_v50 }
 0x729   :  { %v1176_v17 = vsel %vm7099_vm0, %v1175_v59, %v5918_v35  ;;  %v1364_v1 = vsel %vm681_vm3, %v1363_v41, %v5889_v33  ;;  %v1274_v26 = vmul.f32 %v1268_v61, %v5803_v47  ;;  %v1275_v50 = vmul.f32 %v1273_v4, %v5805_v48 }
 0x72a   :  { %v1365_v46 = vsel %vm7100_vm5, %v1364_v1, %v5878_v21  ;;  %v1369_v29 = vsel %vm7098_vm7, %v1368_v2, %v5891_v36  ;;  %v1578_v21 = vlaneseq }
 0x72b   :  { %v1370_v33 = vsel %vm7099_vm0, %v1369_v29, %v5910_v9 }
 0x72c   :  { %v1579_v36 = vshrl.u32 %v1578_v21, 7 }
 0x72e   :  { %v1580_v16 = vsub.s32 0, %v1579_v36  ;;  %v1584_v9 = vsub.s32 1, %v1579_v36  ;;  %v1588_v0 = vsub.s32 2, %v1579_v36  ;;  %v1596_v6 = vsub.s32 4, %v1579_v36 }
 0x72f   :  { %v1592_v32 = vsub.s32 3, %v1579_v36  ;;  %v1608_v4 = vsub.s32 7, %v1579_v36 }
 0x730   :  { %v1581_v52 = vrot.slane %v1574_v13, %v1580_v16  ;;  %v1585_v51 = vrot.slane %v1574_v13, %v1584_v9  ;;  %v1597_v58 = vrot.slane %v1574_v13, %v1596_v6 }
 0x731   :  { %v1593_v62 = vrot.slane %v1574_v13, %v1592_v32 }
 0x78a   :  { %v960_v23 = vpop.f32.mrb[6].mxu0 }
 0x78b   :  { %v983_v39 = vmul.f32 %v977_v34, %v960_v23  ;;  %v962_v49 = vpop.f32.mrb[7].mxu0  ;;  %v1600_v23 = vsub.s32 5, %v1579_v36 }
 0x78c   :  { %v984_v63 = vmul.f32 %v982_v55, %v962_v49  ;;  %v1589_v55 = vrot.slane %v1574_v13, %v1588_v0 }
 0x78d   :  { %v985_v11 = vadd.f32 %v983_v39, %v6172_v54 }
 0x78e   :  { %v986_v7 = vadd.f32 %v984_v63, %v6176_v43  ;;  %v1154_v22 = vpop.f32.mrb[8].mxu0  ;;  %v1601_v63 = vrot.slane %v1574_v13, %v1600_v23 }
 0x78f   :  { %v1082_v54 = vadd.f32 %v1080_v3, %v985_v11  ;;  %v1177_v40 = vmul.f32 %v1171_v8, %v1154_v22  ;;  %v1156_v45 = vpop.f32.mrb[9].mxu0  ;;  %v1604_v11 = vsub.s32 6, %v1579_v36 }
 0x790   :  { %v1083_v10 = vadd.f32 %v1081_v20, %v986_v7  ;;  %v1178_v43 = vmul.f32 %v1176_v17, %v1156_v45 }
 0x791   :  { %v1179_v56 = vadd.f32 %v1177_v40, %v1082_v54  ;;  %v1605_v17 = vrot.slane %v1574_v13, %v1604_v11 }
 0x792   :  { %v1180_v25 = vadd.f32 %v1178_v43, %v1083_v10  ;;  %v1348_v28 = vpop.f32.mrb[10].mxu0  ;;  %v1609_v10 = vrot.slane %v1574_v13, %v1608_v4  ;;  %v4597_v43 = vld [vmem:[%s7083_s24 + $0x8] ss:$0 sm:$0xff]  ;;  %s5390_s24 = smov 88  }
 0x793   :  { %v1276_v12 = vadd.f32 %v1274_v26, %v1179_v56  ;;  %v1371_v35 = vmul.f32 %v1365_v46, %v1348_v28  ;;  %v1350_v5 = vpop.f32.mrb[11].mxu0 }
 0x794   :  { %v1277_v42 = vadd.f32 %v1275_v50, %v1180_v25  ;;  %v1372_v15 = vmul.f32 %v1370_v33, %v1350_v5 }
 0x795   :  { %v1373_v18 = vadd.f32 %v1371_v35, %v1276_v12 }
 0x796   :  { %v1374_v47 = vadd.f32 %v1372_v15, %v1277_v42 }
 0x797   :  { %1375 = vst [vmem:[#allocation17] sm:$0xff] %v1373_v18 }
 0x798   :  { %1377 = vst.msk [vmem:[#allocation17 + $0x8] sm:$0xff] %vm7096_vm1, %v1374_v47 }
 0x79d   :  { %v1692_v24 = vpop.f32.mrb[12].mxu0  ;;  %v1763_v48 = vpop.f32.mrb[12].mxu1 }
 0x79e   :  { %v1694_v44 = vpop.f32.mrb[13].mxu0  ;;  %v1765_v57 = vpop.f32.mrb[13].mxu1  ;;  %v1693_v53 = vadd.f32 %v1692_v24, %v1581_v52  ;;  %v1764_v41 = vadd.f32 %v1763_v48, %v1589_v55 }
 0x79f   :  { %v1695_v31 = vadd.f32 %v1694_v44, %v1585_v51  ;;  %v1766_v3 = vadd.f32 %v1765_v57, %v1593_v62 }
 0x7a5   :  { %v1834_v27 = vpop.f32.mrb[14].mxu0  ;;  %v1905_v19 = vpop.f32.mrb[14].mxu1 }
 0x7a6   :  { %v1836_v30 = vpop.f32.mrb[15].mxu0  ;;  %v1907_v14 = vpop.f32.mrb[15].mxu1  ;;  %v1835_v2 = vadd.f32 %v1834_v27, %v1597_v58  ;;  %v1906_v25 = vadd.f32 %v1905_v19, %v1605_v17 }
 0x7a7   :  { %v1837_v59 = vadd.f32 %v1836_v30, %v1601_v63  ;;  %v1908_v46 = vadd.f32 %v1907_v14, %v1609_v10 }
 0x7ad   :  { %v1976_v34 = vpop.f32.mrb[16].mxu0  ;;  %v2114_v37 = vpop.f32.mrb[16].mxu1 }
 0x7ae   :  { %v2402_v38 = vmul.f32 %v2114_v37, %v1693_v53  ;;  %v4740_v60 = vpop.f32.mrb[17].mxu0  ;;  %v2116_v39 = vpop.f32.mrb[17].mxu1  ;;  %v1977_v28 = vadd.f32 %v4597_v43, %v1976_v34 }
 0x7af   :  { %v2403_v49 = vmul.f32 %v2116_v39, %v1695_v31 }
 0x7b5   :  { %v2185_v7 = vpop.f32.mrb[18].mxu0  ;;  %v2256_v22 = vpop.f32.mrb[18].mxu1 }
 0x7b6   :  { %v2404_v8 = vmul.f32 %v2185_v7, %v1764_v41  ;;  %v2406_v20 = vmul.f32 %v2256_v22, %v1835_v2  ;;  %v2187_v61 = vpop.f32.mrb[19].mxu0  ;;  %v2258_v54 = vpop.f32.mrb[19].mxu1 }
 0x7b7   :  { %v2405_v40 = vmul.f32 %v2187_v61, %v1766_v3  ;;  %v2407_v45 = vmul.f32 %v2258_v54, %v1837_v59 }
 0x7b8   :  { %v2412_v1 = vadd.f32 %v2406_v20, %v2403_v49 }
 0x7b9   :  { %v2411_v56 = vadd.f32 %v2405_v40, %v2402_v38  ;;  %v2413_v26 = vadd.f32 %v2407_v45, %v2404_v8 }
 0x7bd   :  { %v2327_v50 = vpop.f32.mrb[20].mxu0  ;;  %v2398_v29 = vpop.f32.mrb[20].mxu1 }
 0x7be   :  { %v2408_v12 = vmul.f32 %v2327_v50, %v1906_v25  ;;  %v2410_v35 = vmul.f32 %v2398_v29, %v1977_v28  ;;  %v2329_v5 = vpop.f32.mrb[21].mxu0  ;;  %v4751_v33 = vpop.f32.mrb[21].mxu1 }
 0x7bf   :  { %v2409_v42 = vmul.f32 %v2329_v5, %v1908_v46 }
 0x7c0   :  { %v6417_v15 = vadd.f32 %v2411_v56, %v2408_v12  ;;  %v6419_v18 = vadd.f32 %v2413_v26, %v2410_v35 }
 0x7c1   :  { %v6421_v47 = vadd.f32 %v2412_v1, %v2409_v42  ;;  %v6423_v21 = vpop.f32.mrb[22].mxu1  ;;  %v6425_v24 = vpop.f32.mrb[22].mxu0 }
 0x7c2   :  { %2643 = vrot.lane.b32.xlu0 %v6417_v15, %s5353_s9  ;;  %2640 = vrot.lane.b32.xlu1 %v6417_v15, %s5372_s14  ;;  %v4758_v48 = vpop.f32.mrb[23].mxu1  ;;  %v6431_v44 = vpop.f32.mrb[23].mxu0 }
 0x7c5   :  { %v6433_v57 = vpop.f32.mrb[24].mxu1  ;;  %v6435_v36 = vpop.f32.mrb[24].mxu0 }
 0x7c6   :  { %v6437_v16 = vpop.f32.mrb[25].mxu1  ;;  %2649 = vrot.lane.b32.xlu0 %v6417_v15, %s5358_s1  ;;  %2646 = vrot.lane.b32.xlu1 %v6417_v15, %s5375_s25  ;;  %v6443_v13 = vpop.f32.mrb[25].mxu0 }
 0x7c9   :  { %v6445_v9 = vpop.f32.mrb[26].mxu0  ;;  %v6447_v27 = vpop.f32.mrb[26].mxu1 }
 0x7ca   :  { %v6449_v19 = vpop.f32.mrb[27].mxu0  ;;  %v6451_v30 = vpop.f32.mrb[27].mxu1  ;;  %2655 = vrot.lane.b32.xlu0 %v6417_v15, %s5390_s24  ;;  %2652 = vrot.lane.b32.xlu1 %v6417_v15, %s5378_s4 }
 0x7cd   :  { %v6457_v14 = vpop.f32.mrb[28].mxu0  ;;  %v6459_v52 = vpop.f32.mrb[28].mxu1 }
 0x7ce   :  { %v4765_v51 = vpop.f32.mrb[29].mxu0  ;;  %v4772_v53 = vpop.f32.mrb[29].mxu1  ;;  %2661 = vrot.lane.b32.xlu0 %v6417_v15, %s5367_s2  ;;  %2658 = vrot.lane.b32.xlu1 %v6417_v15, %s5391_s15 }
 0x7d1   :  { %v6465_v0 = vpop.f32.mrb[30].mxu0  ;;  %v6467_v6 = vpop.f32.mrb[30].mxu1 }
 0x7d2   :  { %v6469_v31 = vpop.f32.mrb[31].mxu0  ;;  %v6471_v32 = vpop.f32.mrb[31].mxu1  ;;  %2667 = vrot.lane.b32.xlu0 %v6417_v15, %s5379_s5  ;;  %2664 = vrot.lane.b32.xlu1 %v6417_v15, %s5387_s18 }
 0x7d5   :  { %v6477_v23 = vpop.f32.mrb[32].mxu0  ;;  %v6479_v34 = vpop.f32.mrb[32].mxu1 }
 0x7d6   :  { %7133 = vst [vmem:[#allocation27_spill] sm:$0xff] %v6477_v23  ;;  %7134 = vst [vmem:[#allocation28_spill] sm:$0xff] %v6479_v34  ;;  %v6481_v37 = vpop.f32.mrb[33].mxu0  ;;  %v6483_v38 = vpop.f32.mrb[33].mxu1  ;;  %2673 = vrot.lane.b32.xlu0 %v6417_v15, %s5369_s0  ;;  %2670 = vrot.lane.b32.xlu1 %v6417_v15, %s5371_s20 }
 0x7d9   :  { %v6489_v60 = vpop.f32.mrb[34].mxu0  ;;  %v6491_v39 = vpop.f32.mrb[34].mxu1 }
 0x7da   :  { %v4779_v49 = vpop.f32.mrb[35].mxu0  ;;  %v4786_v55 = vpop.f32.mrb[35].mxu1  ;;  %2921 = vrot.lane.b32.xlu0 %v6417_v15, %s5386_s17  ;;  %2676 = vrot.lane.b32.xlu1 %v6417_v15, %s5374_s28  ;;  %s5392_s28 = smov 20  }
 0x7dd   :  { %v6497_v58 = vpop.f32.mrb[36].mxu0  ;;  %v6499_v62 = vpop.f32.mrb[36].mxu1 }
 0x7de   :  { %v6501_v63 = vpop.f32.mrb[37].mxu0  ;;  %v6503_v41 = vpop.f32.mrb[37].mxu1  ;;  %2682 = vrot.lane.b32.xlu0 %v6417_v15, %s5377_s19  ;;  %2679 = vrot.lane.b32.xlu1 %v6417_v15, %s5383_s10  ;;  %s5393_s19 = smov 76  }
 0x7e1   :  { %v6509_v2 = vpop.f32.mrb[38].mxu0  ;;  %v6511_v11 = vpop.f32.mrb[38].mxu1 }
 0x7e2   :  { %7135 = vst [vmem:[#allocation29_spill] sm:$0xff] %v6509_v2  ;;  %7136 = vst [vmem:[#allocation30_spill] sm:$0xff] %v6511_v11  ;;  %v6513_v3 = vpop.f32.mrb[39].mxu0  ;;  %v6515_v59 = vpop.f32.mrb[39].mxu1  ;;  %3402 = vrot.lane.b32.xlu0 %v6417_v15, %s5392_s28  ;;  %3161 = vrot.lane.b32.xlu1 %v6417_v15, %s5381_s29 }
 0x7e5   :  { %v6521_v4 = vpop.f32.mrb[40].mxu0  ;;  %v6523_v7 = vpop.f32.mrb[40].mxu1 }
 0x7e6   :  { %v4793_v22 = vpop.f32.mrb[41].mxu0  ;;  %v4800_v8 = vpop.f32.mrb[41].mxu1  ;;  %4485 = vrot.lane.b32.xlu0 %v6419_v18, %s5358_s1  ;;  %4460 = vrot.lane.b32.xlu1 %v6419_v18, %s5392_s28 }
 0x7e9   :  { %v6529_v20 = vpop.f32.mrb[42].mxu0  ;;  %v6531_v61 = vpop.f32.mrb[42].mxu1 }
 0x7ea   :  { %v6533_v54 = vpop.f32.mrb[43].mxu0  ;;  %v6535_v40 = vpop.f32.mrb[43].mxu1  ;;  %4441 = vrot.lane.b32.xlu0 %v6419_v18, %s5376_s13  ;;  %4445 = vrot.lane.b32.xlu1 %v6419_v18, %s5384_s8 }
 0x7eb   :  { %7137 = vst [vmem:[#allocation31_spill] sm:$0xff] %v6533_v54  ;;  %7138 = vst [vmem:[#allocation32_spill] sm:$0xff] %v6535_v40 }
 0x7ed   :  { %v6541_v45 = vpop.f32.mrb[44].mxu0 }
 0x7ee   :  { %7139 = vst [vmem:[#allocation33_spill] sm:$0xff] %v6541_v45  ;;  %v6543_v17 = vpop.f32.mrb[45].mxu0  ;;  %4454 = vrot.lane.b32.xlu0 %v6419_v18, %s5368_s23  ;;  %4464 = vrot.lane.b32.xlu1 %v6419_v18, %s5381_s29 }
 0x7ef   :  { %7140 = vst [vmem:[#allocation34_spill] sm:$0xff] %v6543_v17 }
 0x7f1   :  { %v6549_v1 = vpop.f32.mrb[46].mxu0 }
 0x7f2   :  { %7141 = vst [vmem:[#allocation35_spill] sm:$0xff] %v6549_v1  ;;  %v4807_v10 = vpop.f32.mrb[47].mxu0  ;;  %4472 = vrot.lane.b32.xlu0 %v6419_v18, %s5372_s14  ;;  %4480 = vrot.lane.b32.xlu1 %v6419_v18, %s5375_s25 }
 0x7f6   :  { %4489 = vrot.lane.b32.xlu0 %v6419_v18, %s5378_s4  ;;  %4449 = vrot.lane.b32.xlu1 %v6419_v18, %s5393_s19 }
 0x7fa   :  { %4468 = vrot.lane.b32.xlu0 %v6419_v18, %s5386_s17  ;;  %4476 = vrot.lane.b32.xlu1 %v6419_v18, %s5353_s9 }
 0x7fe   :  { %4493 = vrot.lane.b32.xlu0 %v6419_v18, %s5390_s24  ;;  %3448 = vrot.lane.b32.xlu1 %v6421_v47, %s5367_s2 }
 0x802   :  { %3419 = vrot.lane.b32.xlu0 %v6421_v47, %s5372_s14  ;;  %3404 = vrot.lane.b32.xlu1 %v6421_v47, %s5392_s28 }
 0x806   :  { %3409 = vrot.lane.b32.xlu0 %v6421_v47, %s5381_s29  ;;  %3423 = vrot.lane.b32.xlu1 %v6421_v47, %s5353_s9  ;;  %s5394_s9 = smov [#allocation17]  }
 0x80a   :  { %3431 = vrot.lane.b32.xlu0 %v6421_v47, %s5358_s1  ;;  %3435 = vrot.lane.b32.xlu1 %v6421_v47, %s5378_s4  ;;  %s4542_s1 = sshll.u32 %s5394_s9, 4  ;;  %s4543_s1 = int_to_ptr.vmem [resolvable:$true] %s4542_s1 }
 0x80b   :  { %p5293_p3 = scmp.lt.s32.totalorder %s4543_s1, %s4543_s1 }
 0x80e   :  { %3443 = vrot.lane.b32.xlu0 %v6421_v47, %s5391_s15  ;;  %3452 = vrot.lane.b32.xlu1 %v6421_v47, %s5387_s18 }
 0x812   :  { %3414 = vrot.lane.b32.xlu0 %v6421_v47, %s5386_s17  ;;  %3427 = vrot.lane.b32.xlu1 %v6421_v47, %s5375_s25 }
 0x816   :  { %3439 = vrot.lane.b32.xlu0 %v6421_v47, %s5390_s24  ;;  %3456 = vrot.lane.b32.xlu1 %v6421_v47, %s5379_s5 }
 0x81a   :  { %3460 = vrot.lane.b32.xlu0 %v6421_v47, %s5371_s20  ;;  %3464 = vrot.lane.b32.xlu1 %v6421_v47, %s5369_s0  ;;  %s5288_s0 = scalar_lea.vmem %s4543_s1, 256 }
 0x81b   :  { %p5289_p2 = scmp.ne.s32.totalorder %s4543_s1, %s5288_s0  ;;  %p5294_p4 = scmp.lt.s32.totalorder %s5288_s0, %s5288_s0 }
 0x81d   :  { %p5295_p5 = por %p5294_p4, %p5293_p3 }
 0x81e   :  { %3705 = vrot.lane.b32.xlu0 %v6421_v47, %s5368_s23  ;;  %3958 = vrot.lane.b32.xlu1 %v6421_v47, %s5393_s19 }
 0x81f   :  { %p5296_p6 = pnand %p5295_p5, %p5289_p2 }
 0x822   :  { %4198 = vrot.lane.b32.xlu0 %v6421_v47, %s5384_s8  ;;  %4439 = vrot.lane.b32.xlu1 %v6421_v47, %s5376_s13 }
 0x826   :  { %4502 = vrot.lane.b32.xlu0 %v6419_v18, %s5367_s2  ;;  %4497 = vrot.lane.b32.xlu1 %v6419_v18, %s5391_s15 }
 0x827   :  { %5299 = shalt.err (!%p5296_p6)
}
 0x828   :  { %s5300_s14 = scalar_lea.hbm %s7086_s27, 256 }
 0x829   :  { %p5301_p7 = scmp.ne.s32.totalorder %s7086_s27, %s5300_s14  ;;  %p5304_p8 = scmp.lt.u32.totalorder %s5300_s14, %s7086_s27 }
 0x82b   :  { %p5306_p9 = pnand %p5304_p8, %p5301_p7 }
 0x82d   :  { %5309 = shalt.err (!%p5306_p9)
}
 0x82e   :  { %4545 = dma.vmem_to_hbm [thread:$0]  %s4543_s1, 256, %s7086_s27, [#allocation4]   ;;  %vm2690_vm9 = vcmask 719872   ;;  %vm2692_vm12 = vcmask 1014784   ;;  %vm2695_vm2 = vcmask 556032   ;;  %vm2697_vm1 = vcmask 850944  }
 0x82f   :  { %vm7142_vm15 = vcmask 261120   ;;  %s5395_s27 = smov [#allocation18]  }
 0x830   :  { %vm7143_vm7 = vmmov %vm7142_vm15  ;;  %s4552_s10 = sshll.u32 %s5395_s27, 4  ;;  %s4553_s10 = int_to_ptr.vmem [resolvable:$true] %s4552_s10 }
 0x831   :  { %s5310_s8 = scalar_lea.vmem %s4553_s10, 640  ;;  %p5315_p11 = scmp.lt.s32.totalorder %s4553_s10, %s4553_s10 }
 0x832   :  { %p5311_p10 = scmp.ne.s32.totalorder %s4553_s10, %s5310_s8  ;;  %p5316_p12 = scmp.lt.s32.totalorder %s5310_s8, %s5310_s8 }
 0x834   :  { %v6617_v43 = vpop.permute.xlu0 %2643  ;;  %v6619_v56 = vpop.permute.xlu1 %2640  ;;  %p5317_p13 = por %p5316_p12, %p5315_p11 }
 0x835   :  { %v2685_v26 = vsel %vm669_vm10, %v6417_v15, %v6619_v56  ;;  %v3167_v25 = vsel %vm544_vm4, %v6619_v56, %v6617_v43 }
 0x836   :  { %v2686_v46 = vsel %vm675_vm13, %v2685_v26, %v6617_v43  ;;  %p5318_p0 = pnand %p5317_p13, %p5311_p10 }
 0x838   :  { %v6627_v28 = vpop.permute.xlu0 %2649  ;;  %v6631_v50 = vpop.permute.xlu1 %2646 }
 0x839   :  { %v2687_v29 = vsel %vm681_vm3, %v2686_v46, %v6631_v50  ;;  %v2927_v12 = vsel %vm544_vm4, %v6617_v43, %v6631_v50  ;;  %v3168_v35 = vsel %vm7099_vm0, %v3167_v25, %v6631_v50  ;;  %v2688_v33 = vsel %vm544_vm4, %v6631_v50, %v6627_v28 }
 0x83a   :  { %v6641_v5 = vmul.f32 %v2687_v29, %v6425_v24  ;;  %v2928_v48 = vsel %vm7099_vm0, %v2927_v12, %v6627_v28  ;;  %v3169_v51 = vsel %vm2690_vm9, %v3168_v35, %v6627_v28 }
 0x83c   :  { %v6646_v42 = vpop.permute.xlu0 %2655  ;;  %v6652_v53 = vpop.permute.xlu1 %2652 }
 0x83d   :  { %v2689_v49 = vsel %vm7099_vm0, %v2688_v33, %v6652_v53  ;;  %v2929_v24 = vsel %vm2690_vm9, %v2928_v48, %v6652_v53  ;;  %v3170_v55 = vsel %vm2692_vm12, %v3169_v51, %v6652_v53  ;;  %v3171_v26 = vsel %vm7142_vm15, %v6652_v53, %v6646_v42  ;;  %vm7144_vm0 = vmmov %vm7143_vm7 }
 0x83e   :  { %v2930_v22 = vsel %vm2692_vm12, %v2929_v24, %v6646_v42  ;;  %v3180_v8 = vmul.f32 %v3170_v55, %v6451_v30  ;;  %v2691_v46 = vsel %vm2690_vm9, %v2689_v49, %v6646_v42  ;;  %vm3411_vm15 = vcmask 457728  }
 0x83f   :  { %v2940_v10 = vmul.f32 %v2930_v22, %v6449_v19 }
 0x840   :  { %v6667_v25 = vpop.permute.xlu0 %2661  ;;  %v6671_v29 = vpop.permute.xlu1 %2658 }
 0x841   :  { %v2693_v12 = vsel %vm2692_vm12, %v2691_v46, %v6671_v29  ;;  %v2694_v30 = vsel %vm7143_vm7, %v6671_v29, %v6667_v25  ;;  %v2931_v19 = vsel %vm7144_vm0, %v6646_v42, %v6671_v29  ;;  %v3172_v35 = vsel %vm2695_vm2, %v3171_v26, %v6671_v29 }
 0x842   :  { %v2705_v33 = vmul.f32 %v2693_v12, %v6431_v44  ;;  %v3173_v48 = vsel %vm2697_vm1, %v3172_v35, %v6667_v25  ;;  %v2932_v51 = vsel %vm2695_vm2, %v2931_v19, %v6667_v25  ;;  %vm3406_vm0 = vcmask 162816  }
 0x843   :  { %v3181_v49 = vmul.f32 %v3173_v48, %v6465_v0 }
 0x844   :  { %v2945_v24 = vadd.f32 %v2940_v10, %v2705_v33  ;;  %v6689_v55 = vpop.permute.xlu0 %2667  ;;  %v6691_v22 = vpop.permute.xlu1 %2664 }
 0x845   :  { %v2696_v46 = vsel %vm2695_vm2, %v2694_v30, %v6691_v22  ;;  %v2933_v26 = vsel %vm2697_vm1, %v2932_v51, %v6691_v22  ;;  %v3174_v44 = vsel %vm665_vm8, %v6667_v25, %v6691_v22  ;;  %v2934_v30 = vsel %vm665_vm8, %v6691_v22, %v6689_v55 }
 0x846   :  { %v6700_v12 = vadd.f32 %v3180_v8, %v2945_v24  ;;  %v2698_v0 = vsel %vm2697_vm1, %v2696_v46, %v6689_v55  ;;  %v2941_v10 = vmul.f32 %v2933_v26, %v6433_v57  ;;  %v3175_v33 = vsel %vm671_vm11, %v3174_v44, %v6689_v55 }
 0x847   :  { %v2706_v19 = vmul.f32 %v2698_v0, %v6435_v36 }
 0x848   :  { %v6709_v35 = vpop.permute.xlu0 %2673  ;;  %v6713_v48 = vpop.permute.xlu1 %2670 }
 0x849   :  { %v2946_v8 = vadd.f32 %v2941_v10, %v2706_v19  ;;  %v2935_v51 = vsel %vm671_vm11, %v2934_v30, %v6713_v48  ;;  %v3176_v57 = vsel %vm7101_vm14, %v3175_v33, %v6713_v48  ;;  %v2699_v26 = vsel %vm665_vm8, %v6689_v55, %v6713_v48 }
 0x84a   :  { %v3177_v36 = vsel %vm7100_vm5, %v3176_v57, %v6709_v35  ;;  %v2936_v0 = vsel %vm7101_vm14, %v2935_v51, %v6709_v35  ;;  %v2700_v57 = vsel %vm671_vm11, %v2699_v26, %v6709_v35 }
 0x84b   :  { %v6721_v24 = vadd.f32 %v3181_v49, %v2946_v8  ;;  %v3182_v46 = vmul.f32 %v3177_v36, %v6469_v31 }
 0x84c   :  { %v6727_v44 = vpop.permute.xlu0 %2921  ;;  %v2677_v10 = vpop.permute.xlu1 %2676 }
 0x84d   :  { %v2924_v19 = vsel %vm669_vm10, %v6727_v44, %v6417_v15  ;;  %v2937_v30 = vsel %vm7100_vm5, %v2936_v0, %v2677_v10  ;;  %v3178_v49 = vsel %vm688_vm6, %v6709_v35, %v2677_v10  ;;  %v2701_v0 = vsel %vm7101_vm14, %v2700_v57, %v2677_v10  ;;  %vm7151_vm14 = vmmov %vm7143_vm7 }
 0x84e   :  { %v2925_v31 = vsel %vm675_vm13, %v2924_v19, %v6619_v56  ;;  %v2942_v33 = vmul.f32 %v2937_v30, %v6437_v16  ;;  %v3183_v8 = vmul.f32 %v3178_v49, %v6459_v52 }
 0x84f   :  { %v2926_v51 = vsel %vm681_vm3, %v2925_v31, %v6617_v43 }
 0x850   :  { %v2939_v36 = vmul.f32 %v2926_v51, %v6445_v9  ;;  %v2683_v17 = vpop.permute.xlu0 %2682  ;;  %v2680_v1 = vpop.permute.xlu1 %2679 }
 0x851   :  { %v2702_v40 = vsel %vm7100_vm5, %v2701_v0, %v2680_v1  ;;  %v2703_v19 = vsel %vm688_vm6, %v2680_v1, %v2683_v17  ;;  %v2938_v16 = vsel %vm688_vm6, %v2677_v10, %v2680_v1  ;;  %vm3416_vm5 = vcmask 752640  }
 0x852   :  { %v2944_v52 = vadd.f32 %v2939_v36, %v6641_v5  ;;  %v2707_v30 = vmul.f32 %v2702_v40, %v6443_v13  ;;  %v2708_v49 = vmul.f32 %v2703_v19, %v6423_v21  ;;  %v2943_v26 = vmul.f32 %v2938_v16, %v6457_v14 }
 0x854   :  { %v2947_v31 = vadd.f32 %v2942_v33, %v2707_v30  ;;  %v2948_v9 = vadd.f32 %v2943_v26, %v2708_v49  ;;  %v3403_v51 = vpop.permute.xlu0 %3402  ;;  %v3162_v45 = vpop.permute.xlu1 %3161 }
 0x855   :  { %v3164_v57 = vsel %vm669_vm10, %v3162_v45, %v6727_v44 }
 0x856   :  { %v6756_v0 = vadd.f32 %v3182_v46, %v2947_v31  ;;  %v6758_v17 = vadd.f32 %v3183_v8, %v2948_v9  ;;  %v3165_v1 = vsel %vm675_vm13, %v3164_v57, %v6417_v15 }
 0x857   :  { %v3166_v13 = vsel %vm681_vm3, %v3165_v1, %v6619_v56 }
 0x858   :  { %7145 = vst [vmem:[#allocation36_spill] sm:$0xff] %v6758_v17  ;;  %v3179_v21 = vmul.f32 %v3166_v13, %v6447_v27  ;;  %v4486_v14 = vpop.permute.xlu0 %4485  ;;  %v4461_v40 = vpop.permute.xlu1 %4460 }
 0x85a   :  { %v6765_v5 = vadd.f32 %v3179_v21, %v2944_v52 }
 0x85c   :  { %7146 = vst [vmem:[#allocation37_spill] sm:$0xff] %v6765_v5  ;;  %v6767_v10 = vpop.permute.xlu0 %4441  ;;  %v6769_v33 = vpop.permute.xlu1 %4445 }
 0x85d   :  { %7147 = vst [vmem:[#allocation38_spill] sm:$0xff] %v6767_v10  ;;  %7148 = vst [vmem:[#allocation39_spill] sm:$0xff] %v6769_v33 }
 0x860   :  { %v6771_v46 = vpop.permute.xlu0 %4454  ;;  %v4465_v8 = vpop.permute.xlu1 %4464 }
 0x864   :  { %v4473_v36 = vpop.permute.xlu0 %4472  ;;  %v6773_v19 = vpop.permute.xlu1 %4480 }
 0x868   :  { %v4490_v16 = vpop.permute.xlu0 %4489  ;;  %v6775_v30 = vpop.permute.xlu1 %4449 }
 0x869   :  { %7149 = vst [vmem:[#allocation40_spill] sm:$0xff] %v6775_v30 }
 0x86c   :  { %v4469_v49 = vpop.permute.xlu0 %4468  ;;  %v4477_v26 = vpop.permute.xlu1 %4476 }
 0x870   :  { %v6777_v27 = vpop.permute.xlu0 %4493  ;;  %v6779_v31 = vpop.permute.xlu1 %3448 }
 0x871   :  { %7150 = vst [vmem:[#allocation41_spill] sm:$0xff] %v6777_v27  ;;  %v3450_v10 = vsel %vm7143_vm7, %v6667_v25, %v6779_v31 }
 0x874   :  { %v3420_v52 = vpop.permute.xlu0 %3419  ;;  %v6781_v9 = vpop.permute.xlu1 %3404 }
 0x875   :  { %v3421_v13 = vsel %vm669_vm10, %v6619_v56, %v3420_v52  ;;  %v4474_v21 = vsel %vm669_vm10, %v3420_v52, %v4473_v36  ;;  %v4462_v54 = vsel %vm3406_vm0, %v6781_v9, %v4461_v40  ;;  %v3407_v36 = vsel %vm3406_vm0, %v3403_v51, %v6781_v9 }
 0x876   :  { %v3471_v2 = vsel %vm544_vm4, %v6421_v47, %v3421_v13  ;;  %v4513_v56 = vsel %vm7151_vm14, %v6419_v18, %v4474_v21  ;;  %v4509_v33 = vsel %vm544_vm4, %v6771_v46, %v4462_v54  ;;  %vm7152_vm14 = vcmask 424960  }
 0x877   :  { %vm7153_vm0 = vmmov %vm7152_vm14 }
 0x878   :  { %v6783_v57 = vpop.permute.xlu0 %3409  ;;  %v6785_v1 = vpop.permute.xlu1 %3423  ;;  %vm7155_vm7 = vmmov %vm7153_vm0 }
 0x879   :  { %v3412_v5 = vsel %vm3411_vm15, %v3162_v45, %v6783_v57  ;;  %v4466_v34 = vsel %vm3411_vm15, %v6783_v57, %v4465_v8  ;;  %v3425_v25 = vsel %vm675_vm13, %v6617_v43, %v6785_v1  ;;  %v4478_v13 = vsel %vm675_vm13, %v6785_v1, %v4477_v26  ;;  %vm7154_vm15 = vmmov %vm7153_vm0 }
 0x87a   :  { %v3468_v21 = vsel %vm669_vm10, %v3407_v36, %v3412_v5  ;;  %v4510_v17 = vsel %vm7154_vm15, %v4509_v33, %v4466_v34  ;;  %v4514_v23 = vsel %vm2695_vm2, %v4513_v56, %v4478_v13  ;;  %vm7158_vm15 = vmmov %vm7155_vm7 }
 0x87c   :  { %v6791_v11 = vpop.permute.xlu0 %3431  ;;  %v6793_v27 = vpop.permute.xlu1 %3435 }
 0x87d   :  { %v4487_v40 = vsel %vm544_vm4, %v6791_v11, %v4486_v14  ;;  %v3433_v18 = vsel %vm544_vm4, %v6627_v28, %v6791_v11  ;;  %v3437_v51 = vsel %vm7152_vm14, %v6652_v53, %v6793_v27  ;;  %v4491_v14 = vsel %vm7153_vm0, %v6793_v27, %v4490_v16 }
 0x87e   :  { %v4516_v53 = vsel %vm665_vm8, %v6773_v19, %v4487_v40  ;;  %v4204_v16 = vsel %vm544_vm4, %v6781_v9, %v6783_v57  ;;  %vm7156_vm14 = vcmask 261120   ;;  %v4211_v5 = vsel %vm665_vm8, %v6791_v11, %v6793_v27 }
 0x87f   :  { %v4208_v30 = vsel %vm7156_vm14, %v3420_v52, %v6785_v1  ;;  %vm7157_vm0 = vmmov %vm7156_vm14 }
 0x880   :  { %v6820_v54 = vpop.permute.xlu0 %3443  ;;  %v6822_v45 = vpop.permute.xlu1 %3452  ;;  %v3475_v36 = vsel %vm7157_vm0, %v3433_v18, %v3437_v51  ;;  %vm7159_vm14 = vmmov %vm7155_vm7 }
 0x881   :  { %v3478_v43 = vsel %vm665_vm8, %v6820_v54, %v3450_v10  ;;  %v3454_v8 = vsel %vm2695_vm2, %v6691_v22, %v6822_v45  ;;  %v4215_v26 = vsel %vm688_vm6, %v6779_v31, %v6822_v45  ;;  %v3472_v22 = vsel %vm7155_vm7, %v3471_v2, %v3425_v25 }
 0x882   :  { %v6842_v10 = vsel %vm671_vm11, %v3478_v43, %v3454_v8  ;;  %v3445_v34 = vsel %vm2692_vm12, %v6671_v29, %v6820_v54  ;;  %v6858_v2 = vmul.f32 %v4215_v26, %v6523_v7  ;;  %v6861_v25 = vsel %vm671_vm11, %v4516_v53, %v4491_v14 }
 0x884   :  { %v6855_v33 = vpop.permute.xlu0 %3414  ;;  %v3428_v40 = vpop.permute.xlu1 %3427 }
 0x885   :  { %v3417_v56 = vsel %vm3416_vm5, %v6727_v44, %v6855_v33  ;;  %v3724_v13 = vsel %vm544_vm4, %v6855_v33, %v6421_v47  ;;  %v3964_v29 = vsel %vm544_vm4, %v6783_v57, %v6855_v33  ;;  %v4205_v18 = vsel %vm7158_vm15, %v4204_v16, %v6855_v33  ;;  %vm7160_vm4 = vmmov %vm7157_vm0 }
 0x886   :  { %v3469_v7 = vsel %vm675_vm13, %v3468_v21, %v3417_v56  ;;  %v3725_v51 = vsel %vm7155_vm7, %v3724_v13, %v3420_v52  ;;  %v3965_v14 = vsel %vm7159_vm14, %v3964_v29, %v6421_v47  ;;  %v4206_v44 = vsel %vm2690_vm9, %v4205_v18, %v6421_v47 }
 0x887   :  { %v6882_v43 = vsel %vm681_vm3, %v3469_v7, %v6417_v15  ;;  %v3966_v8 = vsel %vm2690_vm9, %v3965_v14, %v3420_v52  ;;  %v4207_v26 = vsel %vm2692_vm12, %v4206_v44, %v3420_v52  ;;  %v4470_v53 = vsel %vm3416_vm5, %v6855_v33, %v4469_v49  ;;  %vm7161_vm5 = vmmov %vm7157_vm0 }
 0x888   :  { %v3967_v21 = vsel %vm2692_vm12, %v3966_v8, %v6785_v1  ;;  %v6891_v16 = vmul.f32 %v4207_v26, %v6515_v59  ;;  %v4511_v56 = vsel %vm2690_vm9, %v4510_v17, %v4470_v53  ;;  %v3726_v13 = vsel %vm2690_vm9, %v3725_v51, %v6785_v1  ;;  %v6896_v15 = vpop.permute.xlu0 %3439  ;;  %v3457_v29 = vpop.permute.xlu1 %3456 }
 0x889   :  { %v6900_v52 = vsel %vm2692_vm12, %v4511_v56, %v6421_v47  ;;  %v3977_v49 = vmul.f32 %v3967_v21, %v6513_v3  ;;  %v3429_v18 = vsel %vm681_vm3, %v6631_v50, %v3428_v40  ;;  %v3727_v59 = vsel %vm2692_vm12, %v3726_v13, %v3428_v40 }
 0x88a   :  { %v3473_v7 = vsel %vm2690_vm9, %v3472_v22, %v3429_v18  ;;  %v3728_v17 = vsel %vm7160_vm4, %v3428_v40, %v6791_v11  ;;  %v3737_v51 = vmul.f32 %v3727_v59, %v6483_v38  ;;  %v3968_v14 = vsel %vm7161_vm5, %v6785_v1, %v3428_v40 }
 0x88b   :  { %v3474_v47 = vsel %vm2692_vm12, %v3473_v7, %v6627_v28  ;;  %v3969_v3 = vsel %vm2695_vm2, %v3968_v14, %v6791_v11  ;;  %v4209_v50 = vsel %vm2695_vm2, %v4208_v30, %v3428_v40  ;;  %v4482_v44 = vsel %vm681_vm3, %v3428_v40, %v6773_v19 }
 0x88c   :  { %v3484_v22 = vmul.f32 %v3474_v47, %v6481_v37  ;;  %v3970_v8 = vsel %vm2697_vm1, %v3969_v3, %v6793_v27  ;;  %v4210_v38 = vsel %vm2697_vm1, %v4209_v50, %v6791_v11  ;;  %v4515_v1 = vsel %vm2697_vm1, %v4514_v23, %v4482_v44  ;;  %v3461_v26 = vpop.permute.xlu0 %3460  ;;  %v3465_v28 = vpop.permute.xlu1 %3464 }
 0x88d   :  { %vm4456_vm0 = vcmask 916480   ;;  %v3978_v53 = vmul.f32 %v3970_v8, %v6499_v62  ;;  %v6927_v30 = vmul.f32 %v4210_v38, %v6529_v20  ;;  %v6930_v19 = vmul.f32 %v4515_v1, %v6531_v61 }
 0x88e   :  { %v3441_v37 = vsel %vm2690_vm9, %v6646_v42, %v6896_v15  ;;  %vm4451_vm15 = vcmask 621568   ;;  %v3489_v11 = vadd.f32 %v3484_v22, %v6700_v12  ;;  %v3729_v40 = vsel %vm2695_vm2, %v3728_v17, %v6793_v27 }
 0x88f   :  { %v3476_v23 = vsel %vm2695_vm2, %v3475_v36, %v3441_v37  ;;  %v3731_v62 = vsel %vm665_vm8, %v6896_v15, %v6820_v54  ;;  %v3730_v61 = vsel %vm2697_vm1, %v3729_v40, %v6896_v15  ;;  %v3971_v42 = vsel %vm665_vm8, %v6793_v27, %v6896_v15  ;;  %v7171_v40 = vld [vmem:[#allocation36_spill] sm:$0xff] }
 0x890   :  { %v3477_v20 = vsel %vm2697_vm1, %v3476_v23, %v3445_v34  ;;  %v4212_v12 = vsel %vm671_vm11, %v4211_v5, %v6896_v15  ;;  %v3742_v36 = vadd.f32 %v3737_v51, %v3489_v11  ;;  %v3738_v56 = vmul.f32 %v3730_v61, %v6497_v58  ;;  %v3706_v18 = vpop.permute.xlu0 %3705  ;;  %v3959_v34 = vpop.permute.xlu1 %3958 }
 0x891   :  { %v3485_v21 = vmul.f32 %v3477_v20, %v6467_v6  ;;  %v3972_v13 = vsel %vm671_vm11, %v3971_v42, %v6820_v54  ;;  %vm7162_vm2 = vcmask 687104   ;;  %v3732_v7 = vsel %vm671_vm11, %v3731_v62, %v6779_v31  ;;  %v7172_v62 = vld [vmem:[#allocation28_spill] sm:$0xff]  ;;  %v7173_v42 = vld [vmem:[#allocation37_spill] sm:$0xff] }
 0x892   :  { %v4213_v59 = vsel %vm7162_vm2, %v4212_v12, %v6820_v54  ;;  %vm7163_vm7 = vmmov %vm7162_vm2  ;;  %v3458_v5 = vsel %vm2697_vm1, %v6689_v55, %v3457_v29  ;;  %v6962_v6 = vadd.f32 %v3977_v49, %v3742_v36  ;;  %vm7165_vm4 = vcmask 982016   ;;  %v7174_v36 = vld [vmem:[#allocation39_spill] sm:$0xff] }
 0x893   :  { %v3973_v27 = vsel %vm7163_vm7, %v3972_v13, %v6779_v31  ;;  %v3490_v58 = vadd.f32 %v3485_v21, %v6721_v24  ;;  %vm7164_vm14 = vmmov %vm7162_vm2  ;;  %v3975_v55 = vsel %vm688_vm6, %v6822_v45, %v3457_v29  ;;  %v3466_v38 = vsel %vm671_vm11, %v6709_v35, %v3465_v28 }
 0x894   :  { %v3733_v17 = vsel %vm7164_vm14, %v3732_v7, %v6822_v45  ;;  %v3974_v51 = vsel %vm7165_vm4, %v3973_v27, %v6822_v45  ;;  %vm7166_vm5 = vmmov %vm7162_vm2  ;;  %v3980_v44 = vmul.f32 %v3975_v55, %v6521_v4  ;;  %v4199_v22 = vpop.permute.xlu0 %4198  ;;  %v4440_v4 = vpop.permute.xlu1 %4439  ;;  %v3961_v28 = vsel %vm669_vm10, %v3959_v34, %v3706_v18  ;;  %v7176_v7 = vld [vmem:[#allocation29_spill] sm:$0xff] }
 0x895   :  { %v3979_v14 = vmul.f32 %v3974_v51, %v6503_v41  ;;  %v3480_v47 = vsel %vm7166_vm5, %v6842_v10, %v3458_v5  ;;  %vm7167_vm2 = vmmov %vm7165_vm4  ;;  %v3743_v49 = vadd.f32 %v3738_v56, %v3490_v58  ;;  %v3462_v41 = vsel %vm665_vm8, %v6713_v48, %v3461_v26  ;;  %v7177_v51 = vld [vmem:[#allocation38_spill] sm:$0xff] }
 0x896   :  { %v3734_v3 = vsel %vm7167_vm2, %v3733_v17, %v3457_v29  ;;  %vm7168_vm1 = vmmov %vm7167_vm2  ;;  %v3735_v10 = vsel %vm688_vm6, %v3457_v29, %v3461_v26  ;;  %v3482_v37 = vsel %vm688_vm6, %v3462_v41, %v3466_v38  ;;  %v4457_v29 = vsel %vm4456_vm0, %v3706_v18, %v6771_v46 }
 0x897   :  { %v3481_v24 = vsel %vm7168_vm1, %v3480_v47, %v6713_v48  ;;  %v3739_v50 = vmul.f32 %v3734_v3, %v6501_v63  ;;  %v3983_v45 = vadd.f32 %v3978_v53, %v3743_v49  ;;  %v3740_v1 = vmul.f32 %v3735_v10, %v6491_v39  ;;  %v7169_v39 = vld [vmem:[#allocation27_spill] sm:$0xff]  ;;  %v7170_v53 = vld [vmem:[#allocation40_spill] sm:$0xff]  ;;  %v7180_v3 = vld [vmem:[#allocation30_spill] sm:$0xff] }
 0x898   :  { %v3486_v8 = vmul.f32 %v3481_v24, %v6471_v32  ;;  %v3721_v63 = vsel %vm669_vm10, %v3706_v18, %v6781_v9  ;;  %v3487_v32 = vmul.f32 %v3482_v37, %v6489_v60  ;;  %v3483_v26 = vmul.f32 %v6882_v43, %v7169_v39  ;;  %v4503_v46 = vpop.permute.xlu0 %4502  ;;  %vm7184_vm7 = vmmov %vm7166_vm5 }
 0x899   :  { %v3722_v48 = vsel %vm675_vm13, %v3721_v63, %v6783_v57  ;;  %v4452_v23 = vsel %vm4451_vm15, %v3959_v34, %v7170_v53  ;;  %v3962_v61 = vsel %vm675_vm13, %v3961_v28, %v6781_v9  ;;  %v4201_v43 = vsel %vm669_vm10, %v4199_v22, %v3959_v34  ;;  %v4498_v34 = vpop.permute.xlu1 %4497  ;;  %vm7181_vm15 = vmmov %vm7168_vm1 }
 0x89a   :  { %v3491_v11 = vadd.f32 %v3486_v8, %v6756_v0  ;;  %v3723_v35 = vsel %vm681_vm3, %v3722_v48, %v6855_v33  ;;  %v3492_v60 = vadd.f32 %v3487_v32, %v7171_v40  ;;  %v3488_v12 = vadd.f32 %v3483_v26, %v7173_v42  ;;  %v7183_v8 = vld [vmem:[#allocation41_spill] sm:$0xff]  ;;  %v7187_v32 = vld [vmem:[#allocation32_spill] sm:$0xff] }
 0x89b   :  { %v3736_v20 = vmul.f32 %v3723_v35, %v7172_v62  ;;  %v3963_v33 = vsel %vm681_vm3, %v3962_v61, %v6783_v57  ;;  %vm7175_vm8 = vcmask 326656   ;;  %v4202_v5 = vsel %vm675_vm13, %v4201_v43, %v3706_v18  ;;  %v7189_v35 = vld [vmem:[#allocation34_spill] sm:$0xff] }
 0x89c   :  { %v3744_v0 = vadd.f32 %v3739_v50, %v3491_v11  ;;  %v4447_v21 = vsel %vm7175_vm8, %v4199_v22, %v7174_v36  ;;  %v3745_v13 = vadd.f32 %v3740_v1, %v3492_v60  ;;  %v3976_v27 = vmul.f32 %v3963_v33, %v7176_v7  ;;  %v7182_v22 = vld [vmem:[#allocation31_spill] sm:$0xff] }
 0x89d   :  { %v3741_v58 = vadd.f32 %v3736_v20, %v3488_v12  ;;  %v4203_v17 = vsel %vm681_vm3, %v4202_v5, %v6781_v9  ;;  %vm7178_vm11 = vcmask 31744   ;;  %vm7179_vm0 = vcmask 261120  }
 0x89e   :  { %v3984_v56 = vadd.f32 %v3979_v14, %v3744_v0  ;;  %v4443_v47 = vsel %vm7178_vm11, %v4440_v4, %v7177_v51  ;;  %v4504_v57 = vsel %vm7179_vm0, %v6779_v31, %v4503_v46  ;;  %v4216_v55 = vmul.f32 %v4203_v17, %v7180_v3 }
 0x89f   :  { %v4506_v14 = vsel %vm669_vm10, %v4443_v47, %v4447_v21  ;;  %v3985_v49 = vadd.f32 %v3980_v44, %v3745_v13  ;;  %v4214_v24 = vsel %vm7181_vm15, %v4213_v59, %v6779_v31  ;;  %v3981_v18 = vadd.f32 %v3976_v27, %v3741_v58  ;;  %v7185_v59 = vld [vmem:[#allocation33_spill] sm:$0xff]  ;;  %vm7186_vm10 = vmmov %vm7168_vm1 }
 0x8a0   :  { %v4507_v50 = vsel %vm675_vm13, %v4506_v14, %v4452_v23  ;;  %v4219_v9 = vmul.f32 %v4214_v24, %v7182_v22  ;;  %v4495_v41 = vsel %vm2690_vm9, %v6896_v15, %v7183_v8  ;;  %v4499_v44 = vsel %vm2692_vm12, %v6820_v54, %v4498_v34 }
 0x8a1   :  { %v4508_v10 = vsel %vm681_vm3, %v4507_v50, %v4457_v29  ;;  %v4225_v38 = vadd.f32 %v6858_v2, %v3985_v49  ;;  %v4518_v1 = vsel %vm7184_vm7, %v6861_v25, %v4495_v41  ;;  %v4221_v31 = vadd.f32 %v4216_v55, %v3981_v18  ;;  %v7188_v29 = vld [vmem:[#allocation35_spill] sm:$0xff] }
 0x8a2   :  { %v4521_v37 = vmul.f32 %v4508_v10, %v7185_v59  ;;  %v4224_v63 = vadd.f32 %v4219_v9, %v3984_v56  ;;  %v4519_v4 = vsel %vm7186_vm10, %v4518_v1, %v4499_v44  ;;  %v4520_v11 = vsel %vm688_vm6, %v4498_v34, %v4504_v57 }
 0x8a3   :  { %v4524_v15 = vmul.f32 %v4519_v4, %v7187_v32  ;;  %v4222_v48 = vadd.f32 %v6891_v16, %v6962_v6  ;;  %v4223_v2 = vadd.f32 %v6927_v30, %v3983_v45  ;;  %v4525_v54 = vmul.f32 %v4520_v11, %v7188_v29 }
 0x8a4   :  { %v4526_v25 = vadd.f32 %v4521_v37, %v4221_v31  ;;  %v4522_v39 = vmul.f32 %v6900_v52, %v7189_v35  ;;  %vm7190_vm13 = vcmask 523264  }
 0x8a5   :  { %v4529_v26 = vadd.f32 %v4524_v15, %v4224_v63  ;;  %v4528_v28 = vadd.f32 %v6930_v19, %v4223_v2  ;;  %v4530_v53 = vadd.f32 %v4525_v54, %v4225_v38 }
 0x8a6   :  { %4531 = vst [vmem:[#allocation18] sm:$0xff] %v4526_v25  ;;  %v4527_v23 = vadd.f32 %v4522_v39, %v4222_v48 }
 0x8a7   :  { %4534 = vst [vmem:[#allocation18 + $0x18] sm:$0xff] %v4529_v26  ;;  %4533 = vst [vmem:[#allocation18 + $0x10] sm:$0xff] %v4528_v28 }
 0x8a8   :  { %4535 = vst.msk [vmem:[#allocation18 + $0x20] sm:$0xff] %vm7190_vm13, %v4530_v53  ;;  %4532 = vst [vmem:[#allocation18 + $0x8] sm:$0xff] %v4527_v23 }
 0x8a9   :  { %5321 = shalt.err (!%p5318_p0)
}
 0x8aa   :  { %s7191_s6 = sld [smem:[#allocation55_spill]] }
 0x8b0   :  { %s5322_s12 = scalar_lea.hbm %s7191_s6, 640 }
 0x8b1   :  { %p5323_p1 = scmp.ne.s32.totalorder %s7191_s6, %s5322_s12  ;;  %p5326_p2 = scmp.lt.u32.totalorder %s5322_s12, %s7191_s6 }
 0x8b3   :  { %p5328_p3 = pnand %p5326_p2, %p5323_p1 }
 0x8b5   :  { %5331 = shalt.err (!%p5328_p3)
}
 0x8b6   :  { %4555 = dma.vmem_to_hbm [thread:$0]  %s4553_s10, 640, %s7191_s6, [#allocation19]  }
 0x8b7   :  { %5342 = dma.done.wait [#allocation4], 256  }
 0x8b8   :  { %5343 = vsyncadd [#allocation4], 4294967040 }
 0x8b9   :  { %5344 = dma.done.wait [#allocation19], 640  }
 0x8ba   :  { %5345 = vsyncadd [#allocation19], 4294966656 }
 0x8bb   :  { %4562 = vsyncpa [#allocation3], 1 }
 0x8bc   :  { %4563 = vsyncpa [#allocation6], 1 }
 0x8bd   :  { %4564 = vsyncpa [#allocation9], 1 }
 0x8be   :  { %4565 = vsyncpa [#allocation12], 1 }
 0x8bf   :  { %4566 = vsyncpa [#allocation15], 1 }
 0x8c0   :  { %4567 = vsyncpa [#allocation4], 1 }
 0x8c1   :  { %4568 = vsyncpa [#allocation19], 1 }

</bundles_post_ra>
